<compile_context>
chip_gen: v6e
topology: v6e:2x2x1
jax: 0.10.0
libtpu: 0.0.40
codegen_flags: <defaults>
</compile_context>

<pallas_src>
import jax
import jax.numpy as jnp
from jax.experimental import pallas as pl
from jax.experimental.pallas import tpu as pltpu

# Problem dims (from the PyTorch module).
IN_FEATURES = 28 * 28          # 784
HIDDEN = 512
OUT_FEATURES = 10

# Lane-padded output width (lane-dense, unmasked stores). Real logits: [:, :10].
N_PAD = 128


def _round_up(x, m):
    return (x + m - 1) // m * m


def _choose_tile_b(b):
    """Pick (TILE_B, padded_batch). Small batches -> 128-row tile; large batches
    -> up to 512-row tiles, keeping >= 2 grid steps so v7x's 2nd TC gets work."""
    bp = _round_up(max(b, 1), 128)
    if bp == 128:
        return 128, bp
    for t in (512, 256, 128):
        if bp % t == 0 and bp // t >= 2:
            return t, bp
    return 128, bp  # unreachable: bp is a multiple of 128 and >= 256


def mlp_kernel(x_ref, w1_ref, b1_ref, w2_ref, b2_ref, w3_ref, b3_ref, o_ref):
    """Fused 784->512->512->10(padded to 128) MLP on one (TILE_B, 784) batch tile.

    Matmul operands are bf16 (MXU-native); accumulation and the bias/ReLU
    epilogue stay in f32. The output tile is stored as bf16 (lane-padded)."""
    # Linear(784, 512) + ReLU
    h1 = jnp.dot(x_ref[...], w1_ref[...], preferred_element_type=jnp.float32)
    h1 = jnp.maximum(h1 + b1_ref[...], 0.0).astype(jnp.bfloat16)
    # Linear(512, 512) + ReLU
    h2 = jnp.dot(h1, w2_ref[...], preferred_element_type=jnp.float32)
    h2 = jnp.maximum(h2 + b2_ref[...], 0.0).astype(jnp.bfloat16)
    # Linear(512, 10) -- output lane-padded to 128; real logits live in [:, :10]
    logits = jnp.dot(h2, w3_ref[...], preferred_element_type=jnp.float32)
    o_ref[...] = (logits + b3_ref[...]).astype(o_ref.dtype)


def prepare_params(params):
    """One-time weight prep: transpose to (in, out), lane-pad only the final
    layer, cast matmul operands to bf16. Hoisted out of the per-call forward."""
    w1, b1, w2, b2, w3, b3 = params
    w1t = w1.T.astype(jnp.bfloat16)                                   # (784, 512)
    w2t = w2.T.astype(jnp.bfloat16)                                   # (512, 512)
    w3t = (jnp.zeros((HIDDEN, N_PAD), jnp.float32)
           .at[:, :OUT_FEATURES].set(w3.T)).astype(jnp.bfloat16)      # (512, 128)
    b3p = jnp.zeros((1, N_PAD), jnp.float32).at[0, :OUT_FEATURES].set(b3)
    return (w1t,
            b1.reshape(1, HIDDEN).astype(jnp.float32),
            w2t,
            b2.reshape(1, HIDDEN).astype(jnp.float32),
            w3t,
            b3p)


@jax.jit
def neural_network_forward(x, prepared):
    """x: (B, 28, 28) or (B, 1, 28, 28) float32 -> logits (B, 10) float32."""
    w1t, b1r, w2t, b2r, w3t, b3r = prepared

    b = x.shape[0]
    tile_b, bp = _choose_tile_b(b)

    # torch.nn.Flatten; cast matmul operand to bf16 once, pad only the batch tail.
    x_flat = x.reshape(b, IN_FEATURES).astype(jnp.bfloat16)
    if bp != b:
        x_flat = jnp.pad(x_flat, ((0, bp - b), (0, 0)))

    resident = lambda i: (0, 0)   # weights/biases: same block every grid step

    flops = 2 * bp * (IN_FEATURES * HIDDEN + HIDDEN * HIDDEN + HIDDEN * N_PAD)
    bytes_accessed = (bp * IN_FEATURES * 2                                     # x (bf16)
                      + (IN_FEATURES * HIDDEN + HIDDEN * HIDDEN
                         + HIDDEN * N_PAD) * 2                                 # weights (bf16)
                      + (2 * HIDDEN + N_PAD) * 4                               # biases (f32)
                      + bp * N_PAD * 2)                                        # out (bf16)

    out = pl.pallas_call(
        mlp_kernel,
        out_shape=jax.ShapeDtypeStruct((bp, N_PAD), jnp.bfloat16),
        grid=(bp // tile_b,),
        in_specs=[
            pl.BlockSpec((tile_b, IN_FEATURES), lambda i: (i, 0)),  # x tile (pipelined)
            pl.BlockSpec((IN_FEATURES, HIDDEN), resident),          # w1 (bf16)
            pl.BlockSpec((1, HIDDEN), resident),                    # b1 (f32)
            pl.BlockSpec((HIDDEN, HIDDEN), resident),               # w2 (bf16)
            pl.BlockSpec((1, HIDDEN), resident),                    # b2 (f32)
            pl.BlockSpec((HIDDEN, N_PAD), resident),                # w3 (bf16, lane-padded)
            pl.BlockSpec((1, N_PAD), resident),                     # b3 (f32, lane-padded)
        ],
        out_specs=pl.BlockSpec((tile_b, N_PAD), lambda i: (i, 0)),
        compiler_params=pltpu.CompilerParams(
            dimension_semantics=("parallel",)),  # batch tiles shard across v7x TCs
        cost_estimate=pl.CostEstimate(
            flops=flops, transcendentals=0, bytes_accessed=bytes_accessed),
    )(x_flat, w1t, b1r, w2t, b2r, w3t, b3r)

    # Padded batch rows hold garbage logits (bias through ReLU); slice them off.
    return out[:b, :OUT_FEATURES].astype(jnp.float32)


def init_params(key):
    """Deterministic init matching the shapes/init of the PyTorch module."""
    k1, k2, k3, k4, k5, k6 = jax.random.split(key, 6)

    def linear_init(kw, kb, fan_in, fan_out):
        bound = 1.0 / jnp.sqrt(fan_in)
        w = jax.random.uniform(kw, (fan_out, fan_in), jnp.float32, -bound, bound)
        b = jax.random.uniform(kb, (fan_out,), jnp.float32, -bound, bound)
        return w, b

    w1, b1 = linear_init(k1, k2, IN_FEATURES, HIDDEN)
    w2, b2 = linear_init(k3, k4, HIDDEN, HIDDEN)
    w3, b3 = linear_init(k5, k6, HIDDEN, OUT_FEATURES)
    return (w1, b1, w2, b2, w3, b3)


if __name__ == "__main__":
    key = jax.random.PRNGKey(0)
    kx, kp = jax.random.split(key)

    batch = 8
    x = jax.random.normal(kx, (batch, 28, 28), dtype=jnp.float32)
    params = init_params(kp)
    prepared = prepare_params(params)   # one-time weight prep (outside hot path)

    logits = neural_network_forward(x, prepared)
    logits = jax.block_until_ready(logits)

    # Reference in plain f32 JAX (same math as the PyTorch module). bf16 matmul
    # operands / bf16 output tile in the kernel -> loosened tolerance.
    w1, b1, w2, b2, w3, b3 = params
    xf = x.reshape(batch, -1)
    ref = jnp.maximum(xf @ w1.T + b1, 0.0)
    ref = jnp.maximum(ref @ w2.T + b2, 0.0)
    ref = ref @ w3.T + b3

    assert logits.shape == (batch, 10)
    assert jnp.allclose(logits, ref, atol=5e-2, rtol=5e-2), (
        float(jnp.max(jnp.abs(logits - ref))))

    print("KERNEL_OK")
</pallas_src>

<mosaic_0001>
module attributes {stable_mosaic.version = 11 : i64} {
  func.func @mlp_kernel(%arg0: i32, %arg1: memref<128x784xbf16, #tpu.memory_space<vmem>>, %arg2: memref<784x512xbf16, #tpu.memory_space<vmem>>, %arg3: memref<1x512xf32, #tpu.memory_space<vmem>>, %arg4: memref<512x512xbf16, #tpu.memory_space<vmem>>, %arg5: memref<1x512xf32, #tpu.memory_space<vmem>>, %arg6: memref<512x128xbf16, #tpu.memory_space<vmem>>, %arg7: memref<1x128xf32, #tpu.memory_space<vmem>>, %arg8: memref<128x128xbf16, #tpu.memory_space<vmem>>) attributes {dimension_semantics = [#tpu.dimension_semantics<parallel>], iteration_bounds = array<i64: 1>, scalar_prefetch = 0 : i64, scratch_operands = 0 : i64, tpu.core_type = #tpu.core_type<tc>, window_params = [{transform_indices = @transform_0, window_bounds = array<i64: 128, 784>}, {pipeline_mode = #tpu.pipeline_mode<synchronous>, transform_indices = @transform_1, window_bounds = array<i64: 784, 512>}, {pipeline_mode = #tpu.pipeline_mode<synchronous>, transform_indices = @transform_2, window_bounds = array<i64: 1, 512>}, {pipeline_mode = #tpu.pipeline_mode<synchronous>, transform_indices = @transform_3, window_bounds = array<i64: 512, 512>}, {pipeline_mode = #tpu.pipeline_mode<synchronous>, transform_indices = @transform_4, window_bounds = array<i64: 1, 512>}, {pipeline_mode = #tpu.pipeline_mode<synchronous>, transform_indices = @transform_5, window_bounds = array<i64: 512, 128>}, {pipeline_mode = #tpu.pipeline_mode<synchronous>, transform_indices = @transform_6, window_bounds = array<i64: 1, 128>}, {transform_indices = @transform_7, window_bounds = array<i64: 128, 128>}]} {
    %c0 = arith.constant 0 : index
    %c0_0 = arith.constant 0 : index
    %0 = vector.load %arg1[%c0, %c0_0] : memref<128x784xbf16, #tpu.memory_space<vmem>>, vector<128x784xbf16>
    %c0_1 = arith.constant 0 : index
    %c0_2 = arith.constant 0 : index
    %1 = vector.load %arg2[%c0_1, %c0_2] : memref<784x512xbf16, #tpu.memory_space<vmem>>, vector<784x512xbf16>
    %cst = arith.constant dense<0.000000e+00> : vector<128x512xf32>
    %2 = tpu.matmul %0, %1, %cst {dimension_numbers = #tpu.dot_dimension_numbers<[1], [0], [0], [1], [0, 0, 1, 1], [], []>} : vector<128x784xbf16>, vector<784x512xbf16>, vector<128x512xf32> -> vector<128x512xf32>
    %c0_3 = arith.constant 0 : index
    %c0_4 = arith.constant 0 : index
    %3 = vector.load %arg3[%c0_3, %c0_4] : memref<1x512xf32, #tpu.memory_space<vmem>>, vector<1x512xf32>
    %4 = vector.broadcast %3 : vector<1x512xf32> to vector<128x512xf32>
    %5 = arith.addf %2, %4 : vector<128x512xf32>
    %cst_5 = arith.constant 0.000000e+00 : f32
    %6 = vector.broadcast %cst_5 : f32 to vector<128x512xf32>
    %7 = arith.maximumf %5, %6 : vector<128x512xf32>
    %8 = arith.truncf %7 : vector<128x512xf32> to vector<128x512xbf16>
    %c0_6 = arith.constant 0 : index
    %c0_7 = arith.constant 0 : index
    %9 = vector.load %arg4[%c0_6, %c0_7] : memref<512x512xbf16, #tpu.memory_space<vmem>>, vector<512x512xbf16>
    %cst_8 = arith.constant dense<0.000000e+00> : vector<128x512xf32>
    %10 = tpu.matmul %8, %9, %cst_8 {dimension_numbers = #tpu.dot_dimension_numbers<[1], [0], [0], [1], [0, 0, 1, 1], [], []>} : vector<128x512xbf16>, vector<512x512xbf16>, vector<128x512xf32> -> vector<128x512xf32>
    %c0_9 = arith.constant 0 : index
    %c0_10 = arith.constant 0 : index
    %11 = vector.load %arg5[%c0_9, %c0_10] : memref<1x512xf32, #tpu.memory_space<vmem>>, vector<1x512xf32>
    %12 = vector.broadcast %11 : vector<1x512xf32> to vector<128x512xf32>
    %13 = arith.addf %10, %12 : vector<128x512xf32>
    %cst_11 = arith.constant 0.000000e+00 : f32
    %14 = vector.broadcast %cst_11 : f32 to vector<128x512xf32>
    %15 = arith.maximumf %13, %14 : vector<128x512xf32>
    %16 = arith.truncf %15 : vector<128x512xf32> to vector<128x512xbf16>
    %c0_12 = arith.constant 0 : index
    %c0_13 = arith.constant 0 : index
    %17 = vector.load %arg6[%c0_12, %c0_13] : memref<512x128xbf16, #tpu.memory_space<vmem>>, vector<512x128xbf16>
    %cst_14 = arith.constant dense<0.000000e+00> : vector<128x128xf32>
    %18 = tpu.matmul %16, %17, %cst_14 {dimension_numbers = #tpu.dot_dimension_numbers<[1], [0], [0], [1], [0, 0, 1, 1], [], []>} : vector<128x512xbf16>, vector<512x128xbf16>, vector<128x128xf32> -> vector<128x128xf32>
    %c0_15 = arith.constant 0 : index
    %c0_16 = arith.constant 0 : index
    %19 = vector.load %arg7[%c0_15, %c0_16] : memref<1x128xf32, #tpu.memory_space<vmem>>, vector<1x128xf32>
    %20 = vector.broadcast %19 : vector<1x128xf32> to vector<128x128xf32>
    %21 = arith.addf %18, %20 : vector<128x128xf32>
    %22 = arith.truncf %21 : vector<128x128xf32> to vector<128x128xbf16>
    %c0_17 = arith.constant 0 : index
    %c0_18 = arith.constant 0 : index
    %23 = vector.load %arg8[%c0_17, %c0_18] : memref<128x128xbf16, #tpu.memory_space<vmem>>, vector<128x128xbf16>
    tpu.vector_store %arg8[%c0_17, %c0_18], %22 {strides = array<i32>} : memref<128x128xbf16, #tpu.memory_space<vmem>>, vector<128x128xbf16>,
    return
  }
  func.func @transform_0(%arg0: i32) -> (i32, i32) {
    %c0_i32 = arith.constant 0 : i32
    %c0_i32_0 = arith.constant 0 : i32
    return %arg0, %c0_i32 : i32, i32
  }
  func.func @transform_1(%arg0: i32) -> (i32, i32) {
    %c0_i32 = arith.constant 0 : i32
    %c0_i32_0 = arith.constant 0 : i32
    %c0_i32_1 = arith.constant 0 : i32
    return %c0_i32, %c0_i32_0 : i32, i32
  }
  func.func @transform_2(%arg0: i32) -> (i32, i32) {
    %c0_i32 = arith.constant 0 : i32
    %c0_i32_0 = arith.constant 0 : i32
    %c0_i32_1 = arith.constant 0 : i32
    return %c0_i32, %c0_i32_0 : i32, i32
  }
  func.func @transform_3(%arg0: i32) -> (i32, i32) {
    %c0_i32 = arith.constant 0 : i32
    %c0_i32_0 = arith.constant 0 : i32
    %c0_i32_1 = arith.constant 0 : i32
    return %c0_i32, %c0_i32_0 : i32, i32
  }
  func.func @transform_4(%arg0: i32) -> (i32, i32) {
    %c0_i32 = arith.constant 0 : i32
    %c0_i32_0 = arith.constant 0 : i32
    %c0_i32_1 = arith.constant 0 : i32
    return %c0_i32, %c0_i32_0 : i32, i32
  }
  func.func @transform_5(%arg0: i32) -> (i32, i32) {
    %c0_i32 = arith.constant 0 : i32
    %c0_i32_0 = arith.constant 0 : i32
    %c0_i32_1 = arith.constant 0 : i32
    return %c0_i32, %c0_i32_0 : i32, i32
  }
  func.func @transform_6(%arg0: i32) -> (i32, i32) {
    %c0_i32 = arith.constant 0 : i32
    %c0_i32_0 = arith.constant 0 : i32
    %c0_i32_1 = arith.constant 0 : i32
    return %c0_i32, %c0_i32_0 : i32, i32
  }
  func.func @transform_7(%arg0: i32) -> (i32, i32) {
    %c0_i32 = arith.constant 0 : i32
    %c0_i32_0 = arith.constant 0 : i32
    return %arg0, %c0_i32 : i32, i32
  }
}

</mosaic_0001>

<bundles_post_ra>
// kernel: neural_network_forward.1
= control target key start
LH: loop header
LB: loop body
LE: loop exit
PB: predicated region body
PF: predicated region fallthrough
CT: control target
= control target key end

     0   :  { %12 = vsyncpa [#allocation3], 0  ;;  %s7460_s0 = inlined_call_operand.vmem [shape: bf16[128,784], index: 0, kind: input, shape index: {}]   ;;  %s7461_s1 = inlined_call_operand.hbm [shape: bf16[784,512], index: 1, kind: input, shape index: {}]   ;;  %s7462_s2 = inlined_call_operand.vmem [shape: f32[1,512], index: 2, kind: input, shape index: {}]   ;;  %s7463_s3 = inlined_call_operand.vmem [shape: bf16[512,512], index: 3, kind: input, shape index: {}]   ;;  %s7464_s4 = inlined_call_operand.vmem [shape: f32[1,512], index: 4, kind: input, shape index: {}]   ;;  %s7465_s5 = inlined_call_operand.hbm [shape: bf16[512,128], index: 5, kind: input, shape index: {}]   ;;  %s7466_s6 = inlined_call_operand.vmem [shape: f32[1,128], index: 6, kind: input, shape index: {}]   ;;  %s7467_s7 = inlined_call_operand.vmem [shape: bf16[128,128], index: 7, kind: output, shape index: {}]  }
   0x1   :  { %13 = vsyncpa [#allocation5], 0  ;;  %s5844_s24 = smov [#allocation2]  }
   0x2   :  { %s21_s25 = sshll.u32 %s5844_s24, 4  ;;  %s22_s25 = int_to_ptr.vmem [resolvable:$true] %s21_s25 }
   0x3   :  { %s5808_s26 = scalar_lea.vmem %s22_s25, 25088  ;;  %p5813_p1 = scmp.lt.s32.totalorder %s22_s25, %s22_s25 }
   0x4   :  { %p5809_p0 = scmp.ne.s32.totalorder %s22_s25, %s5808_s26  ;;  %p5814_p2 = scmp.lt.s32.totalorder %s5808_s26, %s5808_s26 }
   0x6   :  { %p5815_p3 = por %p5814_p2, %p5813_p1 }
   0x8   :  { %p5816_p4 = pnand %p5815_p3, %p5809_p0 }
   0xa   :  { %5819 = shalt.err (!%p5816_p4)
}
   0xb   :  { %s5845_s27 = smov 256   ;;  %s5846_s28 = smov 16  }
   0xc   :  { %27 = dma.hbm_to_vmem [thread:$0]  %s7461_s1, 25088, %s22_s25, [#allocation3], %s5845_s27, %s5845_s27, %s5846_s28  }
   0xd   :  { %s5847_s8 = smov [#allocation4]  }
   0xe   :  { %s39_s9 = sshll.u32 %s5847_s8, 4  ;;  %s40_s9 = int_to_ptr.vmem [resolvable:$true] %s39_s9 }
   0xf   :  { %s5828_s10 = scalar_lea.vmem %s40_s9, 4096  ;;  %p5833_p6 = scmp.lt.s32.totalorder %s40_s9, %s40_s9 }
  0x10   :  { %p5829_p5 = scmp.ne.s32.totalorder %s40_s9, %s5828_s10  ;;  %p5834_p7 = scmp.lt.s32.totalorder %s5828_s10, %s5828_s10 }
  0x12   :  { %p5835_p8 = por %p5834_p7, %p5833_p6 }
  0x14   :  { %p5836_p9 = pnand %p5835_p8, %p5829_p5 }
  0x16   :  { %5839 = shalt.err (!%p5836_p9)
}
  0x17   :  { %s5848_s11 = smov 64   ;;  %s5849_s12 = smov 4  }
  0x18   :  { %45 = dma.hbm_to_vmem [thread:$0]  %s7465_s5, 4096, %s40_s9, [#allocation5], %s5848_s11, %s5848_s11, %s5849_s12  }
  0x19   :  { %5840 = dma.done.wait [#allocation3], 25088  }
  0x1a   :  { %5841 = vsyncadd [#allocation3], 4294942208 }
  0x1b   :  { %5842 = dma.done.wait [#allocation5], 4096  }
  0x1c   :  { %5843 = vsyncadd [#allocation5], 4294963200  ;;  %v5146_v0 = vld [vmem:[#allocation2 + $0xe4] ss:$16 sps:$4 sm:$0xff]   ;;  %v5150_v2 = vld [vmem:[#allocation2 + $0xe0] ss:$16 sps:$4 sm:$0xff]  }
  0x1d   :  { %v5148_v1 = vld [vmem:[#allocation2 + $0x2e4] ss:$16 sps:$4 sm:$0xff]   ;;  %1622 = vmatprep.subr.bf16.mxu0 %v5146_v0  ;;  %v5151_v3 = vld [vmem:[#allocation2 + $0x2e0] ss:$16 sps:$4 sm:$0xff]   ;;  %v5247_v51 = vld [vmem:[%s7460_s0 + $0xc] ss:$28 sps:$4 sm:$0xff]  }
  0x1e   :  { %1735 = vmatprep.subr.bf16.mxu1 %v5148_v1  ;;  %v5152_v4 = vld [vmem:[#allocation2 + $0xc4] ss:$16 sps:$4 sm:$0xff]   ;;  %1623 = vmatpush1.bf16.msra.mxu0 %v5150_v2  ;;  %v5156_v6 = vld [vmem:[#allocation2 + $0xc0] ss:$16 sps:$4 sm:$0xff]   ;;  %vm1597_vm0 = vcmask 130048  }
  0x1f   :  { %1736 = vmatpush1.bf16.msra.mxu1 %v5151_v3  ;;  %v5154_v5 = vld [vmem:[#allocation2 + $0x2c4] ss:$16 sps:$4 sm:$0xff]   ;;  %1624 = vmatprep.subr.bf16.mxu0 %v5152_v4  ;;  %v5157_v7 = vld [vmem:[#allocation2 + $0x2c0] ss:$16 sps:$4 sm:$0xff]  }
  0x20   :  { %1737 = vmatprep.subr.bf16.mxu1 %v5154_v5  ;;  %v5158_v8 = vld [vmem:[#allocation2 + $0xa4] ss:$16 sps:$4 sm:$0xff]   ;;  %v5162_v10 = vld [vmem:[#allocation2 + $0xa0] ss:$16 sps:$4 sm:$0xff]   ;;  %1767 = vmatprep.mubr.bf16.mxu1 %v5247_v51  ;;  %v5319_v51 = vld [vmem:[%s7460_s0 + $0x15c] ss:$28 sps:$4 sm:$0xff]  }
  0x21   :  { %v5160_v9 = vld [vmem:[#allocation2 + $0x2a4] ss:$16 sps:$4 sm:$0xff]   ;;  %v5163_v11 = vld [vmem:[#allocation2 + $0x2a0] ss:$16 sps:$4 sm:$0xff]  }
  0x22   :  { %1625 = vmatpush1.bf16.msra.mxu0 %v5156_v6  ;;  %v5164_v12 = vld [vmem:[#allocation2 + $0x84] ss:$16 sps:$4 sm:$0xff]   ;;  %v5168_v14 = vld [vmem:[#allocation2 + $0x80] ss:$16 sps:$4 sm:$0xff]  }
  0x23   :  { %1738 = vmatpush1.bf16.msra.mxu1 %v5157_v7  ;;  %1626 = vmatprep.subr.bf16.mxu0 %v5158_v8  ;;  %v5166_v13 = vld [vmem:[#allocation2 + $0x284] ss:$16 sps:$4 sm:$0xff]   ;;  %v5169_v15 = vld [vmem:[#allocation2 + $0x280] ss:$16 sps:$4 sm:$0xff]  }
  0x24   :  { %1739 = vmatprep.subr.bf16.mxu1 %v5160_v9  ;;  %v5170_v16 = vld [vmem:[#allocation2 + $0x64] ss:$16 sps:$4 sm:$0xff]   ;;  %v5174_v18 = vld [vmem:[#allocation2 + $0x60] ss:$16 sps:$4 sm:$0xff]   ;;  %v5257_v9 = vld [vmem:[%s7460_s0 + $0x3c] ss:$28 sps:$4 sm:$0xff]  }
  0x25   :  { %v5172_v17 = vld [vmem:[#allocation2 + $0x264] ss:$16 sps:$4 sm:$0xff]   ;;  %v5175_v19 = vld [vmem:[#allocation2 + $0x260] ss:$16 sps:$4 sm:$0xff]  }
  0x26   :  { %1627 = vmatpush1.bf16.msra.mxu0 %v5162_v10  ;;  %v5176_v20 = vld [vmem:[#allocation2 + $0x44] ss:$16 sps:$4 sm:$0xff]   ;;  %v5180_v22 = vld [vmem:[#allocation2 + $0x40] ss:$16 sps:$4 sm:$0xff]  }
  0x27   :  { %1740 = vmatpush1.bf16.msra.mxu1 %v5163_v11  ;;  %1628 = vmatprep.subr.bf16.mxu0 %v5164_v12  ;;  %v5178_v21 = vld [vmem:[#allocation2 + $0x244] ss:$16 sps:$4 sm:$0xff]   ;;  %v5181_v23 = vld [vmem:[#allocation2 + $0x240] ss:$16 sps:$4 sm:$0xff]  }
  0x28   :  { %1741 = vmatprep.subr.bf16.mxu1 %v5166_v13  ;;  %v5182_v24 = vld [vmem:[#allocation2 + $0x24] ss:$16 sps:$4 sm:$0xff]   ;;  %v5186_v26 = vld [vmem:[#allocation2 + $0x20] ss:$16 sps:$4 sm:$0xff]  }
  0x29   :  { %v5184_v25 = vld [vmem:[#allocation2 + $0x224] ss:$16 sps:$4 sm:$0xff]   ;;  %v5187_v27 = vld [vmem:[#allocation2 + $0x220] ss:$16 sps:$4 sm:$0xff]  }
  0x2a   :  { %1629 = vmatpush1.bf16.msra.mxu0 %v5168_v14  ;;  %v5188_v28 = vld [vmem:[#allocation2 + $0x4] ss:$16 sps:$4 sm:$0xff]   ;;  %v5192_v30 = vld [vmem:[#allocation2] ss:$16 sps:$4 sm:$0xff]  }
  0x2b   :  { %1742 = vmatpush1.bf16.msra.mxu1 %v5169_v15  ;;  %1630 = vmatprep.subr.bf16.mxu0 %v5170_v16  ;;  %v5190_v29 = vld [vmem:[#allocation2 + $0x204] ss:$16 sps:$4 sm:$0xff]   ;;  %v5193_v31 = vld [vmem:[#allocation2 + $0x200] ss:$16 sps:$4 sm:$0xff]  }
  0x2c   :  { %1743 = vmatprep.subr.bf16.mxu1 %v5172_v17  ;;  %v5194_v32 = vld [vmem:[#allocation2 + $0x1e4] ss:$16 sps:$4 sm:$0xff]   ;;  %v5198_v34 = vld [vmem:[#allocation2 + $0x1e0] ss:$16 sps:$4 sm:$0xff]  }
  0x2d   :  { %v5196_v33 = vld [vmem:[#allocation2 + $0x3e4] ss:$16 sps:$4 sm:$0xff]   ;;  %v5199_v35 = vld [vmem:[#allocation2 + $0x3e0] ss:$16 sps:$4 sm:$0xff]  }
  0x2e   :  { %1631 = vmatpush1.bf16.msra.mxu0 %v5174_v18  ;;  %v5200_v36 = vld [vmem:[#allocation2 + $0x1c4] ss:$16 sps:$4 sm:$0xff]   ;;  %v5204_v38 = vld [vmem:[#allocation2 + $0x1c0] ss:$16 sps:$4 sm:$0xff]   ;;  %v5271_v18 = vld [vmem:[%s7460_s0 + $0x7c] ss:$28 sps:$4 sm:$0xff]  }
  0x2f   :  { %1744 = vmatpush1.bf16.msra.mxu1 %v5175_v19  ;;  %1632 = vmatprep.subr.bf16.mxu0 %v5176_v20  ;;  %v5202_v37 = vld [vmem:[#allocation2 + $0x3c4] ss:$16 sps:$4 sm:$0xff]   ;;  %v5205_v39 = vld [vmem:[#allocation2 + $0x3c0] ss:$16 sps:$4 sm:$0xff]  }
  0x30   :  { %1745 = vmatprep.subr.bf16.mxu1 %v5178_v21  ;;  %v5206_v40 = vld [vmem:[#allocation2 + $0x1a4] ss:$16 sps:$4 sm:$0xff]   ;;  %v5210_v42 = vld [vmem:[#allocation2 + $0x1a0] ss:$16 sps:$4 sm:$0xff]  }
  0x31   :  { %v5208_v41 = vld [vmem:[#allocation2 + $0x3a4] ss:$16 sps:$4 sm:$0xff]   ;;  %v5211_v43 = vld [vmem:[#allocation2 + $0x3a0] ss:$16 sps:$4 sm:$0xff]  }
  0x32   :  { %1633 = vmatpush1.bf16.msra.mxu0 %v5180_v22  ;;  %v5212_v44 = vld [vmem:[#allocation2 + $0x184] ss:$16 sps:$4 sm:$0xff]   ;;  %v5216_v46 = vld [vmem:[#allocation2 + $0x180] ss:$16 sps:$4 sm:$0xff]  }
  0x33   :  { %1746 = vmatpush1.bf16.msra.mxu1 %v5181_v23  ;;  %1634 = vmatprep.subr.bf16.mxu0 %v5182_v24  ;;  %v5214_v45 = vld [vmem:[#allocation2 + $0x384] ss:$16 sps:$4 sm:$0xff]   ;;  %v5217_v47 = vld [vmem:[#allocation2 + $0x380] ss:$16 sps:$4 sm:$0xff]  }
  0x34   :  { %1747 = vmatprep.subr.bf16.mxu1 %v5184_v25  ;;  %v5218_v48 = vld [vmem:[#allocation2 + $0x164] ss:$16 sps:$4 sm:$0xff]   ;;  %v5222_v52 = vld [vmem:[#allocation2 + $0x160] ss:$16 sps:$4 sm:$0xff]   ;;  %v5281_v25 = vld [vmem:[%s7460_s0 + $0xac] ss:$28 sps:$4 sm:$0xff]  }
  0x35   :  { %v5244_v49 = vld [vmem:[%s7460_s0 + $0x4] ss:$28 sps:$4 sm:$0xff]   ;;  %v5261_v13 = vld [vmem:[%s7460_s0 + $0x38] ss:$28 sps:$4 sm:$0xff]   ;;  %v5273_v21 = vld [vmem:[%s7460_s0 + $0x70] ss:$28 sps:$4 sm:$0xff]  }
  0x36   :  { %1635 = vmatpush1.bf16.msra.mxu0 %v5186_v26  ;;  %v5220_v50 = vld [vmem:[#allocation2 + $0x364] ss:$16 sps:$4 sm:$0xff]   ;;  %1654 = vmatprep.mubr.bf16.mxu0 %v5244_v49  ;;  %v5223_v53 = vld [vmem:[#allocation2 + $0x360] ss:$16 sps:$4 sm:$0xff]  }
  0x37   :  { %1748 = vmatpush1.bf16.msra.mxu1 %v5187_v27  ;;  %1636 = vmatprep.subr.bf16.mxu0 %v5188_v28  ;;  %v5224_v54 = vld [vmem:[#allocation2 + $0x144] ss:$16 sps:$4 sm:$0xff]   ;;  %v5228_v56 = vld [vmem:[#allocation2 + $0x140] ss:$16 sps:$4 sm:$0xff]  }
  0x38   :  { %1749 = vmatprep.subr.bf16.mxu1 %v5190_v29  ;;  %v5226_v55 = vld [vmem:[#allocation2 + $0x344] ss:$16 sps:$4 sm:$0xff]   ;;  %v5229_v57 = vld [vmem:[#allocation2 + $0x340] ss:$16 sps:$4 sm:$0xff]  }
  0x39   :  { %v5230_v58 = vld [vmem:[#allocation2 + $0x124] ss:$16 sps:$4 sm:$0xff]   ;;  %v5234_v60 = vld [vmem:[#allocation2 + $0x120] ss:$16 sps:$4 sm:$0xff]  }
  0x3a   :  { %1637 = vmatpush1.bf16.msra.mxu0 %v5192_v30  ;;  %v5232_v59 = vld [vmem:[#allocation2 + $0x324] ss:$16 sps:$4 sm:$0xff]   ;;  %v5235_v61 = vld [vmem:[#allocation2 + $0x320] ss:$16 sps:$4 sm:$0xff]  }
  0x3b   :  { %1750 = vmatpush1.bf16.msra.mxu1 %v5193_v31  ;;  %1638 = vmatprep.subr.bf16.mxu0 %v5194_v32  ;;  %v5236_v62 = vld [vmem:[#allocation2 + $0x104] ss:$16 sps:$4 sm:$0xff]   ;;  %v5240_v0 = vld [vmem:[#allocation2 + $0x100] ss:$16 sps:$4 sm:$0xff]  }
  0x3c   :  { %1751 = vmatprep.subr.bf16.mxu1 %v5196_v33  ;;  %v5238_v63 = vld [vmem:[#allocation2 + $0x304] ss:$16 sps:$4 sm:$0xff]   ;;  %v5241_v1 = vld [vmem:[#allocation2 + $0x300] ss:$16 sps:$4 sm:$0xff]  }
  0x3d   :  { %v5250_v2 = vld [vmem:[#allocation2 + $0x4e4] ss:$16 sps:$4 sm:$0xff]   ;;  %v5242_v4 = vld [vmem:[%s7460_s0] ss:$28 sps:$4 sm:$0xff]   ;;  %v5286_v30 = vld [vmem:[%s7460_s0 + $0xb0] ss:$28 sps:$4 sm:$0xff]  }
  0x3e   :  { %1639 = vmatpush2.bf16.msra.mxu0 %v5198_v34  ;;  %v5253_v3 = vld [vmem:[#allocation2 + $0x604] ss:$16 sps:$4 sm:$0xff]   ;;  %v5248_v6 = vld [vmem:[#allocation2 + $0x4e0] ss:$16 sps:$4 sm:$0xff]   ;;  %v5295_v34 = vld [vmem:[%s7460_s0 + $0xec] ss:$28 sps:$4 sm:$0xff]  }
  0x3f   :  { %1752 = vmatpush2.bf16.msra.mxu1 %v5199_v35  ;;  %1640 = vmatprep.subr.bf16.mxu0 %v5200_v36  ;;  %v5245_v5 = vld [vmem:[%s7460_s0 + $0x8] ss:$28 sps:$4 sm:$0xff]   ;;  %v5251_v7 = vld [vmem:[#allocation2 + $0x600] ss:$16 sps:$4 sm:$0xff]   ;;  %v5274_v22 = vld [vmem:[%s7460_s0 + $0x78] ss:$28 sps:$4 sm:$0xff]  }
  0x40   :  { %1753 = vmatprep.subr.bf16.mxu1 %v5202_v37  ;;  %v5256_v8 = vld [vmem:[#allocation2 + $0x4c4] ss:$16 sps:$4 sm:$0xff]   ;;  %v5254_v11 = vld [vmem:[#allocation2 + $0x4c0] ss:$16 sps:$4 sm:$0xff]   ;;  %v5350_v35 = vld [vmem:[#allocation2 + $0x2ec] ss:$16 sps:$4 sm:$0xff]  }
  0x41   :  { %v5259_v10 = vld [vmem:[%s7460_s0 + $0x44] ss:$28 sps:$4 sm:$0xff]   ;;  %v5269_v17 = vld [vmem:[%s7460_s0 + $0x74] ss:$28 sps:$4 sm:$0xff]  }
  0x42   :  { %1641 = vmatpush2.bf16.msra.mxu0 %v5204_v38  ;;  %v5265_v12 = vld [vmem:[#allocation2 + $0x4a4] ss:$16 sps:$4 sm:$0xff]   ;;  %v5262_v14 = vld [vmem:[%s7460_s0 + $0x40] ss:$28 sps:$4 sm:$0xff]  }
  0x43   :  { %1754 = vmatpush2.bf16.msra.mxu1 %v5205_v39  ;;  %1642 = vmatprep.subr.bf16.mxu0 %v5206_v40  ;;  %v5263_v15 = vld [vmem:[#allocation2 + $0x4a0] ss:$16 sps:$4 sm:$0xff]   ;;  %v5268_v16 = vld [vmem:[#allocation2 + $0x484] ss:$16 sps:$4 sm:$0xff]  }
  0x44   :  { %1755 = vmatprep.subr.bf16.mxu1 %v5208_v41  ;;  %v5266_v19 = vld [vmem:[#allocation2 + $0x480] ss:$16 sps:$4 sm:$0xff]   ;;  %v5277_v20 = vld [vmem:[#allocation2 + $0x464] ss:$16 sps:$4 sm:$0xff]   ;;  %v5305_v41 = vld [vmem:[%s7460_s0 + $0x11c] ss:$28 sps:$4 sm:$0xff]  }
  0x45   :  { %v5275_v23 = vld [vmem:[#allocation2 + $0x460] ss:$16 sps:$4 sm:$0xff]   ;;  %v5280_v24 = vld [vmem:[#allocation2 + $0x444] ss:$16 sps:$4 sm:$0xff]  }
  0x46   :  { %1643 = vmatpush2.bf16.msra.mxu0 %v5210_v42  ;;  %v5283_v26 = vld [vmem:[%s7460_s0 + $0xb4] ss:$28 sps:$4 sm:$0xff]   ;;  %v5285_v29 = vld [vmem:[%s7460_s0 + $0xa8] ss:$28 sps:$4 sm:$0xff]   ;;  %v5297_v38 = vld [vmem:[%s7460_s0 + $0xe0] ss:$28 sps:$4 sm:$0xff]  }
  0x47   :  { %1756 = vmatpush2.bf16.msra.mxu1 %v5211_v43  ;;  %1644 = vmatprep.subr.bf16.mxu0 %v5212_v44  ;;  %v5278_v27 = vld [vmem:[#allocation2 + $0x440] ss:$16 sps:$4 sm:$0xff]   ;;  %v5289_v28 = vld [vmem:[#allocation2 + $0x424] ss:$16 sps:$4 sm:$0xff]  }
  0x48   :  { %1757 = vmatprep.subr.bf16.mxu1 %v5214_v45  ;;  %v5287_v31 = vld [vmem:[#allocation2 + $0x420] ss:$16 sps:$4 sm:$0xff]   ;;  %v5292_v32 = vld [vmem:[#allocation2 + $0x404] ss:$16 sps:$4 sm:$0xff]  }
  0x49   :  { %v5293_v33 = vld [vmem:[%s7460_s0 + $0xe4] ss:$28 sps:$4 sm:$0xff]   ;;  %v5309_v45 = vld [vmem:[%s7460_s0 + $0x118] ss:$28 sps:$4 sm:$0xff]  }
  0x4a   :  { %1645 = vmatpush2.bf16.msra.mxu0 %v5216_v46  ;;  %v5290_v36 = vld [vmem:[#allocation2 + $0x400] ss:$16 sps:$4 sm:$0xff]   ;;  %v5301_v37 = vld [vmem:[#allocation2 + $0x5e4] ss:$16 sps:$4 sm:$0xff]  }
  0x4b   :  { %1758 = vmatpush2.bf16.msra.mxu1 %v5217_v47  ;;  %1646 = vmatprep.subr.bf16.mxu0 %v5218_v48  ;;  %v5298_v39 = vld [vmem:[%s7460_s0 + $0xe8] ss:$28 sps:$4 sm:$0xff]   ;;  %v5299_v40 = vld [vmem:[#allocation2 + $0x5e0] ss:$16 sps:$4 sm:$0xff]  }
  0x4c   :  { %1759 = vmatprep.subr.bf16.mxu1 %v5220_v50  ;;  %v5304_v42 = vld [vmem:[#allocation2 + $0x5c4] ss:$16 sps:$4 sm:$0xff]   ;;  %v5302_v44 = vld [vmem:[#allocation2 + $0x5c0] ss:$16 sps:$4 sm:$0xff]  }
  0x4d   :  { %v5307_v43 = vld [vmem:[%s7460_s0 + $0x124] ss:$28 sps:$4 sm:$0xff]   ;;  %v5317_v49 = vld [vmem:[%s7460_s0 + $0x154] ss:$28 sps:$4 sm:$0xff]  }
  0x4e   :  { %1647 = vmatpush2.bf16.msra.mxu0 %v5222_v52  ;;  %v5313_v46 = vld [vmem:[#allocation2 + $0x5a4] ss:$16 sps:$4 sm:$0xff]   ;;  %v5310_v47 = vld [vmem:[%s7460_s0 + $0x120] ss:$28 sps:$4 sm:$0xff]  }
  0x4f   :  { %1760 = vmatpush2.bf16.msra.mxu1 %v5223_v53  ;;  %1648 = vmatprep.subr.bf16.mxu0 %v5224_v54  ;;  %v5311_v48 = vld [vmem:[#allocation2 + $0x5a0] ss:$16 sps:$4 sm:$0xff]   ;;  %v5316_v50 = vld [vmem:[#allocation2 + $0x584] ss:$16 sps:$4 sm:$0xff]  }
  0x50   :  { %1761 = vmatprep.subr.bf16.mxu1 %v5226_v55  ;;  %v5314_v52 = vld [vmem:[#allocation2 + $0x580] ss:$16 sps:$4 sm:$0xff]   ;;  %v5325_v54 = vld [vmem:[#allocation2 + $0x564] ss:$16 sps:$4 sm:$0xff]  }
  0x51   :  { %v5321_v53 = vld [vmem:[%s7460_s0 + $0x150] ss:$28 sps:$4 sm:$0xff]   ;;  %v5322_v55 = vld [vmem:[%s7460_s0 + $0x158] ss:$28 sps:$4 sm:$0xff]  }
  0x52   :  { %1649 = vmatpush2.bf16.msra.mxu0 %v5228_v56  ;;  %v5323_v56 = vld [vmem:[#allocation2 + $0x560] ss:$16 sps:$4 sm:$0xff]  }
  0x53   :  { %1762 = vmatpush2.bf16.msra.mxu1 %v5229_v57  ;;  %1650 = vmatprep.subr.bf16.mxu0 %v5230_v58  ;;  %v5328_v57 = vld [vmem:[#allocation2 + $0x544] ss:$16 sps:$4 sm:$0xff]   ;;  %v5329_v58 = vld [vmem:[%s7460_s0 + $0x18c] ss:$28 sps:$4 sm:$0xff]  }
  0x54   :  { %1763 = vmatprep.subr.bf16.mxu1 %v5232_v59  ;;  %v5331_v59 = vld [vmem:[%s7460_s0 + $0x194] ss:$28 sps:$4 sm:$0xff]  }
  0x56   :  { %1651 = vmatpush2.bf16.msra.mxu0 %v5234_v60  ;;  %v5326_v60 = vld [vmem:[#allocation2 + $0x540] ss:$16 sps:$4 sm:$0xff]  }
  0x57   :  { %1764 = vmatpush2.bf16.msra.mxu1 %v5235_v61  ;;  %1652 = vmatprep.subr.bf16.mxu0 %v5236_v62  ;;  %v5337_v61 = vld [vmem:[#allocation2 + $0x524] ss:$16 sps:$4 sm:$0xff]  }
  0x58   :  { %1765 = vmatprep.subr.bf16.mxu1 %v5238_v63  ;;  %v5333_v62 = vld [vmem:[%s7460_s0 + $0x188] ss:$28 sps:$4 sm:$0xff]   ;;  %v5334_v63 = vld [vmem:[%s7460_s0 + $0x190] ss:$28 sps:$4 sm:$0xff]  }
  0x5a   :  { %1653 = vmatpush2.bf16.msra.mxu0 %v5240_v0  ;;  %v5335_v0 = vld [vmem:[#allocation2 + $0x520] ss:$16 sps:$4 sm:$0xff]  }
  0x5b   :  { %1766 = vmatpush2.bf16.msra.mxu1 %v5241_v1  ;;  %1848 = vmatprep.subr.bf16.mxu0 %v5250_v2  ;;  %v5343_v1 = vld [vmem:[%s7460_s0 + $0x14] ss:$28 sps:$4 sm:$0xff]  }
  0x5c   :  { %1975 = vmatprep.subr.bf16.mxu1 %v5253_v3  ;;  %v5340_v2 = vld [vmem:[#allocation2 + $0x504] ss:$16 sps:$4 sm:$0xff]   ;;  %v5338_v3 = vld [vmem:[#allocation2 + $0x500] ss:$16 sps:$4 sm:$0xff]  }
  0x5d   :  { %1655 = vmatmul.mubr.bf16.vlgmr.msra.gmra.mxu0 %v5242_v4  ;;  %v5850_v4 = vmov 0  }
  0x5e   :  { %1768 = vmatmul.mubr.bf16.vlgmr.msra.gmra.mxu1 %v5245_v5  ;;  %1849 = vmatpush1.bf16.msra.mxu0 %v5248_v6  ;;  %v5347_v5 = vld [vmem:[#allocation2 + $0xec] ss:$16 sps:$4 sm:$0xff]  }
  0x5f   :  { %1976 = vmatpush1.bf16.msra.mxu1 %v5251_v7  ;;  %1850 = vmatprep.subr.bf16.mxu0 %v5256_v8  ;;  %v5341_v6 = vld [vmem:[%s7460_s0 + $0x10] ss:$28 sps:$4 sm:$0xff]   ;;  %v5344_v7 = vld [vmem:[%s7460_s0 + $0x18] ss:$28 sps:$4 sm:$0xff]  }
  0x60   :  { %1664 = vmatprep.mubr.bf16.mxu0 %v5257_v9  ;;  %1777 = vmatprep.mubr.bf16.mxu1 %v5259_v10  ;;  %v5345_v8 = vld [vmem:[#allocation2 + $0xe8] ss:$16 sps:$4 sm:$0xff]   ;;  %v5353_v10 = vld [vmem:[#allocation2 + $0xcc] ss:$16 sps:$4 sm:$0xff]  }
  0x61   :  { %2187 = vmatprep.subr.bf16.mxu1 %v5350_v35  ;;  %v5348_v9 = vld [vmem:[#allocation2 + $0x2e8] ss:$16 sps:$4 sm:$0xff]  }
  0x62   :  { %1851 = vmatpush1.bf16.msra.mxu0 %v5254_v11  ;;  %v5356_v11 = vld [vmem:[#allocation2 + $0x2cc] ss:$16 sps:$4 sm:$0xff]   ;;  %v5383_v35 = vld [vmem:[#allocation2 + $0x48] ss:$16 sps:$4 sm:$0xff]  }
  0x63   :  { %1852 = vmatprep.subr.bf16.mxu0 %v5265_v12  ;;  %v5357_v12 = vld [vmem:[%s7460_s0 + $0x4c] ss:$28 sps:$4 sm:$0xff]  }
  0x65   :  { %1665 = vmatmul.mubr.bf16.gmra.mxu0 %v5261_v13  ;;  %v5351_v13 = vld [vmem:[#allocation2 + $0xc8] ss:$16 sps:$4 sm:$0xff]  }
  0x66   :  { %1778 = vmatmul.mubr.bf16.gmra.mxu1 %v5262_v14  ;;  %1853 = vmatpush1.bf16.msra.mxu0 %v5263_v15  ;;  %v5354_v14 = vld [vmem:[#allocation2 + $0x2c8] ss:$16 sps:$4 sm:$0xff]  }
  0x67   :  { %1674 = vmatprep.mubr.bf16.mxu0 %v5269_v17  ;;  %1854 = vmatprep.subr.bf16.mxu0 %v5268_v16  ;;  %v5359_v15 = vld [vmem:[%s7460_s0 + $0x48] ss:$28 sps:$4 sm:$0xff]   ;;  %v5363_v16 = vld [vmem:[#allocation2 + $0xac] ss:$16 sps:$4 sm:$0xff]  }
  0x68   :  { %1787 = vmatprep.mubr.bf16.mxu1 %v5271_v18  ;;  %v5366_v17 = vld [vmem:[#allocation2 + $0x2ac] ss:$16 sps:$4 sm:$0xff]  }
  0x69   :  { %v5360_v18 = vld [vmem:[%s7460_s0 + $0x50] ss:$28 sps:$4 sm:$0xff]  }
  0x6a   :  { %1855 = vmatpush1.bf16.msra.mxu0 %v5266_v19  ;;  %v5361_v19 = vld [vmem:[#allocation2 + $0xa8] ss:$16 sps:$4 sm:$0xff]  }
  0x6b   :  { %1856 = vmatprep.subr.bf16.mxu0 %v5277_v20  ;;  %v5364_v20 = vld [vmem:[#allocation2 + $0x2a8] ss:$16 sps:$4 sm:$0xff]  }
  0x6d   :  { %1675 = vmatmul.mubr.bf16.gmra.mxu0 %v5273_v21  ;;  %v5369_v21 = vld [vmem:[#allocation2 + $0x8c] ss:$16 sps:$4 sm:$0xff]  }
  0x6e   :  { %1788 = vmatmul.mubr.bf16.gmra.mxu1 %v5274_v22  ;;  %1857 = vmatpush1.bf16.msra.mxu0 %v5275_v23  ;;  %v5372_v22 = vld [vmem:[#allocation2 + $0x28c] ss:$16 sps:$4 sm:$0xff]   ;;  %v5373_v23 = vld [vmem:[%s7460_s0 + $0x84] ss:$28 sps:$4 sm:$0xff]  }
  0x6f   :  { %1684 = vmatprep.mubr.bf16.mxu0 %v5281_v25  ;;  %1858 = vmatprep.subr.bf16.mxu0 %v5280_v24  ;;  %v5367_v24 = vld [vmem:[#allocation2 + $0x88] ss:$16 sps:$4 sm:$0xff]  }
  0x70   :  { %1797 = vmatprep.mubr.bf16.mxu1 %v5283_v26  ;;  %v5370_v25 = vld [vmem:[#allocation2 + $0x288] ss:$16 sps:$4 sm:$0xff]   ;;  %v5375_v26 = vld [vmem:[%s7460_s0 + $0x80] ss:$28 sps:$4 sm:$0xff]  }
  0x72   :  { %1859 = vmatpush1.bf16.msra.mxu0 %v5278_v27  ;;  %v5379_v27 = vld [vmem:[#allocation2 + $0x6c] ss:$16 sps:$4 sm:$0xff]  }
  0x73   :  { %1860 = vmatprep.subr.bf16.mxu0 %v5289_v28  ;;  %v5382_v28 = vld [vmem:[#allocation2 + $0x26c] ss:$16 sps:$4 sm:$0xff]  }
  0x75   :  { %1685 = vmatmul.mubr.bf16.gmra.mxu0 %v5285_v29  ;;  %v5376_v29 = vld [vmem:[%s7460_s0 + $0x88] ss:$28 sps:$4 sm:$0xff]  }
  0x76   :  { %1798 = vmatmul.mubr.bf16.gmra.mxu1 %v5286_v30  ;;  %1861 = vmatpush1.bf16.msra.mxu0 %v5287_v31  ;;  %v5377_v30 = vld [vmem:[#allocation2 + $0x68] ss:$16 sps:$4 sm:$0xff]  }
  0x77   :  { %1694 = vmatprep.mubr.bf16.mxu0 %v5293_v33  ;;  %1862 = vmatprep.subr.bf16.mxu0 %v5292_v32  ;;  %v5380_v31 = vld [vmem:[#allocation2 + $0x268] ss:$16 sps:$4 sm:$0xff]   ;;  %v5385_v32 = vld [vmem:[#allocation2 + $0x4c] ss:$16 sps:$4 sm:$0xff]  }
  0x78   :  { %1807 = vmatprep.mubr.bf16.mxu1 %v5295_v34  ;;  %v5388_v33 = vld [vmem:[#allocation2 + $0x24c] ss:$16 sps:$4 sm:$0xff]  }
  0x79   :  { %v5389_v34 = vld [vmem:[%s7460_s0 + $0xbc] ss:$28 sps:$4 sm:$0xff]  }
  0x7a   :  { %1863 = vmatpush1.bf16.msra.mxu0 %v5290_v36  ;;  %v5386_v36 = vld [vmem:[#allocation2 + $0x248] ss:$16 sps:$4 sm:$0xff]  }
  0x7b   :  { %1864 = vmatprep.subr.bf16.mxu0 %v5301_v37  ;;  %v5395_v37 = vld [vmem:[#allocation2 + $0x2c] ss:$16 sps:$4 sm:$0xff]  }
  0x7d   :  { %1695 = vmatmul.mubr.bf16.gmra.mxu0 %v5297_v38  ;;  %v5398_v38 = vld [vmem:[#allocation2 + $0x22c] ss:$16 sps:$4 sm:$0xff]  }
  0x7e   :  { %1808 = vmatmul.mubr.bf16.gmra.mxu1 %v5298_v39  ;;  %1865 = vmatpush2.bf16.msra.mxu0 %v5299_v40  ;;  %v5391_v39 = vld [vmem:[%s7460_s0 + $0xb8] ss:$28 sps:$4 sm:$0xff]   ;;  %v5392_v40 = vld [vmem:[%s7460_s0 + $0xc0] ss:$28 sps:$4 sm:$0xff]  }
  0x7f   :  { %1704 = vmatprep.mubr.bf16.mxu0 %v5305_v41  ;;  %1866 = vmatprep.subr.bf16.mxu0 %v5304_v42  ;;  %v5393_v41 = vld [vmem:[#allocation2 + $0x28] ss:$16 sps:$4 sm:$0xff]  }
  0x80   :  { %1817 = vmatprep.mubr.bf16.mxu1 %v5307_v43  ;;  %v5396_v42 = vld [vmem:[#allocation2 + $0x228] ss:$16 sps:$4 sm:$0xff]   ;;  %v5401_v43 = vld [vmem:[#allocation2 + $0xc] ss:$16 sps:$4 sm:$0xff]  }
  0x82   :  { %1867 = vmatpush2.bf16.msra.mxu0 %v5302_v44  ;;  %v5404_v44 = vld [vmem:[#allocation2 + $0x20c] ss:$16 sps:$4 sm:$0xff]  }
  0x83   :  { %1868 = vmatprep.subr.bf16.mxu0 %v5313_v46  ;;  %v5399_v46 = vld [vmem:[#allocation2 + $0x8] ss:$16 sps:$4 sm:$0xff]  }
  0x85   :  { %1705 = vmatmul.mubr.bf16.gmra.mxu0 %v5309_v45  ;;  %v5405_v45 = vld [vmem:[%s7460_s0 + $0xf4] ss:$28 sps:$4 sm:$0xff]  }
  0x86   :  { %1818 = vmatmul.mubr.bf16.gmra.mxu1 %v5310_v47  ;;  %1869 = vmatpush2.bf16.msra.mxu0 %v5311_v48  ;;  %v5402_v47 = vld [vmem:[#allocation2 + $0x208] ss:$16 sps:$4 sm:$0xff]   ;;  %v5411_v48 = vld [vmem:[#allocation2 + $0x1ec] ss:$16 sps:$4 sm:$0xff]  }
  0x87   :  { %1714 = vmatprep.mubr.bf16.mxu0 %v5317_v49  ;;  %1870 = vmatprep.subr.bf16.mxu0 %v5316_v50  ;;  %v5414_v49 = vld [vmem:[#allocation2 + $0x3ec] ss:$16 sps:$4 sm:$0xff]  }
  0x88   :  { %1827 = vmatprep.mubr.bf16.mxu1 %v5319_v51  ;;  %v5407_v50 = vld [vmem:[%s7460_s0 + $0xf0] ss:$28 sps:$4 sm:$0xff]   ;;  %v5408_v51 = vld [vmem:[%s7460_s0 + $0xf8] ss:$28 sps:$4 sm:$0xff]  }
  0x8a   :  { %1871 = vmatpush2.bf16.msra.mxu0 %v5314_v52  ;;  %v5409_v52 = vld [vmem:[#allocation2 + $0x1e8] ss:$16 sps:$4 sm:$0xff]  }
  0x8b   :  { %1872 = vmatprep.subr.bf16.mxu0 %v5325_v54  ;;  %v5417_v54 = vld [vmem:[#allocation2 + $0x1cc] ss:$16 sps:$4 sm:$0xff]  }
  0x8d   :  { %1715 = vmatmul.mubr.bf16.gmra.mxu0 %v5321_v53  ;;  %v5412_v53 = vld [vmem:[#allocation2 + $0x3e8] ss:$16 sps:$4 sm:$0xff]  }
  0x8e   :  { %1828 = vmatmul.mubr.bf16.gmra.mxu1 %v5322_v55  ;;  %1873 = vmatpush2.bf16.msra.mxu0 %v5323_v56  ;;  %v5420_v55 = vld [vmem:[#allocation2 + $0x3cc] ss:$16 sps:$4 sm:$0xff]  }
  0x8f   :  { %1724 = vmatprep.mubr.bf16.mxu0 %v5329_v58  ;;  %1874 = vmatprep.subr.bf16.mxu0 %v5328_v57  ;;  %v5421_v56 = vld [vmem:[%s7460_s0 + $0x12c] ss:$28 sps:$4 sm:$0xff]  }
  0x90   :  { %1837 = vmatprep.mubr.bf16.mxu1 %v5331_v59  ;;  %v5415_v57 = vld [vmem:[#allocation2 + $0x1c8] ss:$16 sps:$4 sm:$0xff]   ;;  %v5427_v59 = vld [vmem:[#allocation2 + $0x1ac] ss:$16 sps:$4 sm:$0xff]  }
  0x91   :  { %v5418_v58 = vld [vmem:[#allocation2 + $0x3c8] ss:$16 sps:$4 sm:$0xff]  }
  0x92   :  { %1875 = vmatpush2.bf16.msra.mxu0 %v5326_v60  ;;  %v5430_v60 = vld [vmem:[#allocation2 + $0x3ac] ss:$16 sps:$4 sm:$0xff]  }
  0x93   :  { %1876 = vmatprep.subr.bf16.mxu0 %v5337_v61  ;;  %v5423_v61 = vld [vmem:[%s7460_s0 + $0x128] ss:$28 sps:$4 sm:$0xff]  }
  0x95   :  { %1725 = vmatmul.mubr.bf16.gmra.mxu0 %v5333_v62  ;;  %v5424_v62 = vld [vmem:[%s7460_s0 + $0x130] ss:$28 sps:$4 sm:$0xff]  }
  0x96   :  { %1838 = vmatmul.mubr.bf16.gmra.mxu1 %v5334_v63  ;;  %1877 = vmatpush2.bf16.msra.mxu0 %v5335_v0  ;;  %v5425_v63 = vld [vmem:[#allocation2 + $0x1a8] ss:$16 sps:$4 sm:$0xff]  }
  0x97   :  { %1880 = vmatprep.mubr.bf16.mxu0 %v5343_v1  ;;  %1878 = vmatprep.subr.bf16.mxu0 %v5340_v2  ;;  %v5428_v0 = vld [vmem:[#allocation2 + $0x3a8] ss:$16 sps:$4 sm:$0xff]   ;;  %v5433_v1 = vld [vmem:[#allocation2 + $0x18c] ss:$16 sps:$4 sm:$0xff]  }
  0x98   :  { %1993 = vmatprep.mubr.bf16.mxu1 %v5850_v4  ;;  %v5436_v2 = vld [vmem:[#allocation2 + $0x38c] ss:$16 sps:$4 sm:$0xff]  }
  0x9a   :  { %1879 = vmatpush2.bf16.msra.mxu0 %v5338_v3  ;;  %v5437_v3 = vld [vmem:[%s7460_s0 + $0x164] ss:$28 sps:$4 sm:$0xff]  }
  0x9b   :  { %2074 = vmatprep.subr.bf16.mxu0 %v5347_v5  ;;  %v5431_v5 = vld [vmem:[#allocation2 + $0x188] ss:$16 sps:$4 sm:$0xff]  }
  0x9d   :  { %1881 = vmatmul.mubr.bf16.vlgmr.msra.gmra.mxu0 %v5341_v6  ;;  %v5434_v6 = vld [vmem:[#allocation2 + $0x388] ss:$16 sps:$4 sm:$0xff]  }
  0x9e   :  { %4755 = vmatmul.mubr.msk.bf16.vlgmr.msra.gmra.mxu1 %vm1597_vm0, %v5344_v7  ;;  %2075 = vmatpush1.bf16.msra.mxu0 %v5345_v8  ;;  %v5443_v7 = vld [vmem:[#allocation2 + $0x16c] ss:$16 sps:$4 sm:$0xff]  }
  0x9f   :  { %2188 = vmatpush1.bf16.msra.mxu1 %v5348_v9  ;;  %2076 = vmatprep.subr.bf16.mxu0 %v5353_v10  ;;  %v5446_v8 = vld [vmem:[#allocation2 + $0x36c] ss:$16 sps:$4 sm:$0xff]   ;;  %v5440_v10 = vld [vmem:[%s7460_s0 + $0x168] ss:$28 sps:$4 sm:$0xff]  }
  0xa0   :  { %2189 = vmatprep.subr.bf16.mxu1 %v5356_v11  ;;  %1890 = vmatprep.mubr.bf16.mxu0 %v5357_v12  ;;  %v5439_v9 = vld [vmem:[%s7460_s0 + $0x160] ss:$28 sps:$4 sm:$0xff]   ;;  %v5441_v11 = vld [vmem:[#allocation2 + $0x168] ss:$16 sps:$4 sm:$0xff]  }
  0xa1   :  { %2003 = vmatprep.mubr.bf16.mxu1 %v5850_v4  ;;  %v5444_v12 = vld [vmem:[#allocation2 + $0x368] ss:$16 sps:$4 sm:$0xff]  }
  0xa2   :  { %2077 = vmatpush1.bf16.msra.mxu0 %v5351_v13  ;;  %v5449_v13 = vld [vmem:[#allocation2 + $0x14c] ss:$16 sps:$4 sm:$0xff]  }
  0xa3   :  { %2190 = vmatpush1.bf16.msra.mxu1 %v5354_v14  ;;  %2078 = vmatprep.subr.bf16.mxu0 %v5363_v16  ;;  %v5452_v14 = vld [vmem:[#allocation2 + $0x34c] ss:$16 sps:$4 sm:$0xff]   ;;  %v5447_v16 = vld [vmem:[#allocation2 + $0x148] ss:$16 sps:$4 sm:$0xff]  }
  0xa4   :  { %2191 = vmatprep.subr.bf16.mxu1 %v5366_v17  ;;  %v5450_v17 = vld [vmem:[#allocation2 + $0x348] ss:$16 sps:$4 sm:$0xff]  }
  0xa5   :  { %1891 = vmatmul.mubr.bf16.gmra.mxu0 %v5359_v15  ;;  %v6072_v15 = vld [vmem:[%s7460_s0 + $0x19c] ss:$28 sps:$4 sm:$0xff]  }
  0xa6   :  { %4756 = vmatmul.mubr.msk.bf16.gmra.mxu1 %vm1597_vm0, %v5360_v18  ;;  %2079 = vmatpush1.bf16.msra.mxu0 %v5361_v19  ;;  %v5455_v18 = vld [vmem:[%s7460_s0 + $0x198] ss:$28 sps:$4 sm:$0xff]   ;;  %v5459_v19 = vld [vmem:[#allocation2 + $0x12c] ss:$16 sps:$4 sm:$0xff]  }
  0xa7   :  { %2192 = vmatpush1.bf16.msra.mxu1 %v5364_v20  ;;  %2080 = vmatprep.subr.bf16.mxu0 %v5369_v21  ;;  %v5462_v20 = vld [vmem:[#allocation2 + $0x32c] ss:$16 sps:$4 sm:$0xff]  }
  0xa8   :  { %2193 = vmatprep.subr.bf16.mxu1 %v5372_v22  ;;  %1900 = vmatprep.mubr.bf16.mxu0 %v5373_v23  ;;  %v5456_v21 = vld [vmem:[%s7460_s0 + $0x1a0] ss:$28 sps:$4 sm:$0xff]   ;;  %v5457_v22 = vld [vmem:[#allocation2 + $0x128] ss:$16 sps:$4 sm:$0xff]  }
  0xa9   :  { %2013 = vmatprep.mubr.bf16.mxu1 %v5850_v4  ;;  %v5460_v23 = vld [vmem:[#allocation2 + $0x328] ss:$16 sps:$4 sm:$0xff]  }
  0xaa   :  { %2081 = vmatpush1.bf16.msra.mxu0 %v5367_v24  ;;  %v5465_v24 = vld [vmem:[#allocation2 + $0x10c] ss:$16 sps:$4 sm:$0xff]  }
  0xab   :  { %2194 = vmatpush1.bf16.msra.mxu1 %v5370_v25  ;;  %2082 = vmatprep.subr.bf16.mxu0 %v5379_v27  ;;  %v5468_v25 = vld [vmem:[#allocation2 + $0x30c] ss:$16 sps:$4 sm:$0xff]   ;;  %v5466_v27 = vld [vmem:[#allocation2 + $0x308] ss:$16 sps:$4 sm:$0xff]  }
  0xac   :  { %2195 = vmatprep.subr.bf16.mxu1 %v5382_v28  ;;  %v5471_v28 = vld [vmem:[#allocation2 + $0x4ec] ss:$16 sps:$4 sm:$0xff]  }
  0xad   :  { %1901 = vmatmul.mubr.bf16.gmra.mxu0 %v5375_v26  ;;  %v5463_v26 = vld [vmem:[#allocation2 + $0x108] ss:$16 sps:$4 sm:$0xff]  }
  0xae   :  { %4757 = vmatmul.mubr.msk.bf16.gmra.mxu1 %vm1597_vm0, %v5376_v29  ;;  %2083 = vmatpush1.bf16.msra.mxu0 %v5377_v30  ;;  %v5474_v29 = vld [vmem:[#allocation2 + $0x60c] ss:$16 sps:$4 sm:$0xff]   ;;  %v5744_v30 = vld [vmem:[%s7460_s0 + $0x4] ss:$28 sps:$4 sm:$0xff]  }
  0xaf   :  { %2196 = vmatpush1.bf16.msra.mxu1 %v5380_v31  ;;  %2084 = vmatprep.subr.bf16.mxu0 %v5385_v32  ;;  %v5745_v31 = vld [vmem:[%s7460_s0 + $0xc] ss:$28 sps:$4 sm:$0xff]  }
  0xb0   :  { %2197 = vmatprep.subr.bf16.mxu1 %v5388_v33  ;;  %1910 = vmatprep.mubr.bf16.mxu0 %v5389_v34  ;;  %v5469_v32 = vld [vmem:[#allocation2 + $0x4e8] ss:$16 sps:$4 sm:$0xff]   ;;  %v5477_v34 = vld [vmem:[#allocation2 + $0x4cc] ss:$16 sps:$4 sm:$0xff]  }
  0xb1   :  { %2023 = vmatprep.mubr.bf16.mxu1 %v5850_v4  ;;  %v5472_v33 = vld [vmem:[#allocation2 + $0x608] ss:$16 sps:$4 sm:$0xff]  }
  0xb2   :  { %2085 = vmatpush1.bf16.msra.mxu0 %v5383_v35  ;;  %v5475_v35 = vld [vmem:[#allocation2 + $0x4c8] ss:$16 sps:$4 sm:$0xff]  }
  0xb3   :  { %2198 = vmatpush1.bf16.msra.mxu1 %v5386_v36  ;;  %2086 = vmatprep.subr.bf16.mxu0 %v5395_v37  ;;  %v5746_v36 = vld [vmem:[%s7460_s0] ss:$28 sps:$4 sm:$0xff]   ;;  %v5747_v37 = vld [vmem:[%s7460_s0 + $0x8] ss:$28 sps:$4 sm:$0xff]  }
  0xb4   :  { %2199 = vmatprep.subr.bf16.mxu1 %v5398_v38  ;;  %v5748_v38 = vld [vmem:[%s7460_s0 + $0x3c] ss:$28 sps:$4 sm:$0xff]  }
  0xb5   :  { %1911 = vmatmul.mubr.bf16.gmra.mxu0 %v5391_v39  ;;  %v5480_v39 = vld [vmem:[#allocation2 + $0x4ac] ss:$16 sps:$4 sm:$0xff]  }
  0xb6   :  { %4758 = vmatmul.mubr.msk.bf16.gmra.mxu1 %vm1597_vm0, %v5392_v40  ;;  %2087 = vmatpush1.bf16.msra.mxu0 %v5393_v41  ;;  %v5749_v40 = vld [vmem:[%s7460_s0 + $0x44] ss:$28 sps:$4 sm:$0xff]   ;;  %v5478_v41 = vld [vmem:[#allocation2 + $0x4a8] ss:$16 sps:$4 sm:$0xff]  }
  0xb7   :  { %2200 = vmatpush1.bf16.msra.mxu1 %v5396_v42  ;;  %2088 = vmatprep.subr.bf16.mxu0 %v5401_v43  ;;  %v5483_v42 = vld [vmem:[#allocation2 + $0x48c] ss:$16 sps:$4 sm:$0xff]   ;;  %v5481_v43 = vld [vmem:[#allocation2 + $0x488] ss:$16 sps:$4 sm:$0xff]  }
  0xb8   :  { %2201 = vmatprep.subr.bf16.mxu1 %v5404_v44  ;;  %1920 = vmatprep.mubr.bf16.mxu0 %v5405_v45  ;;  %v5750_v44 = vld [vmem:[%s7460_s0 + $0x38] ss:$28 sps:$4 sm:$0xff]   ;;  %v5751_v45 = vld [vmem:[%s7460_s0 + $0x40] ss:$28 sps:$4 sm:$0xff]  }
  0xb9   :  { %2033 = vmatprep.mubr.bf16.mxu1 %v5850_v4 }
  0xba   :  { %2089 = vmatpush1.bf16.msra.mxu0 %v5399_v46  ;;  %v5752_v46 = vld [vmem:[%s7460_s0 + $0x74] ss:$28 sps:$4 sm:$0xff]  }
  0xbb   :  { %2202 = vmatpush1.bf16.msra.mxu1 %v5402_v47  ;;  %2090 = vmatprep.subr.bf16.mxu0 %v5411_v48  ;;  %v5753_v47 = vld [vmem:[%s7460_s0 + $0x7c] ss:$28 sps:$4 sm:$0xff]  }
  0xbc   :  { %2203 = vmatprep.subr.bf16.mxu1 %v5414_v49  ;;  %v5486_v48 = vld [vmem:[#allocation2 + $0x46c] ss:$16 sps:$4 sm:$0xff]   ;;  %v5484_v49 = vld [vmem:[#allocation2 + $0x468] ss:$16 sps:$4 sm:$0xff]  }
  0xbd   :  { %1921 = vmatmul.mubr.bf16.gmra.mxu0 %v5407_v50  ;;  %v5489_v50 = vld [vmem:[#allocation2 + $0x44c] ss:$16 sps:$4 sm:$0xff]  }
  0xbe   :  { %4759 = vmatmul.mubr.msk.bf16.gmra.mxu1 %vm1597_vm0, %v5408_v51  ;;  %2091 = vmatpush2.bf16.msra.mxu0 %v5409_v52  ;;  %v5487_v51 = vld [vmem:[#allocation2 + $0x448] ss:$16 sps:$4 sm:$0xff]   ;;  %v5754_v52 = vld [vmem:[%s7460_s0 + $0x70] ss:$28 sps:$4 sm:$0xff]  }
  0xbf   :  { %2204 = vmatpush2.bf16.msra.mxu1 %v5412_v53  ;;  %2092 = vmatprep.subr.bf16.mxu0 %v5417_v54  ;;  %v5755_v53 = vld [vmem:[%s7460_s0 + $0x78] ss:$28 sps:$4 sm:$0xff]   ;;  %v5756_v54 = vld [vmem:[%s7460_s0 + $0xac] ss:$28 sps:$4 sm:$0xff]  }
  0xc0   :  { %2205 = vmatprep.subr.bf16.mxu1 %v5420_v55  ;;  %1930 = vmatprep.mubr.bf16.mxu0 %v5421_v56  ;;  %v5757_v55 = vld [vmem:[%s7460_s0 + $0xb4] ss:$28 sps:$4 sm:$0xff]   ;;  %v5492_v56 = vld [vmem:[#allocation2 + $0x42c] ss:$16 sps:$4 sm:$0xff]  }
  0xc1   :  { %2043 = vmatprep.mubr.bf16.mxu1 %v5850_v4 }
  0xc2   :  { %2093 = vmatpush2.bf16.msra.mxu0 %v5415_v57  ;;  %v5490_v57 = vld [vmem:[#allocation2 + $0x428] ss:$16 sps:$4 sm:$0xff]  }
  0xc3   :  { %2206 = vmatpush2.bf16.msra.mxu1 %v5418_v58  ;;  %2094 = vmatprep.subr.bf16.mxu0 %v5427_v59  ;;  %v5495_v58 = vld [vmem:[#allocation2 + $0x40c] ss:$16 sps:$4 sm:$0xff]   ;;  %v5493_v59 = vld [vmem:[#allocation2 + $0x408] ss:$16 sps:$4 sm:$0xff]  }
  0xc4   :  { %2207 = vmatprep.subr.bf16.mxu1 %v5430_v60  ;;  %v5758_v60 = vld [vmem:[%s7460_s0 + $0xa8] ss:$28 sps:$4 sm:$0xff]  }
  0xc5   :  { %1931 = vmatmul.mubr.bf16.gmra.mxu0 %v5423_v61  ;;  %v5759_v61 = vld [vmem:[%s7460_s0 + $0xb0] ss:$28 sps:$4 sm:$0xff]  }
  0xc6   :  { %4760 = vmatmul.mubr.msk.bf16.gmra.mxu1 %vm1597_vm0, %v5424_v62  ;;  %2095 = vmatpush2.bf16.msra.mxu0 %v5425_v63  ;;  %v317_v62 = vlaneseq  ;;  %v5760_v63 = vld [vmem:[%s7460_s0 + $0xe4] ss:$28 sps:$4 sm:$0xff]  }
  0xc7   :  { %2208 = vmatpush2.bf16.msra.mxu1 %v5428_v0  ;;  %2096 = vmatprep.subr.bf16.mxu0 %v5433_v1  ;;  %v5761_v0 = vld [vmem:[%s7460_s0 + $0xec] ss:$28 sps:$4 sm:$0xff]  }
  0xc8   :  { %2209 = vmatprep.subr.bf16.mxu1 %v5436_v2  ;;  %1940 = vmatprep.mubr.bf16.mxu0 %v5437_v3  ;;  %v5498_v1 = vld [vmem:[#allocation2 + $0x5ec] ss:$16 sps:$4 sm:$0xff]   ;;  %v5496_v2 = vld [vmem:[#allocation2 + $0x5e8] ss:$16 sps:$4 sm:$0xff]   ;;  %v6138_v3 = vshrl.u32 %v317_v62, 7 }
  0xc9   :  { %2053 = vmatprep.mubr.bf16.mxu1 %v5850_v4 }
  0xca   :  { %2097 = vmatpush2.bf16.msra.mxu0 %v5431_v5  ;;  %7475 = vst [vmem:[#allocation8_spill] sm:$0xff] %v6138_v3  ;;  %v5501_v5 = vld [vmem:[#allocation2 + $0x5cc] ss:$16 sps:$4 sm:$0xff]  }
  0xcb   :  { %2210 = vmatpush2.bf16.msra.mxu1 %v5434_v6  ;;  %2098 = vmatprep.subr.bf16.mxu0 %v5443_v7  ;;  %v5499_v6 = vld [vmem:[#allocation2 + $0x5c8] ss:$16 sps:$4 sm:$0xff]   ;;  %v5762_v7 = vld [vmem:[%s7460_s0 + $0xe0] ss:$28 sps:$4 sm:$0xff]  }
  0xcc   :  { %2211 = vmatprep.subr.bf16.mxu1 %v5446_v8  ;;  %v5763_v8 = vld [vmem:[%s7460_s0 + $0xe8] ss:$28 sps:$4 sm:$0xff]  }
  0xcd   :  { %1941 = vmatmul.mubr.bf16.gmra.mxu0 %v5439_v9  ;;  %v7468_v9 = vsub.s32 0, %v6138_v3 }
  0xce   :  { %4761 = vmatmul.mubr.msk.bf16.gmra.mxu1 %vm1597_vm0, %v5440_v10  ;;  %2099 = vmatpush2.bf16.msra.mxu0 %v5441_v11  ;;  %v5764_v10 = vld [vmem:[%s7460_s0 + $0x11c] ss:$28 sps:$4 sm:$0xff]   ;;  %v5765_v11 = vld [vmem:[%s7460_s0 + $0x124] ss:$28 sps:$4 sm:$0xff]  }
  0xcf   :  { %2212 = vmatpush2.bf16.msra.mxu1 %v5444_v12  ;;  %2100 = vmatprep.subr.bf16.mxu0 %v5449_v13  ;;  %v5504_v12 = vld [vmem:[#allocation2 + $0x5ac] ss:$16 sps:$4 sm:$0xff]   ;;  %v5502_v13 = vld [vmem:[#allocation2 + $0x5a8] ss:$16 sps:$4 sm:$0xff]  }
  0xd0   :  { %2213 = vmatprep.subr.bf16.mxu1 %v5452_v14  ;;  %1950 = vmatprep.mubr.bf16.mxu0 %v6072_v15  ;;  %v5507_v14 = vld [vmem:[#allocation2 + $0x58c] ss:$16 sps:$4 sm:$0xff]  }
  0xd1   :  { %2063 = vmatprep.mubr.bf16.mxu1 %v5850_v4 }
  0xd2   :  { %2101 = vmatpush2.bf16.msra.mxu0 %v5447_v16  ;;  %v5505_v16 = vld [vmem:[#allocation2 + $0x588] ss:$16 sps:$4 sm:$0xff]  }
  0xd3   :  { %2214 = vmatpush2.bf16.msra.mxu1 %v5450_v17  ;;  %2102 = vmatprep.subr.bf16.mxu0 %v5459_v19  ;;  %v5766_v17 = vld [vmem:[%s7460_s0 + $0x118] ss:$28 sps:$4 sm:$0xff]  }
  0xd4   :  { %2215 = vmatprep.subr.bf16.mxu1 %v5462_v20  ;;  %v5768_v19 = vld [vmem:[%s7460_s0 + $0x154] ss:$28 sps:$4 sm:$0xff]   ;;  %v5769_v20 = vld [vmem:[%s7460_s0 + $0x15c] ss:$28 sps:$4 sm:$0xff]  }
  0xd5   :  { %1951 = vmatmul.mubr.bf16.gmra.mxu0 %v5455_v18  ;;  %v5767_v18 = vld [vmem:[%s7460_s0 + $0x120] ss:$28 sps:$4 sm:$0xff]  }
  0xd6   :  { %4762 = vmatmul.mubr.msk.bf16.gmra.mxu1 %vm1597_vm0, %v5456_v21  ;;  %2103 = vmatpush2.bf16.msra.mxu0 %v5457_v22  ;;  %v5510_v21 = vld [vmem:[#allocation2 + $0x56c] ss:$16 sps:$4 sm:$0xff]   ;;  %v5508_v22 = vld [vmem:[#allocation2 + $0x568] ss:$16 sps:$4 sm:$0xff]  }
  0xd7   :  { %2216 = vmatpush2.bf16.msra.mxu1 %v5460_v23  ;;  %2104 = vmatprep.subr.bf16.mxu0 %v5465_v24  ;;  %v5513_v23 = vld [vmem:[#allocation2 + $0x54c] ss:$16 sps:$4 sm:$0xff]   ;;  %v5511_v24 = vld [vmem:[#allocation2 + $0x548] ss:$16 sps:$4 sm:$0xff]  }
  0xd8   :  { %2217 = vmatprep.subr.bf16.mxu1 %v5468_v25  ;;  %2106 = vmatprep.mubr.bf16.mxu0 %v5744_v30  ;;  %v5770_v25 = vld [vmem:[%s7460_s0 + $0x150] ss:$28 sps:$4 sm:$0xff]   ;;  %v5514_v30 = vld [vmem:[#allocation2 + $0x528] ss:$16 sps:$4 sm:$0xff]  }
  0xd9   :  { %2219 = vmatprep.mubr.bf16.mxu1 %v5745_v31  ;;  %v5519_v31 = vld [vmem:[#allocation2 + $0x50c] ss:$16 sps:$4 sm:$0xff]  }
  0xda   :  { %2105 = vmatpush2.bf16.msra.mxu0 %v5463_v26  ;;  %v5771_v26 = vld [vmem:[%s7460_s0 + $0x158] ss:$28 sps:$4 sm:$0xff]  }
  0xdb   :  { %2218 = vmatpush2.bf16.msra.mxu1 %v5466_v27  ;;  %2300 = vmatprep.subr.bf16.mxu0 %v5471_v28  ;;  %v5772_v27 = vld [vmem:[%s7460_s0 + $0x18c] ss:$28 sps:$4 sm:$0xff]   ;;  %v5773_v28 = vld [vmem:[%s7460_s0 + $0x194] ss:$28 sps:$4 sm:$0xff]  }
  0xdc   :  { %2427 = vmatprep.subr.bf16.mxu1 %v5474_v29  ;;  %v5516_v29 = vld [vmem:[#allocation2 + $0x52c] ss:$16 sps:$4 sm:$0xff]  }
  0xdd   :  { %2107 = vmatmul.mubr.bf16.vlgmr.msra.gmra.mxu0 %v5746_v36  ;;  %v315_v36 = vld [vmem:[%s7462_s2] sm:$0xf] }
  0xde   :  { %2220 = vmatmul.mubr.bf16.vlgmr.msra.gmra.mxu1 %v5747_v37  ;;  %2301 = vmatpush1.bf16.msra.mxu0 %v5469_v32  ;;  %v5517_v32 = vld [vmem:[#allocation2 + $0x508] ss:$16 sps:$4 sm:$0xff]   ;;  %v5522_v37 = vld [vmem:[%s7463_s3 + $0xe4] ss:$16 sps:$4 sm:$0xff]  }
  0xdf   :  { %2428 = vmatpush1.bf16.msra.mxu1 %v5472_v33  ;;  %2302 = vmatprep.subr.bf16.mxu0 %v5477_v34  ;;  %v5774_v33 = vld [vmem:[%s7460_s0 + $0x188] ss:$28 sps:$4 sm:$0xff]   ;;  %v5775_v34 = vld [vmem:[%s7460_s0 + $0x190] ss:$28 sps:$4 sm:$0xff]  }
  0xe0   :  { %2116 = vmatprep.mubr.bf16.mxu0 %v5748_v38  ;;  %2229 = vmatprep.mubr.bf16.mxu1 %v5749_v40  ;;  %v7469_v38 = vsub.s32 1, %v6138_v3  ;;  %v5520_v40 = vld [vmem:[%s7463_s3 + $0xe0] ss:$16 sps:$4 sm:$0xff]  }
  0xe2   :  { %2303 = vmatpush1.bf16.msra.mxu0 %v5475_v35  ;;  %v5776_v35 = vld [vmem:[%s7460_s0 + $0x14] ss:$28 sps:$4 sm:$0xff]  }
  0xe3   :  { %2304 = vmatprep.subr.bf16.mxu0 %v5480_v39  ;;  %v6196_v39 = vrot.slane %v315_v36, %v7468_v9 }
  0xe5   :  { %2117 = vmatmul.mubr.bf16.gmra.mxu0 %v5750_v44 }
  0xe6   :  { %2230 = vmatmul.mubr.bf16.gmra.mxu1 %v5751_v45  ;;  %2305 = vmatpush1.bf16.msra.mxu0 %v5478_v41  ;;  %v6203_v41 = vrot.slane %v315_v36, %v7469_v38  ;;  %v5777_v45 = vld [vmem:[%s7460_s0 + $0x10] ss:$28 sps:$4 sm:$0xff]  }
  0xe7   :  { %2126 = vmatprep.mubr.bf16.mxu0 %v5752_v46  ;;  %2306 = vmatprep.subr.bf16.mxu0 %v5483_v42  ;;  %v5525_v42 = vld [vmem:[%s7463_s3 + $0xc4] ss:$16 sps:$4 sm:$0xff]   ;;  %v5619_v36 = vld [vmem:[%s7463_s3 + $0x2c0] ss:$16 sps:$4 sm:$0xff]  }
  0xe8   :  { %2239 = vmatprep.mubr.bf16.mxu1 %v5753_v47  ;;  %v5778_v46 = vld [vmem:[%s7460_s0 + $0x18] ss:$28 sps:$4 sm:$0xff]  }
  0xea   :  { %2307 = vmatpush1.bf16.msra.mxu0 %v5481_v43 }
  0xeb   :  { %2308 = vmatprep.subr.bf16.mxu0 %v5486_v48  ;;  %v5779_v48 = vld [vmem:[%s7460_s0 + $0x4c] ss:$28 sps:$4 sm:$0xff]  }
  0xed   :  { %2127 = vmatmul.mubr.bf16.gmra.mxu0 %v5754_v52 }
  0xee   :  { %2240 = vmatmul.mubr.bf16.gmra.mxu1 %v5755_v53  ;;  %2309 = vmatpush1.bf16.msra.mxu0 %v5484_v49 }
  0xef   :  { %2136 = vmatprep.mubr.bf16.mxu0 %v5756_v54  ;;  %2310 = vmatprep.subr.bf16.mxu0 %v5489_v50  ;;  %v5528_v54 = vld [vmem:[%s7463_s3 + $0xa4] ss:$16 sps:$4 sm:$0xff]  }
  0xf0   :  { %2249 = vmatprep.mubr.bf16.mxu1 %v5757_v55 }
  0xf2   :  { %2311 = vmatpush1.bf16.msra.mxu0 %v5487_v51  ;;  %v5523_v51 = vld [vmem:[%s7463_s3 + $0xc0] ss:$16 sps:$4 sm:$0xff]  }
  0xf3   :  { %2312 = vmatprep.subr.bf16.mxu0 %v5492_v56 }
  0xf5   :  { %2137 = vmatmul.mubr.bf16.gmra.mxu0 %v5758_v60  ;;  %v5526_v60 = vld [vmem:[%s7463_s3 + $0xa0] ss:$16 sps:$4 sm:$0xff]  }
  0xf6   :  { %2250 = vmatmul.mubr.bf16.gmra.mxu1 %v5759_v61  ;;  %2313 = vmatpush1.bf16.msra.mxu0 %v5490_v57  ;;  %v5531_v61 = vld [vmem:[%s7463_s3 + $0x84] ss:$16 sps:$4 sm:$0xff]  }
  0xf7   :  { %2146 = vmatprep.mubr.bf16.mxu0 %v5760_v63  ;;  %2314 = vmatprep.subr.bf16.mxu0 %v5495_v58 }
  0xf8   :  { %2259 = vmatprep.mubr.bf16.mxu1 %v5761_v0  ;;  %v5780_v0 = vld [vmem:[%s7460_s0 + $0x48] ss:$28 sps:$4 sm:$0xff]  }
  0xfa   :  { %2315 = vmatpush1.bf16.msra.mxu0 %v5493_v59 }
  0xfb   :  { %2316 = vmatprep.subr.bf16.mxu0 %v5498_v1  ;;  %v5781_v1 = vld [vmem:[%s7460_s0 + $0x50] ss:$28 sps:$4 sm:$0xff]  }
  0xfd   :  { %2147 = vmatmul.mubr.bf16.gmra.mxu0 %v5762_v7 }
  0xfe   :  { %2260 = vmatmul.mubr.bf16.gmra.mxu1 %v5763_v8  ;;  %2317 = vmatpush2.bf16.msra.mxu0 %v5496_v2  ;;  %v5529_v8 = vld [vmem:[%s7463_s3 + $0x80] ss:$16 sps:$4 sm:$0xff]  }
  0xff   :  { %2156 = vmatprep.mubr.bf16.mxu0 %v5764_v10  ;;  %2318 = vmatprep.subr.bf16.mxu0 %v5501_v5  ;;  %v5782_v5 = vld [vmem:[%s7460_s0 + $0x84] ss:$28 sps:$4 sm:$0xff]  }
 0x100   :  { %2269 = vmatprep.mubr.bf16.mxu1 %v5765_v11 }
 0x102   :  { %2319 = vmatpush2.bf16.msra.mxu0 %v5499_v6 }
 0x103   :  { %2320 = vmatprep.subr.bf16.mxu0 %v5504_v12  ;;  %v5534_v12 = vld [vmem:[%s7463_s3 + $0x64] ss:$16 sps:$4 sm:$0xff]  }
 0x105   :  { %2157 = vmatmul.mubr.bf16.gmra.mxu0 %v5766_v17 }
 0x106   :  { %2270 = vmatmul.mubr.bf16.gmra.mxu1 %v5767_v18  ;;  %2321 = vmatpush2.bf16.msra.mxu0 %v5502_v13 }
 0x107   :  { %2166 = vmatprep.mubr.bf16.mxu0 %v5768_v19  ;;  %2322 = vmatprep.subr.bf16.mxu0 %v5507_v14  ;;  %v5532_v19 = vld [vmem:[%s7463_s3 + $0x60] ss:$16 sps:$4 sm:$0xff]  }
 0x108   :  { %2279 = vmatprep.mubr.bf16.mxu1 %v5769_v20  ;;  %v5618_v20 = vld [vmem:[%s7463_s3 + $0x2e4] ss:$16 sps:$4 sm:$0xff]  }
 0x109   :  { %3525 = vmatprep.subr.bf16.mxu1 %v5618_v20  ;;  %v5544_v20 = vld [vmem:[%s7463_s3 + $0x1e0] ss:$16 sps:$4 sm:$0xff]  }
 0x10a   :  { %2323 = vmatpush2.bf16.msra.mxu0 %v5505_v16 }
 0x10b   :  { %2324 = vmatprep.subr.bf16.mxu0 %v5510_v21  ;;  %v5537_v21 = vld [vmem:[%s7463_s3 + $0x44] ss:$16 sps:$4 sm:$0xff]  }
 0x10d   :  { %2167 = vmatmul.mubr.bf16.gmra.mxu0 %v5770_v25  ;;  %v5783_v25 = vld [vmem:[%s7460_s0 + $0x80] ss:$28 sps:$4 sm:$0xff]  }
 0x10e   :  { %2280 = vmatmul.mubr.bf16.gmra.mxu1 %v5771_v26  ;;  %2325 = vmatpush2.bf16.msra.mxu0 %v5508_v22  ;;  %v5616_v22 = vld [vmem:[%s7463_s3 + $0x2e0] ss:$16 sps:$4 sm:$0xff]   ;;  %v5784_v26 = vld [vmem:[%s7460_s0 + $0x88] ss:$28 sps:$4 sm:$0xff]  }
 0x10f   :  { %2176 = vmatprep.mubr.bf16.mxu0 %v5772_v27  ;;  %2326 = vmatprep.subr.bf16.mxu0 %v5513_v23 }
 0x110   :  { %2289 = vmatprep.mubr.bf16.mxu1 %v5773_v28  ;;  %v5785_v28 = vld [vmem:[%s7460_s0 + $0xbc] ss:$28 sps:$4 sm:$0xff]  }
 0x112   :  { %2327 = vmatpush2.bf16.msra.mxu0 %v5511_v24 }
 0x113   :  { %2328 = vmatprep.subr.bf16.mxu0 %v5516_v29 }
 0x115   :  { %2177 = vmatmul.mubr.bf16.gmra.mxu0 %v5774_v33 }
 0x116   :  { %2290 = vmatmul.mubr.bf16.gmra.mxu1 %v5775_v34  ;;  %2329 = vmatpush2.bf16.msra.mxu0 %v5514_v30 }
 0x117   :  { %2332 = vmatprep.mubr.bf16.mxu0 %v5776_v35  ;;  %2330 = vmatprep.subr.bf16.mxu0 %v5519_v31  ;;  %v5535_v31 = vld [vmem:[%s7463_s3 + $0x40] ss:$16 sps:$4 sm:$0xff]   ;;  %v5540_v35 = vld [vmem:[%s7463_s3 + $0x24] ss:$16 sps:$4 sm:$0xff]  }
 0x118   :  { %2445 = vmatprep.mubr.bf16.mxu1 %v5850_v4 }
 0x11a   :  { %2331 = vmatpush2.bf16.msra.mxu0 %v5517_v32  ;;  %v5621_v32 = vld [vmem:[%s7463_s3 + $0x2c4] ss:$16 sps:$4 sm:$0xff]  }
 0x11b   :  { %3412 = vmatprep.subr.bf16.mxu0 %v5522_v37 }
 0x11d   :  { %v1656_v43 = vpop.f32.mrf.mxu0  ;;  %2333 = vmatmul.mubr.bf16.vlgmr.msra.gmra.mxu0 %v5777_v45  ;;  %v5538_v45 = vld [vmem:[%s7463_s3 + $0x20] ss:$16 sps:$4 sm:$0xff]  }
 0x11e   :  { %v1769_v44 = vpop.f32.mrf.mxu1  ;;  %4763 = vmatmul.mubr.msk.bf16.vlgmr.msra.gmra.mxu1 %vm1597_vm0, %v5778_v46  ;;  %v1657_v47 = vadd.f32 %v1656_v43, %v6196_v39  ;;  %2342 = vmatprep.mubr.bf16.mxu0 %v5779_v48  ;;  %v5624_v46 = vld [vmem:[%s7463_s3 + $0x2a4] ss:$16 sps:$4 sm:$0xff]   ;;  %v5622_v48 = vld [vmem:[%s7463_s3 + $0x2a0] ss:$16 sps:$4 sm:$0xff]  }
 0x11f   :  { %2455 = vmatprep.mubr.bf16.mxu1 %v5850_v4  ;;  %v1658_v49 = vpop.f32.mrf.mxu0  ;;  %3413 = vmatpush1.bf16.msra.mxu0 %v5520_v40 }
 0x120   :  { %v1771_v50 = vpop.f32.mrf.mxu1  ;;  %v6223_v52 = vadd.f32 %v1769_v44, %v1657_v47  ;;  %v1659_v53 = vadd.f32 %v1658_v49, %v6203_v41  ;;  %3414 = vmatprep.subr.bf16.mxu0 %v5525_v42  ;;  %3526 = vmatpush1.bf16.msra.mxu1 %v5616_v22  ;;  %v5543_v47 = vld [vmem:[%s7463_s3 + $0x4] ss:$16 sps:$4 sm:$0xff]  }
 0x121   :  { %v6229_v55 = vpop.f32.mrf.mxu0  ;;  %3527 = vmatprep.subr.bf16.mxu1 %v5621_v32  ;;  %v5549_v22 = vld [vmem:[%s7463_s3 + $0x1c4] ss:$16 sps:$4 sm:$0xff]   ;;  %v5547_v32 = vld [vmem:[%s7463_s3 + $0x1c0] ss:$16 sps:$4 sm:$0xff]  }
 0x122   :  { %v6231_v56 = vpop.f32.mrf.mxu1  ;;  %v6233_v57 = vadd.f32 %v1771_v50, %v1659_v53  ;;  %v5787_v53 = vld [vmem:[%s7460_s0 + $0xc0] ss:$28 sps:$4 sm:$0xff]  }
 0x123   :  { %v6235_v58 = vpop.f32.mrf.mxu0  ;;  %3415 = vmatpush1.bf16.msra.mxu0 %v5523_v51  ;;  %v5786_v51 = vld [vmem:[%s7460_s0 + $0xb8] ss:$28 sps:$4 sm:$0xff]  }
 0x124   :  { %v6237_v59 = vpop.f32.mrf.mxu1  ;;  %3416 = vmatprep.subr.bf16.mxu0 %v5528_v54  ;;  %3528 = vmatpush1.bf16.msra.mxu1 %v5619_v36 }
 0x125   :  { %v1666_v62 = vpop.f32.mrf.mxu0  ;;  %2343 = vmatmul.mubr.bf16.gmra.mxu0 %v5780_v0  ;;  %3529 = vmatprep.subr.bf16.mxu1 %v5624_v46  ;;  %v5627_v0 = vld [vmem:[%s7463_s3 + $0x284] ss:$16 sps:$4 sm:$0xff]   ;;  %v5631_v46 = vld [vmem:[%s7463_s3 + $0x240] ss:$16 sps:$4 sm:$0xff]  }
 0x126   :  { %v1779_v63 = vpop.f32.mrf.mxu1  ;;  %4764 = vmatmul.mubr.msk.bf16.gmra.mxu1 %vm1597_vm0, %v5781_v1  ;;  %v1667_v2 = vadd.f32 %v1666_v62, %v6196_v39  ;;  %2352 = vmatprep.mubr.bf16.mxu0 %v5782_v5  ;;  %v5546_v5 = vld [vmem:[%s7463_s3 + $0x1e4] ss:$16 sps:$4 sm:$0xff]  }
 0x127   :  { %2465 = vmatprep.mubr.bf16.mxu1 %v5850_v4  ;;  %v1668_v6 = vpop.f32.mrf.mxu0  ;;  %3417 = vmatpush1.bf16.msra.mxu0 %v5526_v60  ;;  %v5788_v60 = vld [vmem:[%s7460_s0 + $0xf4] ss:$28 sps:$4 sm:$0xff]  }
 0x128   :  { %v1781_v7 = vpop.f32.mrf.mxu1  ;;  %v6260_v10 = vadd.f32 %v1779_v63, %v1667_v2  ;;  %v1669_v11 = vadd.f32 %v1668_v6, %v6203_v41  ;;  %3418 = vmatprep.subr.bf16.mxu0 %v5531_v61  ;;  %v5541_v63 = vld [vmem:[%s7463_s3] ss:$16 sps:$4 sm:$0xff]   ;;  %3530 = vmatpush1.bf16.msra.mxu1 %v5622_v48 }
 0x129   :  { %v6266_v13 = vpop.f32.mrf.mxu0  ;;  %v5625_v6 = vld [vmem:[%s7463_s3 + $0x280] ss:$16 sps:$4 sm:$0xff]   ;;  %3531 = vmatprep.subr.bf16.mxu1 %v5627_v0  ;;  %v5792_v0 = vld [vmem:[%s7460_s0 + $0x128] ss:$28 sps:$4 sm:$0xff]  }
 0x12a   :  { %v6268_v14 = vpop.f32.mrf.mxu1  ;;  %v6270_v16 = vadd.f32 %v1781_v7, %v1669_v11 }
 0x12b   :  { %v6272_v17 = vpop.f32.mrf.mxu0  ;;  %3419 = vmatpush1.bf16.msra.mxu0 %v5529_v8 }
 0x12c   :  { %v6274_v18 = vpop.f32.mrf.mxu1  ;;  %3420 = vmatprep.subr.bf16.mxu0 %v5534_v12  ;;  %3532 = vmatpush1.bf16.msra.mxu1 %v5625_v6  ;;  %v5794_v6 = vld [vmem:[%s7460_s0 + $0x164] ss:$28 sps:$4 sm:$0xff]  }
 0x12d   :  { %v1676_v23 = vpop.f32.mrf.mxu0  ;;  %2353 = vmatmul.mubr.bf16.gmra.mxu0 %v5783_v25 }
 0x12e   :  { %v1789_v24 = vpop.f32.mrf.mxu1  ;;  %4765 = vmatmul.mubr.msk.bf16.gmra.mxu1 %vm1597_vm0, %v5784_v26  ;;  %v1677_v27 = vadd.f32 %v1676_v23, %v6196_v39  ;;  %2362 = vmatprep.mubr.bf16.mxu0 %v5785_v28  ;;  %v5628_v23 = vld [vmem:[%s7463_s3 + $0x260] ss:$16 sps:$4 sm:$0xff]  }
 0x12f   :  { %2475 = vmatprep.mubr.bf16.mxu1 %v5850_v4  ;;  %v1678_v29 = vpop.f32.mrf.mxu0  ;;  %3421 = vmatpush1.bf16.msra.mxu0 %v5532_v19  ;;  %v5789_v26 = vld [vmem:[%s7460_s0 + $0xf0] ss:$28 sps:$4 sm:$0xff]  }
 0x130   :  { %v1791_v30 = vpop.f32.mrf.mxu1  ;;  %v6306_v33 = vadd.f32 %v1789_v24, %v1677_v27  ;;  %v1679_v34 = vadd.f32 %v1678_v29, %v6203_v41  ;;  %3422 = vmatprep.subr.bf16.mxu0 %v5537_v21  ;;  %v5630_v21 = vld [vmem:[%s7463_s3 + $0x264] ss:$16 sps:$4 sm:$0xff]   ;;  %v5791_v29 = vld [vmem:[%s7460_s0 + $0x12c] ss:$28 sps:$4 sm:$0xff]  }
 0x131   :  { %v6315_v37 = vpop.f32.mrf.mxu0  ;;  %v5790_v27 = vld [vmem:[%s7460_s0 + $0xf8] ss:$28 sps:$4 sm:$0xff]   ;;  %3533 = vmatprep.subr.bf16.mxu1 %v5630_v21 }
 0x132   :  { %v6317_v40 = vpop.f32.mrf.mxu1  ;;  %v6319_v42 = vadd.f32 %v1791_v30, %v1679_v34  ;;  %v5633_v34 = vld [vmem:[%s7463_s3 + $0x244] ss:$16 sps:$4 sm:$0xff]   ;;  %3534 = vmatpush1.bf16.msra.mxu1 %v5628_v23 }
 0x133   :  { %v6321_v43 = vpop.f32.mrf.mxu0  ;;  %3423 = vmatpush1.bf16.msra.mxu0 %v5535_v31  ;;  %3535 = vmatprep.subr.bf16.mxu1 %v5633_v34  ;;  %v5639_v23 = vld [vmem:[%s7463_s3 + $0x204] ss:$16 sps:$4 sm:$0xff]   ;;  %v5556_v34 = vld [vmem:[%s7463_s3 + $0x160] ss:$16 sps:$4 sm:$0xff]  }
 0x134   :  { %v6323_v44 = vpop.f32.mrf.mxu1  ;;  %3424 = vmatprep.subr.bf16.mxu0 %v5540_v35 }
 0x135   :  { %v1686_v49 = vpop.f32.mrf.mxu0  ;;  %2363 = vmatmul.mubr.bf16.gmra.mxu0 %v5786_v51 }
 0x136   :  { %v1799_v50 = vpop.f32.mrf.mxu1  ;;  %4766 = vmatmul.mubr.msk.bf16.gmra.mxu1 %vm1597_vm0, %v5787_v53  ;;  %v1687_v54 = vadd.f32 %v1686_v49, %v6196_v39  ;;  %2372 = vmatprep.mubr.bf16.mxu0 %v5788_v60  ;;  %v5550_v53 = vld [vmem:[%s7463_s3 + $0x1a0] ss:$16 sps:$4 sm:$0xff]   ;;  %v5555_v60 = vld [vmem:[%s7463_s3 + $0x184] ss:$16 sps:$4 sm:$0xff]  }
 0x137   :  { %2485 = vmatprep.mubr.bf16.mxu1 %v5850_v4  ;;  %v1688_v61 = vpop.f32.mrf.mxu0  ;;  %3425 = vmatpush1.bf16.msra.mxu0 %v5538_v45  ;;  %v5552_v45 = vld [vmem:[%s7463_s3 + $0x1a4] ss:$16 sps:$4 sm:$0xff]  }
 0x138   :  { %v1801_v62 = vpop.f32.mrf.mxu1  ;;  %v6355_v1 = vadd.f32 %v1799_v50, %v1687_v54  ;;  %v1689_v2 = vadd.f32 %v1688_v61, %v6203_v41  ;;  %3426 = vmatprep.subr.bf16.mxu0 %v5543_v47  ;;  %v5636_v54 = vld [vmem:[%s7463_s3 + $0x224] ss:$16 sps:$4 sm:$0xff]   ;;  %3536 = vmatpush1.bf16.msra.mxu1 %v5631_v46  ;;  %v5634_v61 = vld [vmem:[%s7463_s3 + $0x220] ss:$16 sps:$4 sm:$0xff]  }
 0x139   :  { %v6364_v7 = vpop.f32.mrf.mxu0  ;;  %3537 = vmatprep.subr.bf16.mxu1 %v5636_v54  ;;  %v5640_v46 = vld [vmem:[%s7463_s3 + $0x3e0] ss:$16 sps:$4 sm:$0xff]  }
 0x13a   :  { %v6366_v8 = vpop.f32.mrf.mxu1  ;;  %v6368_v11 = vadd.f32 %v1801_v62, %v1689_v2  ;;  %v5793_v2 = vld [vmem:[%s7460_s0 + $0x130] ss:$28 sps:$4 sm:$0xff]  }
 0x13b   :  { %v6370_v12 = vpop.f32.mrf.mxu0  ;;  %3427 = vmatpush1.bf16.msra.mxu0 %v5541_v63 }
 0x13c   :  { %v6372_v19 = vpop.f32.mrf.mxu1  ;;  %3428 = vmatprep.subr.bf16.mxu0 %v5546_v5  ;;  %3538 = vmatpush1.bf16.msra.mxu1 %v5634_v61  ;;  %v5796_v61 = vld [vmem:[%s7460_s0 + $0x168] ss:$28 sps:$4 sm:$0xff]  }
 0x13d   :  { %v1696_v24 = vpop.f32.mrf.mxu0  ;;  %2373 = vmatmul.mubr.bf16.gmra.mxu0 %v5789_v26  ;;  %v5558_v26 = vld [vmem:[%s7463_s3 + $0x164] ss:$16 sps:$4 sm:$0xff]   ;;  %3539 = vmatprep.subr.bf16.mxu1 %v5639_v23 }
 0x13e   :  { %v1809_v25 = vpop.f32.mrf.mxu1  ;;  %4767 = vmatmul.mubr.msk.bf16.gmra.mxu1 %vm1597_vm0, %v5790_v27  ;;  %v1697_v28 = vadd.f32 %v1696_v24, %v6196_v39  ;;  %2382 = vmatprep.mubr.bf16.mxu0 %v5791_v29  ;;  %v5637_v27 = vld [vmem:[%s7463_s3 + $0x200] ss:$16 sps:$4 sm:$0xff]  }
 0x13f   :  { %2495 = vmatprep.mubr.bf16.mxu1 %v5850_v4  ;;  %v1698_v30 = vpop.f32.mrf.mxu0  ;;  %3429 = vmatpush2.bf16.msra.mxu0 %v5544_v20 }
 0x140   :  { %v1811_v31 = vpop.f32.mrf.mxu1  ;;  %v6404_v35 = vadd.f32 %v1809_v25, %v1697_v28  ;;  %v1699_v36 = vadd.f32 %v1698_v30, %v6203_v41  ;;  %3430 = vmatprep.subr.bf16.mxu0 %v5549_v22  ;;  %v5553_v22 = vld [vmem:[%s7463_s3 + $0x180] ss:$16 sps:$4 sm:$0xff]   ;;  %3540 = vmatpush1.bf16.msra.mxu1 %v5637_v27 }
 0x141   :  { %v6413_v47 = vpop.f32.mrf.mxu0  ;;  %v5562_v27 = vld [vmem:[%s7463_s3 + $0x120] ss:$16 sps:$4 sm:$0xff]  }
 0x142   :  { %v6415_v48 = vpop.f32.mrf.mxu1  ;;  %v6417_v49 = vadd.f32 %v1811_v31, %v1699_v36  ;;  %v5642_v36 = vld [vmem:[%s7463_s3 + $0x3e4] ss:$16 sps:$4 sm:$0xff]  }
 0x143   :  { %v6419_v50 = vpop.f32.mrf.mxu0  ;;  %3431 = vmatpush2.bf16.msra.mxu0 %v5547_v32  ;;  %3541 = vmatprep.subr.bf16.mxu1 %v5642_v36  ;;  %v5567_v36 = vld [vmem:[%s7463_s3 + $0x104] ss:$16 sps:$4 sm:$0xff]  }
 0x144   :  { %v6421_v51 = vpop.f32.mrf.mxu1  ;;  %3432 = vmatprep.subr.bf16.mxu0 %v5552_v45  ;;  %v5561_v45 = vld [vmem:[%s7463_s3 + $0x144] ss:$16 sps:$4 sm:$0xff]   ;;  %3542 = vmatpush2.bf16.msra.mxu1 %v5640_v46 }
 0x145   :  { %v1706_v62 = vpop.f32.mrf.mxu0  ;;  %2383 = vmatmul.mubr.bf16.gmra.mxu0 %v5792_v0 }
 0x146   :  { %v1819_v63 = vpop.f32.mrf.mxu1  ;;  %4768 = vmatmul.mubr.msk.bf16.gmra.mxu1 %vm1597_vm0, %v5793_v2  ;;  %v1707_v5 = vadd.f32 %v1706_v62, %v6196_v39  ;;  %2392 = vmatprep.mubr.bf16.mxu0 %v5794_v6  ;;  %v5559_v2 = vld [vmem:[%s7463_s3 + $0x140] ss:$16 sps:$4 sm:$0xff]  }
 0x147   :  { %2505 = vmatprep.mubr.bf16.mxu1 %v5850_v4  ;;  %v1708_v20 = vpop.f32.mrf.mxu0  ;;  %3433 = vmatpush2.bf16.msra.mxu0 %v5550_v53 }
 0x148   :  { %v1821_v21 = vpop.f32.mrf.mxu1  ;;  %v6453_v24 = vadd.f32 %v1819_v63, %v1707_v5  ;;  %v1709_v25 = vadd.f32 %v1708_v20, %v6203_v41  ;;  %3434 = vmatprep.subr.bf16.mxu0 %v5555_v60  ;;  %v5795_v60 = vld [vmem:[%s7460_s0 + $0x160] ss:$28 sps:$4 sm:$0xff]   ;;  %v5645_v5 = vld [vmem:[%s7463_s3 + $0x3c4] ss:$16 sps:$4 sm:$0xff]  }
 0x149   :  { %v6462_v28 = vpop.f32.mrf.mxu0  ;;  %3543 = vmatprep.subr.bf16.mxu1 %v5645_v5 }
 0x14a   :  { %v6464_v29 = vpop.f32.mrf.mxu1  ;;  %v6466_v30 = vadd.f32 %v1821_v21, %v1709_v25 }
 0x14b   :  { %v6468_v31 = vpop.f32.mrf.mxu0  ;;  %3435 = vmatpush2.bf16.msra.mxu0 %v5553_v22 }
 0x14c   :  { %v6470_v32 = vpop.f32.mrf.mxu1  ;;  %3436 = vmatprep.subr.bf16.mxu0 %v5558_v26 }
 0x14d   :  { %v1716_v53 = vpop.f32.mrf.mxu0  ;;  %2393 = vmatmul.mubr.bf16.gmra.mxu0 %v5795_v60  ;;  %v5798_v60 = vld [vmem:[%s7460_s0 + $0x1a0] ss:$28 sps:$4 sm:$0xff]  }
 0x14e   :  { %v1829_v54 = vpop.f32.mrf.mxu1  ;;  %4769 = vmatmul.mubr.msk.bf16.gmra.mxu1 %vm1597_vm0, %v5796_v61  ;;  %v1717_v62 = vadd.f32 %v1716_v53, %v6196_v39  ;;  %2402 = vmatprep.mubr.bf16.mxu0 %v6072_v15  ;;  %v5643_v15 = vld [vmem:[%s7463_s3 + $0x3c0] ss:$16 sps:$4 sm:$0xff]  }
 0x14f   :  { %2515 = vmatprep.mubr.bf16.mxu1 %v5850_v4  ;;  %v1718_v63 = vpop.f32.mrf.mxu0  ;;  %3437 = vmatpush2.bf16.msra.mxu0 %v5556_v34  ;;  %v5564_v4 = vld [vmem:[%s7463_s3 + $0x124] ss:$16 sps:$4 sm:$0xff]  }
 0x150   :  { %v1831_v0 = vpop.f32.mrf.mxu1  ;;  %v6500_v6 = vadd.f32 %v1829_v54, %v1717_v62  ;;  %v1719_v20 = vadd.f32 %v1718_v63, %v6203_v41  ;;  %3438 = vmatprep.subr.bf16.mxu0 %v5561_v45  ;;  %v5648_v34 = vld [vmem:[%s7463_s3 + $0x3a4] ss:$16 sps:$4 sm:$0xff]   ;;  %3544 = vmatpush2.bf16.msra.mxu1 %v5643_v15  ;;  %v5646_v45 = vld [vmem:[%s7463_s3 + $0x3a0] ss:$16 sps:$4 sm:$0xff]  }
 0x151   :  { %v6509_v21 = vpop.f32.mrf.mxu0  ;;  %v5797_v54 = vld [vmem:[%s7460_s0 + $0x198] ss:$28 sps:$4 sm:$0xff]   ;;  %3545 = vmatprep.subr.bf16.mxu1 %v5648_v34  ;;  %v5649_v15 = vld [vmem:[%s7463_s3 + $0x380] ss:$16 sps:$4 sm:$0xff]  }
 0x152   :  { %v6511_v22 = vpop.f32.mrf.mxu1  ;;  %v6513_v23 = vadd.f32 %v1831_v0, %v1719_v20  ;;  %v5565_v0 = vld [vmem:[%s7463_s3 + $0x100] ss:$16 sps:$4 sm:$0xff]  }
 0x153   :  { %v6515_v25 = vpop.f32.mrf.mxu0  ;;  %3439 = vmatpush2.bf16.msra.mxu0 %v5559_v2  ;;  %v5651_v2 = vld [vmem:[%s7463_s3 + $0x384] ss:$16 sps:$4 sm:$0xff]  }
 0x154   :  { %v6517_v26 = vpop.f32.mrf.mxu1  ;;  %3440 = vmatprep.subr.bf16.mxu0 %v5564_v4  ;;  %v5570_v4 = vld [vmem:[%s7463_s3 + $0xec] ss:$16 sps:$4 sm:$0xff]   ;;  %3546 = vmatpush2.bf16.msra.mxu1 %v5646_v45  ;;  %v1661_v45 = vadd.f32 %v6229_v55, %v6196_v39 }
 0x155   :  { %v1726_v46 = vpop.f32.mrf.mxu0  ;;  %2403 = vmatmul.mubr.bf16.gmra.mxu0 %v5797_v54  ;;  %3547 = vmatprep.subr.bf16.mxu1 %v5651_v2 }
 0x156   :  { %v1839_v53 = vpop.f32.mrf.mxu1  ;;  %4770 = vmatmul.mubr.msk.bf16.gmra.mxu1 %vm1597_vm0, %v5798_v60  ;;  %v1727_v61 = vadd.f32 %v1726_v46, %v6196_v39  ;;  %v5652_v60 = vld [vmem:[%s7463_s3 + $0x360] ss:$16 sps:$4 sm:$0xff]   ;;  %v1774_v55 = vadd.f32 %v6231_v56, %v1661_v45  ;;  %v5660_v56 = vld [vmem:[%s7463_s3 + $0x324] ss:$16 sps:$4 sm:$0xff]  }
 0x157   :  { %v1728_v62 = vpop.f32.mrf.mxu0  ;;  %3441 = vmatpush2.bf16.msra.mxu0 %v5562_v27 }
 0x158   :  { %v1841_v63 = vpop.f32.mrf.mxu1  ;;  %v6545_v5 = vadd.f32 %v1839_v53, %v1727_v61  ;;  %v1729_v20 = vadd.f32 %v1728_v62, %v6203_v41  ;;  %3442 = vmatprep.subr.bf16.mxu0 %v5567_v36  ;;  %v5654_v36 = vld [vmem:[%s7463_s3 + $0x364] ss:$16 sps:$4 sm:$0xff]   ;;  %3548 = vmatpush2.bf16.msra.mxu1 %v5649_v15  ;;  %v5655_v15 = vld [vmem:[%s7463_s3 + $0x340] ss:$16 sps:$4 sm:$0xff]  }
 0x159   :  { %v6554_v27 = vpop.f32.mrf.mxu0  ;;  %3549 = vmatprep.subr.bf16.mxu1 %v5654_v36 }
 0x15a   :  { %7476 = vst [vmem:[#allocation9_spill] sm:$0xff] %v6545_v5  ;;  %v6556_v34 = vpop.f32.mrf.mxu1  ;;  %v6558_v46 = vadd.f32 %v1841_v63, %v1729_v20  ;;  %v1663_v63 = vadd.f32 %v6235_v58, %v6203_v41  ;;  %v5657_v20 = vld [vmem:[%s7463_s3 + $0x344] ss:$16 sps:$4 sm:$0xff]  }
 0x15b   :  { %7477 = vst [vmem:[#allocation10_spill] sm:$0xff] %v6556_v34  ;;  %v6560_v53 = vpop.f32.mrf.mxu0  ;;  %3443 = vmatpush2.bf16.msra.mxu0 %v5565_v0 }
 0x15c   :  { %7478 = vst [vmem:[#allocation11_spill] sm:$0xff] %v6558_v46  ;;  %v6562_v54 = vpop.f32.mrf.mxu1  ;;  %3638 = vmatprep.subr.bf16.mxu0 %v5570_v4  ;;  %3550 = vmatpush2.bf16.msra.mxu1 %v5652_v60  ;;  %v1776_v58 = vadd.f32 %v6237_v59, %v1663_v63  ;;  %v1673_v63 = vadd.f32 %v6272_v17, %v6203_v41 }
 0x15d   :  { %7479 = vst [vmem:[#allocation12_spill] sm:$0xff] %v6562_v54  ;;  %v1882_v61 = vpop.f32.mrf.mxu0  ;;  %3551 = vmatprep.subr.bf16.mxu1 %v5657_v20 }
 0x15e   :  { %v1995_v62 = vpop.f32.mrf.mxu1  ;;  %v1883_v36 = vadd.f32 %v1882_v61, %v6223_v52  ;;  %v5658_v52 = vld [vmem:[%s7463_s3 + $0x320] ss:$16 sps:$4 sm:$0xff]  }
 0x15f   :  { %v1884_v0 = vpop.f32.mrf.mxu0 }
 0x160   :  { %v1997_v2 = vpop.f32.mrf.mxu1  ;;  %v1885_v4 = vadd.f32 %v1884_v0, %v6233_v57  ;;  %v1671_v57 = vadd.f32 %v6266_v13, %v6196_v39  ;;  %3552 = vmatpush2.bf16.msra.mxu1 %v5655_v15  ;;  %v1996_v61 = vadd.f32 %v1995_v62, %v1883_v36  ;;  %v1786_v36 = vadd.f32 %v6274_v18, %v1673_v63  ;;  %v5666_v18 = vld [vmem:[%s7463_s3 + $0x2ec] ss:$16 sps:$4 sm:$0xff]  }
 0x161   :  { %v1886_v9 = vpop.f32.mrf.mxu0  ;;  %3553 = vmatprep.subr.bf16.mxu1 %v5660_v56  ;;  %v1683_v63 = vadd.f32 %v6321_v43, %v6203_v41 }
 0x162   :  { %v1999_v38 = vpop.f32.mrf.mxu1  ;;  %v1887_v54 = vadd.f32 %v1886_v9, %v1774_v55  ;;  %v1998_v45 = vadd.f32 %v1997_v2, %v1885_v4  ;;  %v1784_v13 = vadd.f32 %v6268_v14, %v1671_v57  ;;  %v5661_v2 = vld [vmem:[%s7463_s3 + $0x300] ss:$16 sps:$4 sm:$0xff]   ;;  %v2526_v17 = vmax.f32 %v1996_v61, 0.0  ;;  %v5568_v14 = vld [vmem:[%s7463_s3 + $0xe8] ss:$16 sps:$4 sm:$0xff]  }
 0x163   :  { %v1888_v5 = vpop.f32.mrf.mxu0 }
 0x164   :  { %v2001_v46 = vpop.f32.mrf.mxu1  ;;  %v2000_v60 = vadd.f32 %v1999_v38, %v1887_v54  ;;  %v1889_v0 = vadd.f32 %v1888_v5, %v1776_v58  ;;  %v5663_v38 = vld [vmem:[%s7463_s3 + $0x304] ss:$16 sps:$4 sm:$0xff]   ;;  %v2527_v5 = vmax.f32 %v1998_v45, 0.0  ;;  %3554 = vmatpush2.bf16.msra.mxu1 %v5658_v52 }
 0x165   :  { %v1892_v59 = vpop.f32.mrf.mxu0  ;;  %3555 = vmatprep.subr.bf16.mxu1 %v5663_v38 }
 0x166   :  { %v2005_v9 = vpop.f32.mrf.mxu1  ;;  %v2002_v20 = vadd.f32 %v2001_v46, %v1889_v0  ;;  %v2530_v55 = vmax.f32 %v2000_v60, 0.0  ;;  %v1893_v46 = vadd.f32 %v1892_v59, %v6260_v10  ;;  %v5573_v10 = vld [vmem:[%s7463_s3 + $0xcc] ss:$16 sps:$4 sm:$0xff]  }
 0x167   :  { %v1894_v34 = vpop.f32.mrf.mxu0 }
 0x168   :  { %v2007_v3 = vpop.f32.mrf.mxu1  ;;  %v2531_v54 = vmax.f32 %v2002_v20, 0.0  ;;  %v1895_v62 = vadd.f32 %v1894_v34, %v6270_v16  ;;  %v1681_v16 = vadd.f32 %v6315_v37, %v6196_v39  ;;  %v6611_v34 = vpack.c.bf16 %v2530_v55, %v2526_v17  ;;  %3556 = vmatpush2.bf16.msra.mxu1 %v5661_v2 }
 0x169   :  { %v1896_v4 = vpop.f32.mrf.mxu0  ;;  %v2006_v61 = vadd.f32 %v2005_v9, %v1893_v46  ;;  %3751 = vmatprep.subr.bf16.mxu1 %v5666_v18  ;;  %v5576_v9 = vld [vmem:[%s7463_s3 + $0xac] ss:$16 sps:$4 sm:$0xff]  }
 0x16a   :  { %v2009_v15 = vpop.f32.mrf.mxu1  ;;  %v1897_v58 = vadd.f32 %v1896_v4, %v1784_v13  ;;  %v6604_v56 = vpack.c.bf16 %v2531_v54, %v2527_v5  ;;  %v2008_v60 = vadd.f32 %v2007_v3, %v1895_v62  ;;  %v5571_v3 = vld [vmem:[%s7463_s3 + $0xc8] ss:$16 sps:$4 sm:$0xff]   ;;  %v1794_v5 = vadd.f32 %v6317_v40, %v1681_v16 }
 0x16b   :  { %v1898_v57 = vpop.f32.mrf.mxu0  ;;  %v2534_v2 = vmax.f32 %v2006_v61, 0.0 }
 0x16c   :  { %v2011_v45 = vpop.f32.mrf.mxu1  ;;  %v2010_v0 = vadd.f32 %v2009_v15, %v1897_v58  ;;  %v1899_v52 = vadd.f32 %v1898_v57, %v1786_v36  ;;  %3444 = vmatprep.mubr.bf16.mxu0 %v6604_v56  ;;  %v2535_v54 = vmax.f32 %v2008_v60, 0.0  ;;  %v1796_v15 = vadd.f32 %v6323_v44, %v1683_v63 }
 0x16d   :  { %v1902_v37 = vpop.f32.mrf.mxu0  ;;  %3445 = vmatmul.mubr.bf16.vlgmr.msra.gmra.mxu0 %v6611_v34 }
 0x16e   :  { %v2015_v59 = vpop.f32.mrf.mxu1  ;;  %v2012_v20 = vadd.f32 %v2011_v45, %v1899_v52  ;;  %3639 = vmatpush1.bf16.msra.mxu0 %v5568_v14  ;;  %v2538_v55 = vmax.f32 %v2010_v0, 0.0  ;;  %v1903_v17 = vadd.f32 %v1902_v37, %v6306_v33  ;;  %v5574_v14 = vld [vmem:[%s7463_s3 + $0xa8] ss:$16 sps:$4 sm:$0xff]   ;;  %v5579_v33 = vld [vmem:[%s7463_s3 + $0x8c] ss:$16 sps:$4 sm:$0xff]   ;;  %v1693_v52 = vadd.f32 %v6370_v12, %v6203_v41 }
 0x16f   :  { %v1904_v38 = vpop.f32.mrf.mxu0  ;;  %3640 = vmatprep.subr.bf16.mxu0 %v5573_v10  ;;  %v5577_v37 = vld [vmem:[%s7463_s3 + $0x88] ss:$16 sps:$4 sm:$0xff]  }
 0x170   :  { %v2017_v13 = vpop.f32.mrf.mxu1  ;;  %v2539_v62 = vmax.f32 %v2012_v20, 0.0  ;;  %v1905_v43 = vadd.f32 %v1904_v38, %v6319_v42  ;;  %v6638_v40 = vpack.c.bf16 %v2538_v55, %v2534_v2  ;;  %v1691_v42 = vadd.f32 %v6364_v7, %v6196_v39 }
 0x171   :  { %v1906_v46 = vpop.f32.mrf.mxu0  ;;  %v2016_v18 = vadd.f32 %v2015_v59, %v1903_v17  ;;  %v5582_v59 = vld [vmem:[%s7463_s3 + $0x6c] ss:$16 sps:$4 sm:$0xff]   ;;  %v5580_v17 = vld [vmem:[%s7463_s3 + $0x68] ss:$16 sps:$4 sm:$0xff]  }
 0x172   :  { %v2019_v4 = vpop.f32.mrf.mxu1  ;;  %v1907_v36 = vadd.f32 %v1906_v46, %v1794_v5  ;;  %3641 = vmatpush1.bf16.msra.mxu0 %v5571_v3  ;;  %v6633_v58 = vpack.c.bf16 %v2539_v62, %v2535_v54  ;;  %v2018_v44 = vadd.f32 %v2017_v13, %v1905_v43  ;;  %v1804_v3 = vadd.f32 %v6366_v8, %v1691_v42 }
 0x173   :  { %v1908_v16 = vpop.f32.mrf.mxu0  ;;  %3642 = vmatprep.subr.bf16.mxu0 %v5576_v9  ;;  %v2542_v13 = vmax.f32 %v2016_v18, 0.0  ;;  %v1806_v62 = vadd.f32 %v6372_v19, %v1693_v52  ;;  %v5588_v18 = vld [vmem:[%s7463_s3 + $0x2c] ss:$16 sps:$4 sm:$0xff]  }
 0x174   :  { %v2021_v57 = vpop.f32.mrf.mxu1  ;;  %v2020_v45 = vadd.f32 %v2019_v4, %v1907_v36  ;;  %v1909_v10 = vadd.f32 %v1908_v16, %v1796_v15  ;;  %3454 = vmatprep.mubr.bf16.mxu0 %v6633_v58  ;;  %v2543_v55 = vmax.f32 %v2018_v44, 0.0  ;;  %v5583_v44 = vld [vmem:[%s7463_s3 + $0x48] ss:$16 sps:$4 sm:$0xff]  }
 0x175   :  { %v1912_v60 = vpop.f32.mrf.mxu0  ;;  %3455 = vmatmul.mubr.bf16.gmra.mxu0 %v6638_v40 }
 0x176   :  { %v2025_v0 = vpop.f32.mrf.mxu1  ;;  %v2022_v61 = vadd.f32 %v2021_v57, %v1909_v10  ;;  %3643 = vmatpush1.bf16.msra.mxu0 %v5574_v14  ;;  %v2546_v7 = vmax.f32 %v2020_v45, 0.0  ;;  %v1913_v9 = vadd.f32 %v1912_v60, %v6355_v1  ;;  %v5585_v1 = vld [vmem:[%s7463_s3 + $0x4c] ss:$16 sps:$4 sm:$0xff]  }
 0x177   :  { %v1914_v63 = vpop.f32.mrf.mxu0  ;;  %3644 = vmatprep.subr.bf16.mxu0 %v5579_v33  ;;  %v1703_v33 = vadd.f32 %v6419_v50, %v6203_v41 }
 0x178   :  { %v2027_v20 = vpop.f32.mrf.mxu1  ;;  %v2547_v38 = vmax.f32 %v2022_v61, 0.0  ;;  %v1915_v12 = vadd.f32 %v1914_v63, %v6368_v11  ;;  %v6664_v8 = vpack.c.bf16 %v2546_v7, %v2542_v13  ;;  %v1701_v11 = vadd.f32 %v6413_v47, %v6196_v39 }
 0x179   :  { %v1916_v5 = vpop.f32.mrf.mxu0  ;;  %v2026_v14 = vadd.f32 %v2025_v0, %v1913_v9 }
 0x17a   :  { %v2029_v54 = vpop.f32.mrf.mxu1  ;;  %v1917_v43 = vadd.f32 %v1916_v5, %v1804_v3  ;;  %3645 = vmatpush1.bf16.msra.mxu0 %v5577_v37  ;;  %v6659_v2 = vpack.c.bf16 %v2547_v38, %v2543_v55  ;;  %v2028_v19 = vadd.f32 %v2027_v20, %v1915_v12  ;;  %v1814_v60 = vadd.f32 %v6415_v48, %v1701_v11  ;;  %v5586_v55 = vld [vmem:[%s7463_s3 + $0x28] ss:$16 sps:$4 sm:$0xff]   ;;  %v5594_v11 = vld [vmem:[%s7463_s3 + $0x1ec] ss:$16 sps:$4 sm:$0xff]  }
 0x17b   :  { %v1918_v46 = vpop.f32.mrf.mxu0  ;;  %3646 = vmatprep.subr.bf16.mxu0 %v5582_v59  ;;  %v2550_v61 = vmax.f32 %v2026_v14, 0.0  ;;  %v1816_v20 = vadd.f32 %v6421_v51, %v1703_v33 }
 0x17c   :  { %v2031_v4 = vpop.f32.mrf.mxu1  ;;  %v2030_v15 = vadd.f32 %v2029_v54, %v1917_v43  ;;  %v1919_v36 = vadd.f32 %v1918_v46, %v1806_v62  ;;  %3464 = vmatprep.mubr.bf16.mxu0 %v6659_v2  ;;  %v2551_v0 = vmax.f32 %v2028_v19, 0.0  ;;  %v1713_v43 = vadd.f32 %v6468_v31, %v6203_v41  ;;  %v5589_v46 = vld [vmem:[%s7463_s3 + $0x8] ss:$16 sps:$4 sm:$0xff]  }
 0x17d   :  { %v1922_v16 = vpop.f32.mrf.mxu0  ;;  %3465 = vmatmul.mubr.bf16.gmra.mxu0 %v6664_v8 }
 0x17e   :  { %v2035_v57 = vpop.f32.mrf.mxu1  ;;  %v2032_v42 = vadd.f32 %v2031_v4, %v1919_v36  ;;  %3647 = vmatpush1.bf16.msra.mxu0 %v5580_v17  ;;  %v2554_v47 = vmax.f32 %v2030_v15, 0.0  ;;  %v1923_v37 = vadd.f32 %v1922_v16, %v6404_v35  ;;  %v5591_v35 = vld [vmem:[%s7463_s3 + $0xc] ss:$16 sps:$4 sm:$0xff]  }
 0x17f   :  { %v1924_v45 = vpop.f32.mrf.mxu0  ;;  %3648 = vmatprep.subr.bf16.mxu0 %v5585_v1 }
 0x180   :  { %v2037_v10 = vpop.f32.mrf.mxu1  ;;  %v2555_v52 = vmax.f32 %v2032_v42, 0.0  ;;  %v1925_v50 = vadd.f32 %v1924_v45, %v6417_v49  ;;  %v6690_v48 = vpack.c.bf16 %v2554_v47, %v2550_v61  ;;  %v1711_v49 = vadd.f32 %v6462_v28, %v6196_v39  ;;  %v5592_v45 = vld [vmem:[%s7463_s3 + $0x1e8] ss:$16 sps:$4 sm:$0xff]  }
 0x181   :  { %v1926_v7 = vpop.f32.mrf.mxu0  ;;  %v2036_v5 = vadd.f32 %v2035_v57, %v1923_v37  ;;  %v1826_v42 = vadd.f32 %v6470_v32, %v1713_v43  ;;  %v1723_v37 = vadd.f32 %v6515_v25, %v6203_v41  ;;  %v5598_v43 = vld [vmem:[%s7463_s3 + $0x1a8] ss:$16 sps:$4 sm:$0xff]  }
 0x182   :  { %v2039_v63 = vpop.f32.mrf.mxu1  ;;  %v1927_v59 = vadd.f32 %v1926_v7, %v1814_v60  ;;  %3649 = vmatpush1.bf16.msra.mxu0 %v5583_v44  ;;  %v6685_v3 = vpack.c.bf16 %v2555_v52, %v2551_v0  ;;  %v2038_v51 = vadd.f32 %v2037_v10, %v1925_v50  ;;  %v1824_v19 = vadd.f32 %v6464_v29, %v1711_v49 }
 0x183   :  { %v1928_v38 = vpop.f32.mrf.mxu0  ;;  %3650 = vmatprep.subr.bf16.mxu0 %v5588_v18  ;;  %v2558_v14 = vmax.f32 %v2036_v5, 0.0  ;;  %v1836_v5 = vadd.f32 %v6517_v26, %v1723_v37 }
 0x184   :  { %v2041_v12 = vpop.f32.mrf.mxu1  ;;  %v2040_v13 = vadd.f32 %v2039_v63, %v1927_v59  ;;  %v1929_v9 = vadd.f32 %v1928_v38, %v1816_v20  ;;  %3474 = vmatprep.mubr.bf16.mxu0 %v6685_v3  ;;  %v2559_v15 = vmax.f32 %v2038_v51, 0.0  ;;  %v5595_v63 = vld [vmem:[%s7463_s3 + $0x1c8] ss:$16 sps:$4 sm:$0xff]  }
 0x185   :  { %v1932_v54 = vpop.f32.mrf.mxu0  ;;  %3475 = vmatmul.mubr.bf16.gmra.mxu0 %v6690_v48 }
 0x186   :  { %v2045_v62 = vpop.f32.mrf.mxu1  ;;  %v2042_v17 = vadd.f32 %v2041_v12, %v1929_v9  ;;  %3651 = vmatpush1.bf16.msra.mxu0 %v5586_v55  ;;  %v2562_v28 = vmax.f32 %v2040_v13, 0.0  ;;  %v1933_v16 = vadd.f32 %v1932_v54, %v6453_v24  ;;  %v5597_v24 = vld [vmem:[%s7463_s3 + $0x1cc] ss:$16 sps:$4 sm:$0xff]  }
 0x187   :  { %v1934_v4 = vpop.f32.mrf.mxu0  ;;  %3652 = vmatprep.subr.bf16.mxu0 %v5591_v35  ;;  %v5600_v55 = vld [vmem:[%s7463_s3 + $0x1ac] ss:$16 sps:$4 sm:$0xff]  }
 0x188   :  { %v2047_v1 = vpop.f32.mrf.mxu1  ;;  %v2563_v36 = vmax.f32 %v2042_v17, 0.0  ;;  %v1935_v31 = vadd.f32 %v1934_v4, %v6466_v30  ;;  %v6716_v29 = vpack.c.bf16 %v2562_v28, %v2558_v14  ;;  %v1721_v30 = vadd.f32 %v6509_v21, %v6196_v39 }
 0x189   :  { %v1936_v57 = vpop.f32.mrf.mxu0  ;;  %v2046_v52 = vadd.f32 %v2045_v62, %v1933_v16 }
 0x18a   :  { %v2049_v33 = vpop.f32.mrf.mxu1  ;;  %v1937_v44 = vadd.f32 %v1936_v57, %v1824_v19  ;;  %3653 = vmatpush1.bf16.msra.mxu0 %v5589_v46  ;;  %v6711_v47 = vpack.c.bf16 %v2563_v36, %v2559_v15  ;;  %v2048_v32 = vadd.f32 %v2047_v1, %v1935_v31  ;;  %v1834_v38 = vadd.f32 %v6511_v22, %v1721_v30  ;;  %v5601_v31 = vld [vmem:[%s7463_s3 + $0x188] ss:$16 sps:$4 sm:$0xff]  }
 0x18b   :  { %v1938_v10 = vpop.f32.mrf.mxu0  ;;  %3654 = vmatprep.subr.bf16.mxu0 %v5594_v11  ;;  %v2566_v49 = vmax.f32 %v2046_v52, 0.0  ;;  %v1733_v15 = vadd.f32 %v6560_v53, %v6203_v41  ;;  %v7483_v30 = vld [vmem:[#allocation9_spill] sm:$0xff]  ;;  %v7484_v52 = vld [vmem:[#allocation12_spill] sm:$0xff] }
 0x18c   :  { %v2051_v18 = vpop.f32.mrf.mxu1  ;;  %v2050_v60 = vadd.f32 %v2049_v33, %v1937_v44  ;;  %v1939_v0 = vadd.f32 %v1938_v10, %v1826_v42  ;;  %3484 = vmatprep.mubr.bf16.mxu0 %v6711_v47  ;;  %v2567_v12 = vmax.f32 %v2048_v32, 0.0  ;;  %v5606_v33 = vld [vmem:[%s7463_s3 + $0x16c] ss:$16 sps:$4 sm:$0xff]   ;;  %v7481_v44 = vld [vmem:[#allocation10_spill] sm:$0xff] }
 0x18d   :  { %v1942_v50 = vpop.f32.mrf.mxu0  ;;  %3485 = vmatmul.mubr.bf16.gmra.mxu0 %v6716_v29  ;;  %v7482_v10 = vld [vmem:[#allocation11_spill] sm:$0xff] }
 0x18e   :  { %v2055_v61 = vpop.f32.mrf.mxu1  ;;  %v2052_v7 = vadd.f32 %v2051_v18, %v1939_v0  ;;  %3655 = vmatpush2.bf16.msra.mxu0 %v5592_v45  ;;  %v2570_v21 = vmax.f32 %v2050_v60, 0.0  ;;  %v1943_v51 = vadd.f32 %v1942_v50, %v6500_v6  ;;  %v5603_v6 = vld [vmem:[%s7463_s3 + $0x18c] ss:$16 sps:$4 sm:$0xff]   ;;  %v1846_v50 = vadd.f32 %v7484_v52, %v1733_v15 }
 0x18f   :  { %v1944_v20 = vpop.f32.mrf.mxu0  ;;  %3656 = vmatprep.subr.bf16.mxu0 %v5597_v24 }
 0x190   :  { %v2057_v59 = vpop.f32.mrf.mxu1  ;;  %v2571_v35 = vmax.f32 %v2052_v7, 0.0  ;;  %v1945_v25 = vadd.f32 %v1944_v20, %v6513_v23  ;;  %v6742_v22 = vpack.c.bf16 %v2570_v21, %v2566_v49  ;;  %v1731_v23 = vadd.f32 %v6554_v27, %v6196_v39  ;;  %v7480_v39 = vld [vmem:[#allocation8_spill] sm:$0xff]  ;;  %v5604_v21 = vld [vmem:[%s7463_s3 + $0x168] ss:$16 sps:$4 sm:$0xff]  }
 0x191   :  { %v1946_v13 = vpop.f32.mrf.mxu0  ;;  %v2056_v1 = vadd.f32 %v2055_v61, %v1943_v51  ;;  %v7472_v27 = vsub.s32 2, %v7480_v39  ;;  %v7473_v42 = vsub.s32 3, %v7480_v39  ;;  %v5799_v7 = vld [vmem:[%s7462_s2] sm:$0xf] }
 0x192   :  { %v2059_v9 = vpop.f32.mrf.mxu1  ;;  %v1947_v54 = vadd.f32 %v1946_v13, %v1834_v38  ;;  %3657 = vmatpush2.bf16.msra.mxu0 %v5595_v63  ;;  %v6737_v62 = vpack.c.bf16 %v2571_v35, %v2567_v12  ;;  %v2058_v26 = vadd.f32 %v2057_v59, %v1945_v25  ;;  %v1844_v41 = vadd.f32 %v7481_v44, %v1731_v23  ;;  %v5609_v38 = vld [vmem:[%s7463_s3 + $0x14c] ss:$16 sps:$4 sm:$0xff]  }
 0x193   :  { %v1948_v17 = vpop.f32.mrf.mxu0  ;;  %3658 = vmatprep.subr.bf16.mxu0 %v5600_v55  ;;  %v2574_v24 = vmax.f32 %v2056_v1, 0.0  ;;  %v6772_v63 = vrot.slane %v5799_v7, %v7472_v27  ;;  %v6785_v49 = vrot.slane %v5799_v7, %v7473_v42  ;;  %v5612_v23 = vld [vmem:[%s7463_s3 + $0x12c] ss:$16 sps:$4 sm:$0xff]  }
 0x194   :  { %v2061_v46 = vpop.f32.mrf.mxu1  ;;  %v2060_v28 = vadd.f32 %v2059_v9, %v1947_v54  ;;  %v1949_v4 = vadd.f32 %v1948_v17, %v1836_v5  ;;  %3494 = vmatprep.mubr.bf16.mxu0 %v6737_v62  ;;  %v2575_v53 = vmax.f32 %v2058_v26, 0.0  ;;  %v5615_v44 = vld [vmem:[%s7463_s3 + $0x10c] ss:$16 sps:$4 sm:$0xff]  }
 0x195   :  { %v1952_v11 = vpop.f32.mrf.mxu0  ;;  %3495 = vmatmul.mubr.bf16.gmra.mxu0 %v6742_v22 }
 0x196   :  { %v2065_v19 = vpop.f32.mrf.mxu1  ;;  %v2062_v36 = vadd.f32 %v2061_v46, %v1949_v4  ;;  %3659 = vmatpush2.bf16.msra.mxu0 %v5598_v43  ;;  %v2578_v14 = vmax.f32 %v2060_v28, 0.0  ;;  %v1953_v32 = vadd.f32 %v1952_v11, %v7483_v30  ;;  %v5607_v43 = vld [vmem:[%s7463_s3 + $0x148] ss:$16 sps:$4 sm:$0xff]  }
 0x197   :  { %v1954_v16 = vpop.f32.mrf.mxu0  ;;  %3660 = vmatprep.subr.bf16.mxu0 %v5603_v6 }
 0x198   :  { %v2067_v57 = vpop.f32.mrf.mxu1  ;;  %v2579_v45 = vmax.f32 %v2062_v36, 0.0  ;;  %v1955_v18 = vadd.f32 %v1954_v16, %v7482_v10  ;;  %v6777_v20 = vpack.c.bf16 %v2578_v14, %v2574_v24  ;;  %v2066_v51 = vadd.f32 %v2065_v19, %v1953_v32  ;;  %v5610_v14 = vld [vmem:[%s7463_s3 + $0x128] ss:$16 sps:$4 sm:$0xff]  }
 0x199   :  { %v1956_v60 = vpop.f32.mrf.mxu0  ;;  %v5613_v10 = vld [vmem:[%s7463_s3 + $0x108] ss:$16 sps:$4 sm:$0xff]  }
 0x19a   :  { %v2069_v0 = vpop.f32.mrf.mxu1  ;;  %v1957_v61 = vadd.f32 %v1956_v60, %v1844_v41  ;;  %3661 = vmatpush2.bf16.msra.mxu0 %v5601_v31  ;;  %v6765_v37 = vpack.c.bf16 %v2579_v45, %v2575_v53  ;;  %v2068_v12 = vadd.f32 %v2067_v57, %v1955_v18  ;;  %v2582_v11 = vmax.f32 %v2066_v51, 0.0 }
 0x19b   :  { %v1958_v59 = vpop.f32.mrf.mxu0  ;;  %3662 = vmatprep.subr.bf16.mxu0 %v5606_v33 }
 0x19c   :  { %v2071_v55 = vpop.f32.mrf.mxu1  ;;  %v2070_v35 = vadd.f32 %v2069_v0, %v1957_v61  ;;  %v1959_v25 = vadd.f32 %v1958_v59, %v1846_v50  ;;  %3504 = vmatprep.mubr.bf16.mxu0 %v6765_v37  ;;  %v2583_v26 = vmax.f32 %v2068_v12, 0.0 }
 0x19d   :  { %v2108_v13 = vpop.f32.mrf.mxu0  ;;  %3505 = vmatmul.mubr.bf16.gmra.mxu0 %v6777_v20 }
 0x19e   :  { %v2221_v9 = vpop.f32.mrf.mxu1  ;;  %v2072_v5 = vadd.f32 %v2071_v55, %v1959_v25  ;;  %v2109_v54 = vadd.f32 %v2108_v13, %v6772_v63  ;;  %3663 = vmatpush2.bf16.msra.mxu0 %v5604_v21  ;;  %v2586_v17 = vmax.f32 %v2070_v35, 0.0 }
 0x19f   :  { %v2110_v46 = vpop.f32.mrf.mxu0  ;;  %3664 = vmatprep.subr.bf16.mxu0 %v5609_v38 }
 0x1a0   :  { %v2223_v6 = vpop.f32.mrf.mxu1  ;;  %v2587_v28 = vmax.f32 %v2072_v5, 0.0  ;;  %v6795_v4 = vadd.f32 %v2221_v9, %v2109_v54  ;;  %v2111_v1 = vadd.f32 %v2110_v46, %v6785_v49  ;;  %v6809_v16 = vpack.c.bf16 %v2586_v17, %v2582_v11 }
 0x1a1   :  { %v6798_v19 = vpop.f32.mrf.mxu0 }
 0x1a2   :  { %v6800_v15 = vpop.f32.mrf.mxu1  ;;  %v6802_v36 = vadd.f32 %v2223_v6, %v2111_v1  ;;  %3665 = vmatpush2.bf16.msra.mxu0 %v5607_v43  ;;  %v6804_v31 = vpack.c.bf16 %v2587_v28, %v2583_v26 }
 0x1a3   :  { %v6811_v57 = vpop.f32.mrf.mxu0  ;;  %3666 = vmatprep.subr.bf16.mxu0 %v5612_v23 }
 0x1a4   :  { %v6813_v33 = vpop.f32.mrf.mxu1  ;;  %3514 = vmatprep.mubr.bf16.mxu0 %v6804_v31 }
 0x1a5   :  { %v2118_v41 = vpop.f32.mrf.mxu0  ;;  %3515 = vmatmul.mubr.bf16.gmra.mxu0 %v6809_v16 }
 0x1a6   :  { %v2231_v53 = vpop.f32.mrf.mxu1  ;;  %v2119_v45 = vadd.f32 %v2118_v41, %v6772_v63  ;;  %3667 = vmatpush2.bf16.msra.mxu0 %v5610_v14  ;;  %3670 = vmatprep.mubr.bf16.mxu0 %v6604_v56 }
 0x1a7   :  { %v2120_v18 = vpop.f32.mrf.mxu0  ;;  %3668 = vmatprep.subr.bf16.mxu0 %v5615_v44 }
 0x1a8   :  { %v2233_v24 = vpop.f32.mrf.mxu1  ;;  %v6825_v30 = vadd.f32 %v2231_v53, %v2119_v45  ;;  %v2121_v32 = vadd.f32 %v2120_v18, %v6785_v49 }
 0x1a9   :  { %v6828_v60 = vpop.f32.mrf.mxu0 }
 0x1aa   :  { %v6830_v0 = vpop.f32.mrf.mxu1  ;;  %v6832_v52 = vadd.f32 %v2233_v24, %v2121_v32  ;;  %3669 = vmatpush2.bf16.msra.mxu0 %v5613_v10 }
 0x1ab   :  { %v6834_v50 = vpop.f32.mrf.mxu0 }
 0x1ac   :  { %v6836_v56 = vpop.f32.mrf.mxu1 }
 0x1ad   :  { %v2128_v61 = vpop.f32.mrf.mxu0  ;;  %3671 = vmatmul.mubr.bf16.vlgmr.msra.gmra.mxu0 %v6611_v34 }
 0x1ae   :  { %v2241_v7 = vpop.f32.mrf.mxu1  ;;  %v2129_v21 = vadd.f32 %v2128_v61, %v6772_v63  ;;  %3680 = vmatprep.mubr.bf16.mxu0 %v6633_v58 }
 0x1af   :  { %v2130_v59 = vpop.f32.mrf.mxu0 }
 0x1b0   :  { %v2243_v55 = vpop.f32.mrf.mxu1  ;;  %v6841_v38 = vadd.f32 %v2241_v7, %v2129_v21  ;;  %v2131_v12 = vadd.f32 %v2130_v59, %v6785_v49 }
 0x1b1   :  { %v6844_v35 = vpop.f32.mrf.mxu0 }
 0x1b2   :  { %v6846_v25 = vpop.f32.mrf.mxu1  ;;  %v6848_v51 = vadd.f32 %v2243_v55, %v2131_v12 }
 0x1b3   :  { %v6850_v13 = vpop.f32.mrf.mxu0 }
 0x1b4   :  { %v6852_v9 = vpop.f32.mrf.mxu1 }
 0x1b5   :  { %v2138_v34 = vpop.f32.mrf.mxu0  ;;  %3681 = vmatmul.mubr.bf16.gmra.mxu0 %v6638_v40 }
 0x1b6   :  { %v2251_v5 = vpop.f32.mrf.mxu1  ;;  %v2139_v58 = vadd.f32 %v2138_v34, %v6772_v63  ;;  %3690 = vmatprep.mubr.bf16.mxu0 %v6659_v2 }
 0x1b7   :  { %v2140_v54 = vpop.f32.mrf.mxu0 }
 0x1b8   :  { %v2253_v43 = vpop.f32.mrf.mxu1  ;;  %v6857_v17 = vadd.f32 %v2251_v5, %v2139_v58  ;;  %v2141_v46 = vadd.f32 %v2140_v54, %v6785_v49 }
 0x1b9   :  { %v6860_v6 = vpop.f32.mrf.mxu0 }
 0x1ba   :  { %v6862_v23 = vpop.f32.mrf.mxu1  ;;  %v6864_v26 = vadd.f32 %v2253_v43, %v2141_v46 }
 0x1bb   :  { %v6866_v28 = vpop.f32.mrf.mxu0 }
 0x1bc   :  { %v6868_v1 = vpop.f32.mrf.mxu1 }
 0x1bd   :  { %v2148_v40 = vpop.f32.mrf.mxu0  ;;  %3691 = vmatmul.mubr.bf16.gmra.mxu0 %v6664_v8 }
 0x1be   :  { %v2261_v11 = vpop.f32.mrf.mxu1  ;;  %v2149_v2 = vadd.f32 %v2148_v40, %v6772_v63  ;;  %3700 = vmatprep.mubr.bf16.mxu0 %v6685_v3 }
 0x1bf   :  { %v2150_v14 = vpop.f32.mrf.mxu0 }
 0x1c0   :  { %v2263_v44 = vpop.f32.mrf.mxu1  ;;  %v6873_v41 = vadd.f32 %v2261_v11, %v2149_v2  ;;  %v2151_v53 = vadd.f32 %v2150_v14, %v6785_v49 }
 0x1c1   :  { %v6876_v45 = vpop.f32.mrf.mxu0 }
 0x1c2   :  { %v6878_v10 = vpop.f32.mrf.mxu1  ;;  %v6880_v18 = vadd.f32 %v2263_v44, %v2151_v53 }
 0x1c3   :  { %v6882_v24 = vpop.f32.mrf.mxu0 }
 0x1c4   :  { %v6884_v32 = vpop.f32.mrf.mxu1 }
 0x1c5   :  { %v2158_v8 = vpop.f32.mrf.mxu0  ;;  %3701 = vmatmul.mubr.bf16.gmra.mxu0 %v6690_v48 }
 0x1c6   :  { %v2271_v61 = vpop.f32.mrf.mxu1  ;;  %v2159_v3 = vadd.f32 %v2158_v8, %v6772_v63  ;;  %3710 = vmatprep.mubr.bf16.mxu0 %v6711_v47 }
 0x1c7   :  { %v2160_v7 = vpop.f32.mrf.mxu0 }
 0x1c8   :  { %v2273_v21 = vpop.f32.mrf.mxu1  ;;  %v6889_v59 = vadd.f32 %v2271_v61, %v2159_v3  ;;  %v2161_v55 = vadd.f32 %v2160_v7, %v6785_v49 }
 0x1c9   :  { %v6892_v12 = vpop.f32.mrf.mxu0 }
 0x1ca   :  { %v6894_v34 = vpop.f32.mrf.mxu1  ;;  %v6896_v5 = vadd.f32 %v2273_v21, %v2161_v55 }
 0x1cb   :  { %v6898_v58 = vpop.f32.mrf.mxu0 }
 0x1cc   :  { %v6900_v54 = vpop.f32.mrf.mxu1 }
 0x1cd   :  { %v2168_v48 = vpop.f32.mrf.mxu0  ;;  %3711 = vmatmul.mubr.bf16.gmra.mxu0 %v6716_v29 }
 0x1ce   :  { %v2281_v43 = vpop.f32.mrf.mxu1  ;;  %v2169_v47 = vadd.f32 %v2168_v48, %v6772_v63  ;;  %3720 = vmatprep.mubr.bf16.mxu0 %v6737_v62 }
 0x1cf   :  { %v2170_v46 = vpop.f32.mrf.mxu0 }
 0x1d0   :  { %v2283_v40 = vpop.f32.mrf.mxu1  ;;  %v6905_v11 = vadd.f32 %v2281_v43, %v2169_v47  ;;  %v2171_v2 = vadd.f32 %v2170_v46, %v6785_v49 }
 0x1d1   :  { %v6908_v14 = vpop.f32.mrf.mxu0 }
 0x1d2   :  { %v6910_v44 = vpop.f32.mrf.mxu1  ;;  %v6912_v53 = vadd.f32 %v2283_v40, %v2171_v2 }
 0x1d3   :  { %v6914_v8 = vpop.f32.mrf.mxu0 }
 0x1d4   :  { %v6916_v61 = vpop.f32.mrf.mxu1 }
 0x1d5   :  { %v2178_v29 = vpop.f32.mrf.mxu0  ;;  %3721 = vmatmul.mubr.bf16.gmra.mxu0 %v6742_v22  ;;  %v2113_v22 = vadd.f32 %v6798_v19, %v6772_v63 }
 0x1d6   :  { %v2291_v3 = vpop.f32.mrf.mxu1  ;;  %v2179_v62 = vadd.f32 %v2178_v29, %v6772_v63  ;;  %3730 = vmatprep.mubr.bf16.mxu0 %v6765_v37 }
 0x1d7   :  { %v2180_v7 = vpop.f32.mrf.mxu0 }
 0x1d8   :  { %v2293_v21 = vpop.f32.mrf.mxu1  ;;  %v6921_v55 = vadd.f32 %v2291_v3, %v2179_v62  ;;  %v2181_v48 = vadd.f32 %v2180_v7, %v6785_v49  ;;  %v2115_v3 = vadd.f32 %v6811_v57, %v6785_v49  ;;  %v2123_v57 = vadd.f32 %v6828_v60, %v6772_v63 }
 0x1d9   :  { %v6924_v43 = vpop.f32.mrf.mxu0 }
 0x1da   :  { %7485 = vst [vmem:[#allocation10_spill] sm:$0xff] %v6921_v55  ;;  %7486 = vst [vmem:[#allocation11_spill] sm:$0xff] %v6924_v43  ;;  %v6926_v47 = vpop.f32.mrf.mxu1  ;;  %v6928_v46 = vadd.f32 %v2293_v21, %v2181_v48  ;;  %v2226_v21 = vadd.f32 %v6800_v15, %v2113_v22  ;;  %v2228_v19 = vadd.f32 %v6813_v33, %v2115_v3 }
 0x1db   :  { %7487 = vst [vmem:[#allocation9_spill] sm:$0xff] %v6926_v47  ;;  %v6930_v40 = vpop.f32.mrf.mxu0 }
 0x1dc   :  { %7488 = vst [vmem:[#allocation12_spill] sm:$0xff] %v6928_v46  ;;  %7489 = vst [vmem:[#allocation13_spill] sm:$0xff] %v6930_v40  ;;  %v6932_v2 = vpop.f32.mrf.mxu1 }
 0x1dd   :  { %7490 = vst [vmem:[#allocation14_spill] sm:$0xff] %v6932_v2  ;;  %v2334_v37 = vpop.f32.mrf.mxu0  ;;  %3731 = vmatmul.mubr.bf16.gmra.mxu0 %v6777_v20 }
 0x1de   :  { %v2447_v29 = vpop.f32.mrf.mxu1  ;;  %3740 = vmatprep.mubr.bf16.mxu0 %v6804_v31  ;;  %v2335_v27 = vadd.f32 %v2334_v37, %v6795_v4  ;;  %v2125_v4 = vadd.f32 %v6834_v50, %v6785_v49  ;;  %v2236_v37 = vadd.f32 %v6830_v0, %v2123_v57  ;;  %v5664_v50 = vld [vmem:[%s7463_s3 + $0x2e8] ss:$16 sps:$4 sm:$0xff]  }
 0x1df   :  { %v2336_v62 = vpop.f32.mrf.mxu0 }
 0x1e0   :  { %v2449_v7 = vpop.f32.mrf.mxu1  ;;  %v2337_v48 = vadd.f32 %v2336_v62, %v6802_v36  ;;  %v2448_v40 = vadd.f32 %v2447_v29, %v2335_v27 }
 0x1e1   :  { %v2338_v42 = vpop.f32.mrf.mxu0 }
 0x1e2   :  { %v2451_v39 = vpop.f32.mrf.mxu1  ;;  %v2339_v2 = vadd.f32 %v2338_v42, %v2226_v21  ;;  %v2450_v46 = vadd.f32 %v2449_v7, %v2337_v48 }
 0x1e3   :  { %v2340_v55 = vpop.f32.mrf.mxu0 }
 0x1e4   :  { %v2453_v20 = vpop.f32.mrf.mxu1  ;;  %v2452_v31 = vadd.f32 %v2451_v39, %v2339_v2  ;;  %v2341_v47 = vadd.f32 %v2340_v55, %v2228_v19  ;;  %v2529_v3 = vmax.f32 %v2450_v46, 0.0  ;;  %v2528_v39 = vmax.f32 %v2448_v40, 0.0 }
 0x1e5   :  { %v2344_v43 = vpop.f32.mrf.mxu0  ;;  %3741 = vmatmul.mubr.bf16.gmra.mxu0 %v6809_v16  ;;  %v2238_v16 = vadd.f32 %v6836_v56, %v2125_v4 }
 0x1e6   :  { %v2457_v15 = vpop.f32.mrf.mxu1  ;;  %v2454_v36 = vadd.f32 %v2453_v20, %v2341_v47  ;;  %v2532_v22 = vmax.f32 %v2452_v31, 0.0  ;;  %v2345_v27 = vadd.f32 %v2344_v43, %v6825_v30  ;;  %v2133_v30 = vadd.f32 %v6844_v35, %v6772_v63  ;;  %v5667_v31 = vld [vmem:[%s7463_s3 + $0x2c8] ss:$16 sps:$4 sm:$0xff]  }
 0x1e7   :  { %v2346_v33 = vpop.f32.mrf.mxu0  ;;  %v2135_v20 = vadd.f32 %v6850_v13, %v6785_v49 }
 0x1e8   :  { %v2459_v42 = vpop.f32.mrf.mxu1  ;;  %v2533_v62 = vmax.f32 %v2454_v36, 0.0  ;;  %v2347_v60 = vadd.f32 %v2346_v33, %v6832_v52  ;;  %v6958_v47 = vpack.c.bf16 %v2532_v22, %v2528_v39  ;;  %v5669_v52 = vld [vmem:[%s7463_s3 + $0x2cc] ss:$16 sps:$4 sm:$0xff]   ;;  %v2458_v21 = vadd.f32 %v2457_v15, %v2345_v27 }
 0x1e9   :  { %v2348_v55 = vpop.f32.mrf.mxu0  ;;  %v5672_v15 = vld [vmem:[%s7463_s3 + $0x2ac] ss:$16 sps:$4 sm:$0xff]   ;;  %v2246_v22 = vadd.f32 %v6846_v25, %v2133_v30  ;;  %v2248_v39 = vadd.f32 %v6852_v9, %v2135_v20 }
 0x1ea   :  { %v2461_v2 = vpop.f32.mrf.mxu1  ;;  %v2349_v29 = vadd.f32 %v2348_v55, %v2236_v37  ;;  %v6953_v7 = vpack.c.bf16 %v2533_v62, %v2529_v3  ;;  %v2460_v43 = vadd.f32 %v2459_v42, %v2347_v60  ;;  %v2536_v37 = vmax.f32 %v2458_v21, 0.0 }
 0x1eb   :  { %v2350_v0 = vpop.f32.mrf.mxu0 }
 0x1ec   :  { %v2463_v46 = vpop.f32.mrf.mxu1  ;;  %v2462_v56 = vadd.f32 %v2461_v2, %v2349_v29  ;;  %v2351_v40 = vadd.f32 %v2350_v0, %v2238_v16  ;;  %3557 = vmatprep.mubr.bf16.mxu1 %v6953_v7  ;;  %v2537_v33 = vmax.f32 %v2460_v43, 0.0  ;;  %v5670_v2 = vld [vmem:[%s7463_s3 + $0x2a8] ss:$16 sps:$4 sm:$0xff]   ;;  %v2145_v43 = vadd.f32 %v6866_v28, %v6785_v49 }
 0x1ed   :  { %v2354_v48 = vpop.f32.mrf.mxu0  ;;  %3558 = vmatmul.mubr.bf16.vlgmr.msra.gmra.mxu1 %v6958_v47 }
 0x1ee   :  { %v2467_v19 = vpop.f32.mrf.mxu1  ;;  %v2464_v57 = vadd.f32 %v2463_v46, %v2351_v40  ;;  %3752 = vmatpush1.bf16.msra.mxu1 %v5664_v50  ;;  %v2540_v35 = vmax.f32 %v2462_v56, 0.0  ;;  %v2355_v3 = vadd.f32 %v2354_v48, %v6841_v38  ;;  %v5675_v38 = vld [vmem:[%s7463_s3 + $0x28c] ss:$16 sps:$4 sm:$0xff]   ;;  %v5673_v40 = vld [vmem:[%s7463_s3 + $0x288] ss:$16 sps:$4 sm:$0xff]  }
 0x1ef   :  { %v2356_v4 = vpop.f32.mrf.mxu0  ;;  %3753 = vmatprep.subr.bf16.mxu1 %v5669_v52 }
 0x1f0   :  { %v2469_v36 = vpop.f32.mrf.mxu1  ;;  %v2541_v42 = vmax.f32 %v2464_v57, 0.0  ;;  %v2357_v13 = vadd.f32 %v2356_v4, %v6848_v51  ;;  %v6984_v25 = vpack.c.bf16 %v2540_v35, %v2536_v37  ;;  %v2143_v51 = vadd.f32 %v6860_v6, %v6772_v63 }
 0x1f1   :  { %v2358_v62 = vpop.f32.mrf.mxu0  ;;  %v2468_v46 = vadd.f32 %v2467_v19, %v2355_v3  ;;  %v5678_v19 = vld [vmem:[%s7463_s3 + $0x26c] ss:$16 sps:$4 sm:$0xff]  }
 0x1f2   :  { %v2471_v60 = vpop.f32.mrf.mxu1  ;;  %v2359_v27 = vadd.f32 %v2358_v62, %v2246_v22  ;;  %3754 = vmatpush1.bf16.msra.mxu1 %v5667_v31  ;;  %v6979_v55 = vpack.c.bf16 %v2541_v42, %v2537_v33  ;;  %v2470_v9 = vadd.f32 %v2469_v36, %v2357_v13  ;;  %v2256_v20 = vadd.f32 %v6862_v23, %v2143_v51  ;;  %v5676_v13 = vld [vmem:[%s7463_s3 + $0x268] ss:$16 sps:$4 sm:$0xff]  }
 0x1f3   :  { %v2360_v16 = vpop.f32.mrf.mxu0  ;;  %3755 = vmatprep.subr.bf16.mxu1 %v5672_v15  ;;  %v2544_v35 = vmax.f32 %v2468_v46, 0.0  ;;  %v2258_v22 = vadd.f32 %v6868_v1, %v2145_v43 }
 0x1f4   :  { %v2473_v29 = vpop.f32.mrf.mxu1  ;;  %v2472_v50 = vadd.f32 %v2471_v60, %v2359_v27  ;;  %v2361_v0 = vadd.f32 %v2360_v16, %v2248_v39  ;;  %3567 = vmatprep.mubr.bf16.mxu1 %v6979_v55  ;;  %v2545_v57 = vmax.f32 %v2470_v9, 0.0  ;;  %v2155_v16 = vadd.f32 %v6882_v24, %v6785_v49 }
 0x1f5   :  { %v2364_v52 = vpop.f32.mrf.mxu0  ;;  %3568 = vmatmul.mubr.bf16.gmra.mxu1 %v6984_v25 }
 0x1f6   :  { %v2477_v30 = vpop.f32.mrf.mxu1  ;;  %v2474_v56 = vadd.f32 %v2473_v29, %v2361_v0  ;;  %3756 = vmatpush1.bf16.msra.mxu1 %v5670_v2  ;;  %v2548_v6 = vmax.f32 %v2472_v50, 0.0  ;;  %v2365_v4 = vadd.f32 %v2364_v52, %v6857_v17  ;;  %v5681_v17 = vld [vmem:[%s7463_s3 + $0x24c] ss:$16 sps:$4 sm:$0xff]  }
 0x1f7   :  { %v2366_v21 = vpop.f32.mrf.mxu0  ;;  %3757 = vmatprep.subr.bf16.mxu1 %v5675_v38  ;;  %v5679_v38 = vld [vmem:[%s7463_s3 + $0x248] ss:$16 sps:$4 sm:$0xff]   ;;  %v5684_v50 = vld [vmem:[%s7463_s3 + $0x22c] ss:$16 sps:$4 sm:$0xff]  }
 0x1f8   :  { %v2479_v48 = vpop.f32.mrf.mxu1  ;;  %v2549_v31 = vmax.f32 %v2474_v56, 0.0  ;;  %v2367_v28 = vadd.f32 %v2366_v21, %v6864_v26  ;;  %v7010_v23 = vpack.c.bf16 %v2548_v6, %v2544_v35  ;;  %v2153_v26 = vadd.f32 %v6876_v45, %v6772_v63 }
 0x1f9   :  { %v2368_v36 = vpop.f32.mrf.mxu0  ;;  %v2478_v39 = vadd.f32 %v2477_v30, %v2365_v4  ;;  %v2268_v6 = vadd.f32 %v6884_v32, %v2155_v16 }
 0x1fa   :  { %v2481_v15 = vpop.f32.mrf.mxu1  ;;  %v2369_v33 = vadd.f32 %v2368_v36, %v2256_v20  ;;  %3758 = vmatpush1.bf16.msra.mxu1 %v5673_v40  ;;  %v7005_v42 = vpack.c.bf16 %v2549_v31, %v2545_v57  ;;  %v2480_v1 = vadd.f32 %v2479_v48, %v2367_v28  ;;  %v2266_v0 = vadd.f32 %v6878_v10, %v2153_v26 }
 0x1fb   :  { %v2370_v37 = vpop.f32.mrf.mxu0  ;;  %3759 = vmatprep.subr.bf16.mxu1 %v5678_v19  ;;  %v2552_v30 = vmax.f32 %v2478_v39, 0.0  ;;  %v5682_v19 = vld [vmem:[%s7463_s3 + $0x228] ss:$16 sps:$4 sm:$0xff]  }
 0x1fc   :  { %v2483_v3 = vpop.f32.mrf.mxu1  ;;  %v2482_v62 = vadd.f32 %v2481_v15, %v2369_v33  ;;  %v2371_v60 = vadd.f32 %v2370_v37, %v2258_v22  ;;  %3577 = vmatprep.mubr.bf16.mxu1 %v7005_v42  ;;  %v2553_v46 = vmax.f32 %v2480_v1, 0.0  ;;  %v2165_v15 = vadd.f32 %v6898_v58, %v6785_v49  ;;  %v5685_v33 = vld [vmem:[%s7463_s3 + $0x208] ss:$16 sps:$4 sm:$0xff]  }
 0x1fd   :  { %v2374_v27 = vpop.f32.mrf.mxu0  ;;  %3578 = vmatmul.mubr.bf16.gmra.mxu1 %v7010_v23 }
 0x1fe   :  { %v2487_v2 = vpop.f32.mrf.mxu1  ;;  %v2484_v29 = vadd.f32 %v2483_v3, %v2371_v60  ;;  %3760 = vmatpush1.bf16.msra.mxu1 %v5676_v13  ;;  %v2556_v45 = vmax.f32 %v2482_v62, 0.0  ;;  %v2375_v43 = vadd.f32 %v2374_v27, %v6873_v41  ;;  %v5687_v41 = vld [vmem:[%s7463_s3 + $0x20c] ss:$16 sps:$4 sm:$0xff]  }
 0x1ff   :  { %v2376_v51 = vpop.f32.mrf.mxu0  ;;  %3761 = vmatprep.subr.bf16.mxu1 %v5681_v17  ;;  %v5690_v3 = vld [vmem:[%s7463_s3 + $0x3ec] ss:$16 sps:$4 sm:$0xff]  }
 0x200   :  { %v2489_v9 = vpop.f32.mrf.mxu1  ;;  %v2557_v52 = vmax.f32 %v2484_v29, 0.0  ;;  %v2377_v24 = vadd.f32 %v2376_v51, %v6880_v18  ;;  %v7036_v10 = vpack.c.bf16 %v2556_v45, %v2552_v30  ;;  %v2163_v18 = vadd.f32 %v6892_v12, %v6772_v63 }
 0x201   :  { %v2378_v56 = vpop.f32.mrf.mxu0  ;;  %v2488_v35 = vadd.f32 %v2487_v2, %v2375_v43  ;;  %v2278_v2 = vadd.f32 %v6900_v54, %v2165_v15  ;;  %v5691_v43 = vld [vmem:[%s7463_s3 + $0x3c8] ss:$16 sps:$4 sm:$0xff]  }
 0x202   :  { %v2491_v40 = vpop.f32.mrf.mxu1  ;;  %v2379_v21 = vadd.f32 %v2378_v56, %v2266_v0  ;;  %3762 = vmatpush1.bf16.msra.mxu1 %v5679_v38  ;;  %v7031_v48 = vpack.c.bf16 %v2557_v52, %v2553_v46  ;;  %v2490_v32 = vadd.f32 %v2489_v9, %v2377_v24  ;;  %v2276_v17 = vadd.f32 %v6894_v34, %v2163_v18  ;;  %v5688_v38 = vld [vmem:[%s7463_s3 + $0x3e8] ss:$16 sps:$4 sm:$0xff]  }
 0x203   :  { %v2380_v20 = vpop.f32.mrf.mxu0  ;;  %3763 = vmatprep.subr.bf16.mxu1 %v5684_v50  ;;  %v2560_v62 = vmax.f32 %v2488_v35, 0.0  ;;  %v2175_v24 = vadd.f32 %v6914_v8, %v6785_v49 }
 0x204   :  { %v2493_v57 = vpop.f32.mrf.mxu1  ;;  %v2492_v31 = vadd.f32 %v2491_v40, %v2379_v21  ;;  %v2381_v28 = vadd.f32 %v2380_v20, %v2268_v6  ;;  %3587 = vmatprep.mubr.bf16.mxu1 %v7031_v48  ;;  %v2561_v26 = vmax.f32 %v2490_v32, 0.0  ;;  %v5696_v6 = vld [vmem:[%s7463_s3 + $0x3ac] ss:$16 sps:$4 sm:$0xff]  }
 0x205   :  { %v2384_v4 = vpop.f32.mrf.mxu0  ;;  %3588 = vmatmul.mubr.bf16.gmra.mxu1 %v7036_v10 }
 0x206   :  { %v2497_v36 = vpop.f32.mrf.mxu1  ;;  %v2494_v22 = vadd.f32 %v2493_v57, %v2381_v28  ;;  %3764 = vmatpush1.bf16.msra.mxu1 %v5682_v19  ;;  %v2564_v12 = vmax.f32 %v2492_v31, 0.0  ;;  %v2385_v60 = vadd.f32 %v2384_v4, %v6889_v59  ;;  %v5693_v59 = vld [vmem:[%s7463_s3 + $0x3cc] ss:$16 sps:$4 sm:$0xff]   ;;  %v2288_v31 = vadd.f32 %v6916_v61, %v2175_v24  ;;  %v5694_v4 = vld [vmem:[%s7463_s3 + $0x3a8] ss:$16 sps:$4 sm:$0xff]  }
 0x207   :  { %v2386_v13 = vpop.f32.mrf.mxu0  ;;  %3765 = vmatprep.subr.bf16.mxu1 %v5687_v41 }
 0x208   :  { %v2499_v37 = vpop.f32.mrf.mxu1  ;;  %v2565_v1 = vmax.f32 %v2494_v22, 0.0  ;;  %v2387_v58 = vadd.f32 %v2386_v13, %v6896_v5  ;;  %v7062_v34 = vpack.c.bf16 %v2564_v12, %v2560_v62  ;;  %v2173_v5 = vadd.f32 %v6908_v14, %v6772_v63 }
 0x209   :  { %v2388_v39 = vpop.f32.mrf.mxu0  ;;  %v2498_v0 = vadd.f32 %v2497_v36, %v2385_v60 }
 0x20a   :  { %v2501_v27 = vpop.f32.mrf.mxu1  ;;  %v7057_v16 = vpack.c.bf16 %v2565_v1, %v2561_v26  ;;  %v2389_v29 = vadd.f32 %v2388_v39, %v2276_v17  ;;  %3766 = vmatpush1.bf16.msra.mxu1 %v5685_v33  ;;  %v2500_v54 = vadd.f32 %v2499_v37, %v2387_v58  ;;  %v2286_v21 = vadd.f32 %v6910_v44, %v2173_v5  ;;  %v7492_v17 = vld [vmem:[#allocation13_spill] sm:$0xff] }
 0x20b   :  { %v2390_v45 = vpop.f32.mrf.mxu0  ;;  %3767 = vmatprep.subr.bf16.mxu1 %v5690_v3  ;;  %v2568_v57 = vmax.f32 %v2498_v0, 0.0  ;;  %v2185_v26 = vadd.f32 %v7492_v17, %v6785_v49  ;;  %v5697_v58 = vld [vmem:[%s7463_s3 + $0x388] ss:$16 sps:$4 sm:$0xff]   ;;  %v5702_v39 = vld [vmem:[%s7463_s3 + $0x36c] ss:$16 sps:$4 sm:$0xff]   ;;  %v7496_v0 = vld [vmem:[#allocation14_spill] sm:$0xff] }
 0x20c   :  { %v2503_v51 = vpop.f32.mrf.mxu1  ;;  %v2502_v9 = vadd.f32 %v2501_v27, %v2389_v29  ;;  %v2391_v50 = vadd.f32 %v2390_v45, %v2278_v2  ;;  %3597 = vmatprep.mubr.bf16.mxu1 %v7057_v16  ;;  %v2569_v19 = vmax.f32 %v2500_v54, 0.0  ;;  %v7493_v27 = vld [vmem:[#allocation9_spill] sm:$0xff]  ;;  %v7494_v45 = vld [vmem:[#allocation12_spill] sm:$0xff]  ;;  %v5720_v17 = vld [vmem:[#allocation4 + $0x58] sm:$0xff]  }
 0x20d   :  { %v2394_v46 = vpop.f32.mrf.mxu0  ;;  %3598 = vmatmul.mubr.bf16.gmra.mxu1 %v7062_v34 }
 0x20e   :  { %v2507_v52 = vpop.f32.mrf.mxu1  ;;  %v2504_v30 = vadd.f32 %v2503_v51, %v2391_v50  ;;  %3768 = vmatpush2.bf16.msra.mxu1 %v5688_v38  ;;  %v2572_v14 = vmax.f32 %v2502_v9, 0.0  ;;  %v2395_v41 = vadd.f32 %v2394_v46, %v6905_v11  ;;  %v5699_v11 = vld [vmem:[%s7463_s3 + $0x38c] ss:$16 sps:$4 sm:$0xff]   ;;  %v2298_v46 = vadd.f32 %v7496_v0, %v2185_v26 }
 0x20f   :  { %v2396_v56 = vpop.f32.mrf.mxu0  ;;  %3769 = vmatprep.subr.bf16.mxu1 %v5693_v59  ;;  %v7495_v59 = vld [vmem:[#allocation10_spill] sm:$0xff]  ;;  %v5712_v50 = vld [vmem:[#allocation4 + $0x78] sm:$0xff]  }
 0x210   :  { %v2509_v40 = vpop.f32.mrf.mxu1  ;;  %v2573_v20 = vmax.f32 %v2504_v30, 0.0  ;;  %v2397_v8 = vadd.f32 %v2396_v56, %v6912_v53  ;;  %v7088_v44 = vpack.c.bf16 %v2572_v14, %v2568_v57  ;;  %v7491_v53 = vld [vmem:[#allocation11_spill] sm:$0xff]  ;;  %v2508_v13 = vadd.f32 %v2507_v52, %v2395_v41  ;;  %5011 = vmatprep.subr.bf16.mxu0 %v5712_v50  ;;  %v5714_v57 = vld [vmem:[#allocation4 + $0x70] sm:$0xff]  }
 0x211   :  { %v2398_v18 = vpop.f32.mrf.mxu0  ;;  %v2183_v61 = vadd.f32 %v7491_v53, %v6772_v63  ;;  %v5700_v30 = vld [vmem:[%s7463_s3 + $0x368] ss:$16 sps:$4 sm:$0xff]  }
 0x212   :  { %v2511_v32 = vpop.f32.mrf.mxu1  ;;  %v7083_v28 = vpack.c.bf16 %v2573_v20, %v2569_v19  ;;  %v2399_v35 = vadd.f32 %v2398_v18, %v2286_v21  ;;  %3770 = vmatpush2.bf16.msra.mxu1 %v5691_v43  ;;  %v2510_v22 = vadd.f32 %v2509_v40, %v2397_v8  ;;  %v2576_v51 = vmax.f32 %v2508_v13, 0.0  ;;  %v5713_v43 = vld [vmem:[#allocation4 + $0x38] sm:$0xff]   ;;  %v5718_v13 = vld [vmem:[#allocation4 + $0x60] sm:$0xff]  }
 0x213   :  { %v2400_v36 = vpop.f32.mrf.mxu0  ;;  %3771 = vmatprep.subr.bf16.mxu1 %v5696_v6  ;;  %v2296_v2 = vadd.f32 %v7493_v27, %v2183_v61  ;;  %v5705_v40 = vld [vmem:[%s7463_s3 + $0x34c] ss:$16 sps:$4 sm:$0xff]   ;;  %5012 = vmatpush3.bf16.msra.mxu0 %v5713_v43  ;;  %v5703_v18 = vld [vmem:[%s7463_s3 + $0x348] ss:$16 sps:$4 sm:$0xff]   ;;  %v5726_v27 = vld [vmem:[#allocation4 + $0x40] sm:$0xff]  }
 0x214   :  { %v2513_v15 = vpop.f32.mrf.mxu1  ;;  %v2512_v33 = vadd.f32 %v2511_v32, %v2399_v35  ;;  %v2401_v12 = vadd.f32 %v2400_v36, %v2288_v31  ;;  %3607 = vmatprep.mubr.bf16.mxu1 %v7083_v28  ;;  %v2577_v29 = vmax.f32 %v2510_v22, 0.0  ;;  %v5715_v32 = vld [vmem:[#allocation4 + $0x30] sm:$0xff]   ;;  %v5708_v35 = vld [vmem:[%s7463_s3 + $0x32c] ss:$16 sps:$4 sm:$0xff]   ;;  %5013 = vmatprep.subr.bf16.mxu0 %v5714_v57  ;;  %v5706_v61 = vld [vmem:[%s7463_s3 + $0x328] ss:$16 sps:$4 sm:$0xff]  }
 0x215   :  { %v2404_v37 = vpop.f32.mrf.mxu0  ;;  %3608 = vmatmul.mubr.bf16.gmra.mxu1 %v7088_v44  ;;  %v5717_v22 = vld [vmem:[#allocation4 + $0x28] sm:$0xff]   ;;  %v5721_v26 = vld [vmem:[#allocation4 + $0x18] sm:$0xff]  }
 0x216   :  { %v2517_v3 = vpop.f32.mrf.mxu1  ;;  %v2514_v1 = vadd.f32 %v2513_v15, %v2401_v12  ;;  %3772 = vmatpush2.bf16.msra.mxu1 %v5694_v4  ;;  %v2580_v63 = vmax.f32 %v2512_v33, 0.0  ;;  %v2405_v5 = vadd.f32 %v2404_v37, %v7495_v59  ;;  %v5711_v12 = vld [vmem:[%s7463_s3 + $0x30c] ss:$16 sps:$4 sm:$0xff]   ;;  %v5709_v37 = vld [vmem:[%s7463_s3 + $0x308] ss:$16 sps:$4 sm:$0xff]  }
 0x217   :  { %v2406_v62 = vpop.f32.mrf.mxu0  ;;  %3773 = vmatprep.subr.bf16.mxu1 %v5699_v11  ;;  %5014 = vmatpush3.bf16.msra.mxu0 %v5715_v32  ;;  %v5716_v11 = vld [vmem:[#allocation4 + $0x68] sm:$0xff]   ;;  %v5736_v50 = vld [vmem:[#allocation4 + $0xd8] sm:$0xff]  }
 0x218   :  { %v2519_v60 = vpop.f32.mrf.mxu1  ;;  %v2581_v38 = vmax.f32 %v2514_v1, 0.0  ;;  %v2407_v49 = vadd.f32 %v2406_v62, %v7494_v45  ;;  %v7114_v14 = vpack.c.bf16 %v2580_v63, %v2576_v51  ;;  %v2518_v20 = vadd.f32 %v2517_v3, %v2405_v5  ;;  %5015 = vmatprep.subr.bf16.mxu0 %v5716_v11  ;;  %v5719_v3 = vld [vmem:[#allocation4 + $0x20] sm:$0xff]   ;;  %v5724_v62 = vld [vmem:[#allocation4 + $0x48] sm:$0xff]   ;;  %v5729_v45 = vld [vmem:[#allocation4 + $0xb8] sm:$0xff]  }
 0x219   :  { %v2408_v54 = vpop.f32.mrf.mxu0  ;;  %v5731_v51 = vld [vmem:[#allocation4 + $0xb0] sm:$0xff]   ;;  %v5732_v59 = vld [vmem:[#allocation4 + $0xe8] sm:$0xff]   ;;  %v5737_v0 = vld [vmem:[#allocation4 + $0x98] sm:$0xff]  }
 0x21a   :  { %v2521_v9 = vpop.f32.mrf.mxu1  ;;  %v7109_v52 = vpack.c.bf16 %v2581_v38, %v2577_v29  ;;  %v2409_v24 = vadd.f32 %v2408_v54, %v2296_v2  ;;  %3774 = vmatpush2.bf16.msra.mxu1 %v5697_v58  ;;  %v2520_v6 = vadd.f32 %v2519_v60, %v2407_v49  ;;  %v2584_v15 = vmax.f32 %v2518_v20, 0.0  ;;  %v5722_v58 = vld [vmem:[#allocation4 + $0x50] sm:$0xff]   ;;  %v5725_v60 = vld [vmem:[#allocation4 + $0x8] sm:$0xff]   ;;  %v5728_v38 = vld [vmem:[#allocation4 + $0xf8] sm:$0xff]  }
 0x21b   :  { %v2410_v56 = vpop.f32.mrf.mxu0  ;;  %3775 = vmatprep.subr.bf16.mxu1 %v5702_v39  ;;  %5016 = vmatpush3.bf16.msra.mxu0 %v5717_v22  ;;  %v5730_v49 = vld [vmem:[#allocation4 + $0xf0] sm:$0xff]   ;;  %v5733_v5 = vld [vmem:[#allocation4 + $0xa8] sm:$0xff]   ;;  %v5734_v54 = vld [vmem:[#allocation4 + $0xe0] sm:$0xff]  }
 0x21c   :  { %v2522_v21 = vadd.f32 %v2521_v9, %v2409_v24  ;;  %v2411_v19 = vadd.f32 %v2410_v56, %v2298_v46  ;;  %3617 = vmatprep.mubr.bf16.mxu1 %v7109_v52  ;;  %v2523_v8 = vpop.f32.mrf.mxu1  ;;  %v2585_v4 = vmax.f32 %v2520_v6, 0.0  ;;  %5017 = vmatprep.subr.bf16.mxu0 %v5718_v13  ;;  %v5735_v9 = vld [vmem:[#allocation4 + $0xa0] sm:$0xff]   ;;  %v5739_v24 = vld [vmem:[#allocation4 + $0x90] sm:$0xff]   ;;  %v5741_v56 = vld [vmem:[#allocation4 + $0x88] sm:$0xff]  }
 0x21d   :  { %3618 = vmatmul.mubr.bf16.gmra.mxu1 %v7114_v14  ;;  %v5742_v6 = vld [vmem:[#allocation4 + $0xc0] sm:$0xff]  }
 0x21e   :  { %v2524_v41 = vadd.f32 %v2523_v8, %v2411_v19  ;;  %3776 = vmatpush2.bf16.msra.mxu1 %v5700_v30  ;;  %v2588_v31 = vmax.f32 %v2522_v21, 0.0  ;;  %v5743_v21 = vld [vmem:[#allocation4 + $0x80] sm:$0xff]  }
 0x21f   :  { %3777 = vmatprep.subr.bf16.mxu1 %v5705_v40  ;;  %5018 = vmatpush3.bf16.msra.mxu0 %v5719_v3  ;;  %v7497_v22 = vld [vmem:[#allocation8_spill] sm:$0xff] }
 0x220   :  { %v2589_v36 = vmax.f32 %v2524_v41, 0.0  ;;  %v7132_v33 = vpack.c.bf16 %v2588_v31, %v2584_v15  ;;  %5019 = vmatprep.subr.bf16.mxu0 %v5720_v17  ;;  %v7499_v13 = vsub.s32 0, %v7497_v22 }
 0x222   :  { %v7127_v53 = vpack.c.bf16 %v2589_v36, %v2585_v4  ;;  %3778 = vmatpush2.bf16.msra.mxu1 %v5703_v18 }
 0x223   :  { %3779 = vmatprep.subr.bf16.mxu1 %v5708_v35  ;;  %5020 = vmatpush3.bf16.msra.mxu0 %v5721_v26 }
 0x224   :  { %3627 = vmatprep.mubr.bf16.mxu1 %v7127_v53  ;;  %5021 = vmatprep.subr.bf16.mxu0 %v5722_v58 }
 0x225   :  { %3628 = vmatmul.mubr.bf16.gmra.mxu1 %v7132_v33 }
 0x226   :  { %3780 = vmatpush2.bf16.msra.mxu1 %v5706_v61  ;;  %3783 = vmatprep.mubr.bf16.mxu1 %v6953_v7  ;;  %v5723_v7 = vld [vmem:[#allocation4 + $0x10] sm:$0xff]  }
 0x227   :  { %3781 = vmatprep.subr.bf16.mxu1 %v5711_v12  ;;  %5022 = vmatpush3.bf16.msra.mxu0 %v5723_v7 }
 0x228   :  { %5023 = vmatprep.subr.bf16.mxu0 %v5724_v62 }
 0x22a   :  { %3782 = vmatpush2.bf16.msra.mxu1 %v5709_v37 }
 0x22b   :  { %5024 = vmatpush3.bf16.msra.mxu0 %v5725_v60  ;;  %5075 = vmatprep.subr.bf16.mxu1 %v5728_v38 }
 0x22c   :  { %5025 = vmatprep.subr.bf16.mxu0 %v5726_v27 }
 0x22d   :  { %v7143_v1 = vpop.f32.mrf.mxu0  ;;  %3784 = vmatmul.mubr.bf16.vlgmr.msra.gmra.mxu1 %v6958_v47  ;;  %v5727_v47 = vld [vmem:[#allocation4] sm:$0xff]  }
 0x22e   :  { %3793 = vmatprep.mubr.bf16.mxu1 %v6979_v55  ;;  %5076 = vmatpush3.bf16.msra.mxu1 %v5729_v45 }
 0x22f   :  { %v7147_v63 = vpop.f32.mrf.mxu0  ;;  %5026 = vmatpush3.bf16.msra.mxu0 %v5727_v47  ;;  %5077 = vmatprep.subr.bf16.mxu1 %v5730_v49 }
 0x231   :  { %v7149_v39 = vpop.f32.mrf.mxu0 }
 0x232   :  { %5078 = vmatpush3.bf16.msra.mxu1 %v5731_v51 }
 0x233   :  { %v7153_v2 = vpop.f32.mrf.mxu0  ;;  %5079 = vmatprep.subr.bf16.mxu1 %v5732_v59 }
 0x235   :  { %3794 = vmatmul.mubr.bf16.gmra.mxu1 %v6984_v25  ;;  %v7155_v55 = vpop.f32.mrf.mxu0 }
 0x236   :  { %3803 = vmatprep.mubr.bf16.mxu1 %v7005_v42  ;;  %5080 = vmatpush3.bf16.msra.mxu1 %v5733_v5 }
 0x237   :  { %v7159_v29 = vpop.f32.mrf.mxu0  ;;  %5081 = vmatprep.subr.bf16.mxu1 %v5734_v54 }
 0x239   :  { %v7161_v25 = vpop.f32.mrf.mxu0 }
 0x23a   :  { %5082 = vmatpush3.bf16.msra.mxu1 %v5735_v9 }
 0x23b   :  { %v7165_v42 = vpop.f32.mrf.mxu0  ;;  %5083 = vmatprep.subr.bf16.mxu1 %v5736_v50 }
 0x23d   :  { %3804 = vmatmul.mubr.bf16.gmra.mxu1 %v7010_v23  ;;  %v7167_v23 = vpop.f32.mrf.mxu0 }
 0x23e   :  { %3813 = vmatprep.mubr.bf16.mxu1 %v7031_v48  ;;  %5084 = vmatpush3.bf16.msra.mxu1 %v5737_v0 }
 0x23f   :  { %v7171_v48 = vpop.f32.mrf.mxu0 }
 0x245   :  { %3814 = vmatmul.mubr.bf16.gmra.mxu1 %v7036_v10  ;;  %v7173_v10 = vpop.f32.mrf.mxu0 }
 0x246   :  { %3823 = vmatprep.mubr.bf16.mxu1 %v7057_v16 }
 0x247   :  { %v7177_v16 = vpop.f32.mrf.mxu0 }
 0x24d   :  { %3824 = vmatmul.mubr.bf16.gmra.mxu1 %v7062_v34  ;;  %v7179_v34 = vpop.f32.mrf.mxu0 }
 0x24e   :  { %3833 = vmatprep.mubr.bf16.mxu1 %v7083_v28 }
 0x24f   :  { %v7183_v28 = vpop.f32.mrf.mxu0 }
 0x255   :  { %3834 = vmatmul.mubr.bf16.gmra.mxu1 %v7088_v44  ;;  %v7185_v44 = vpop.f32.mrf.mxu0 }
 0x256   :  { %3843 = vmatprep.mubr.bf16.mxu1 %v7109_v52  ;;  %v5738_v52 = vld [vmem:[#allocation4 + $0xd0] sm:$0xff]  }
 0x257   :  { %v7188_v46 = vpop.f32.mrf.mxu0  ;;  %5085 = vmatprep.subr.bf16.mxu1 %v5738_v52 }
 0x258   :  { %5086 = vmatpush3.bf16.msra.mxu1 %v5739_v24 }
 0x259   :  { %v7190_v30 = vpop.f32.mrf.mxu0 }
 0x25b   :  { %v7192_v43 = vpop.f32.mrf.mxu0 }
 0x25d   :  { %3844 = vmatmul.mubr.bf16.gmra.mxu1 %v7114_v14  ;;  %v5740_v14 = vld [vmem:[#allocation4 + $0xc8] sm:$0xff]   ;;  %v7194_v40 = vpop.f32.mrf.mxu0 }
 0x25e   :  { %3853 = vmatprep.mubr.bf16.mxu1 %v7127_v53  ;;  %5087 = vmatprep.subr.bf16.mxu1 %v5740_v14  ;;  %v7225_v53 = vld [vmem:[%s7464_s4] sm:$0xf] }
 0x25f   :  { %5088 = vmatpush3.bf16.msra.mxu1 %v5741_v56  ;;  %v7196_v19 = vpop.f32.mrf.mxu0  ;;  %v7237_v37 = vrot.slane %v7225_v53, %v7499_v13 }
 0x260   :  { %5089 = vmatprep.subr.bf16.mxu1 %v5742_v6 }
 0x261   :  { %v7198_v20 = vpop.f32.mrf.mxu0  ;;  %v3451_v7 = vadd.f32 %v7149_v39, %v7237_v37  ;;  %v3447_v62 = vadd.f32 %v7143_v1, %v7237_v37  ;;  %v3457_v24 = vadd.f32 %v7155_v55, %v7237_v37 }
 0x263   :  { %5090 = vmatpush3.bf16.msra.mxu1 %v5743_v21  ;;  %v7200_v8 = vpop.f32.mrf.mxu0 }
 0x265   :  { %3854 = vmatmul.mubr.bf16.gmra.mxu1 %v7132_v33  ;;  %v7202_v57 = vpop.f32.mrf.mxu0  ;;  %v7498_v33 = vsub.s32 1, %v7497_v22 }
 0x267   :  { %v7204_v41 = vpop.f32.mrf.mxu0  ;;  %v7232_v12 = vrot.slane %v7225_v53, %v7498_v33 }
 0x269   :  { %v7206_v18 = vpop.f32.mrf.mxu0  ;;  %v3449_v58 = vadd.f32 %v7147_v63, %v7232_v12  ;;  %v3453_v27 = vadd.f32 %v7153_v2, %v7232_v12  ;;  %v3459_v1 = vadd.f32 %v7159_v29, %v7232_v12  ;;  %v3461_v2 = vadd.f32 %v7161_v25, %v7237_v37 }
 0x26a   :  { %v3463_v6 = vadd.f32 %v7165_v42, %v7232_v12  ;;  %v3469_v42 = vadd.f32 %v7171_v48, %v7232_v12 }
 0x26b   :  { %v7208_v32 = vpop.f32.mrf.mxu0 }
 0x26d   :  { %v7210_v31 = vpop.f32.mrf.mxu0 }
 0x26f   :  { %v7212_v35 = vpop.f32.mrf.mxu0 }
 0x271   :  { %v7214_v4 = vpop.f32.mrf.mxu0 }
 0x273   :  { %v7216_v36 = vpop.f32.mrf.mxu0 }
 0x275   :  { %v7218_v15 = vpop.f32.mrf.mxu0 }
 0x277   :  { %v7220_v11 = vpop.f32.mrf.mxu0 }
 0x279   :  { %v7227_v61 = vpop.f32.mrf.mxu0 }
 0x27b   :  { %v7239_v17 = vpop.f32.mrf.mxu0 }
 0x27d   :  { %v7249_v45 = vpop.f32.mrf.mxu0 }
 0x27f   :  { %v7251_v50 = vpop.f32.mrf.mxu0 }
 0x281   :  { %v7261_v13 = vpop.f32.mrf.mxu0 }
 0x2ad   :  { %v3559_v3 = vpop.f32.mrf.mxu1 }
 0x2ae   :  { %v3560_v49 = vadd.f32 %v3559_v3, %v3447_v62 }
 0x2af   :  { %v3561_v26 = vpop.f32.mrf.mxu1 }
 0x2b0   :  { %v3562_v47 = vadd.f32 %v3561_v26, %v3449_v58  ;;  %v3864_v39 = vmax.f32 %v3560_v49, 0.0  ;;  %v3467_v49 = vadd.f32 %v7167_v23, %v7237_v37 }
 0x2b1   :  { %v3563_v60 = vpop.f32.mrf.mxu1 }
 0x2b2   :  { %v3564_v38 = vadd.f32 %v3563_v60, %v3451_v7  ;;  %v3865_v63 = vmax.f32 %v3562_v47, 0.0  ;;  %v7263_v60 = vpop.f32.mrf.mxu0  ;;  %v3471_v47 = vadd.f32 %v7173_v10, %v7237_v37 }
 0x2b3   :  { %v3565_v51 = vpop.f32.mrf.mxu1 }
 0x2b4   :  { %v3566_v59 = vadd.f32 %v3565_v51, %v3453_v27  ;;  %v3868_v5 = vmax.f32 %v3564_v38, 0.0 }
 0x2b5   :  { %v3569_v54 = vpop.f32.mrf.mxu1 }
 0x2b6   :  { %v3869_v9 = vmax.f32 %v3566_v59, 0.0  ;;  %v3928_v14 = vpack.c.bf16 %v3868_v5, %v3864_v39  ;;  %v3570_v3 = vadd.f32 %v3569_v54, %v3457_v24  ;;  %v3473_v5 = vadd.f32 %v7177_v16, %v7232_v12 }
 0x2b7   :  { %v3571_v0 = vpop.f32.mrf.mxu1  ;;  %v3479_v16 = vadd.f32 %v7183_v28, %v7232_v12 }
 0x2b8   :  { %v3929_v52 = vpack.c.bf16 %v3869_v9, %v3865_v63  ;;  %v3572_v21 = vadd.f32 %v3571_v0, %v3459_v1  ;;  %v3872_v55 = vmax.f32 %v3570_v3, 0.0  ;;  %v7273_v9 = vpop.f32.mrf.mxu0 }
 0x2b9   :  { %v3573_v56 = vpop.f32.mrf.mxu1 }
 0x2ba   :  { %v3574_v33 = vadd.f32 %v3573_v56, %v3461_v2  ;;  %4255 = vmatprep.mubr.bf16.mxu0 %v3929_v52  ;;  %v3873_v7 = vmax.f32 %v3572_v21, 0.0  ;;  %v7275_v24 = vpop.f32.mrf.mxu0  ;;  %v3481_v56 = vadd.f32 %v7185_v44, %v7237_v37  ;;  %v3477_v21 = vadd.f32 %v7179_v34, %v7237_v37 }
 0x2bb   :  { %v3575_v26 = vpop.f32.mrf.mxu1  ;;  %4256 = vmatmul.mubr.bf16.vlgmr.msra.gmra.mxu0 %v3928_v14 }
 0x2bc   :  { %v3576_v29 = vadd.f32 %v3575_v26, %v3463_v6  ;;  %v3876_v58 = vmax.f32 %v3574_v33, 0.0  ;;  %v3483_v26 = vadd.f32 %v7188_v46, %v7232_v12  ;;  %v3489_v46 = vadd.f32 %v7192_v43, %v7232_v12 }
 0x2bd   :  { %v3579_v25 = vpop.f32.mrf.mxu1 }
 0x2be   :  { %v3877_v62 = vmax.f32 %v3576_v29, 0.0  ;;  %v3932_v51 = vpack.c.bf16 %v3876_v58, %v3872_v55  ;;  %v3580_v39 = vadd.f32 %v3579_v25, %v3467_v49  ;;  %v7285_v25 = vpop.f32.mrf.mxu0  ;;  %v3491_v49 = vadd.f32 %v7194_v40, %v7237_v37 }
 0x2bf   :  { %v3581_v27 = vpop.f32.mrf.mxu1 }
 0x2c0   :  { %v3933_v38 = vpack.c.bf16 %v3877_v62, %v3873_v7  ;;  %v3582_v54 = vadd.f32 %v3581_v27, %v3469_v42  ;;  %v3880_v23 = vmax.f32 %v3580_v39, 0.0 }
 0x2c1   :  { %v3583_v59 = vpop.f32.mrf.mxu1 }
 0x2c2   :  { %v3584_v63 = vadd.f32 %v3583_v59, %v3471_v47  ;;  %4263 = vmatprep.mubr.bf16.mxu0 %v3933_v38  ;;  %v3881_v2 = vmax.f32 %v3582_v54, 0.0  ;;  %v7287_v47 = vpop.f32.mrf.mxu0  ;;  %v3487_v59 = vadd.f32 %v7190_v30, %v7237_v37 }
 0x2c3   :  { %v3585_v0 = vpop.f32.mrf.mxu1  ;;  %4264 = vmatmul.mubr.bf16.gmra.mxu0 %v3932_v51 }
 0x2c4   :  { %v3586_v48 = vadd.f32 %v3585_v0, %v3473_v5  ;;  %v3884_v1 = vmax.f32 %v3584_v63, 0.0  ;;  %v3493_v63 = vadd.f32 %v7196_v19, %v7232_v12  ;;  %v3499_v19 = vadd.f32 %v7200_v8, %v7232_v12 }
 0x2c5   :  { %v3589_v10 = vpop.f32.mrf.mxu1 }
 0x2c6   :  { %v3885_v52 = vmax.f32 %v3586_v48, 0.0  ;;  %v3936_v33 = vpack.c.bf16 %v3884_v1, %v3880_v23  ;;  %v3590_v7 = vadd.f32 %v3589_v10, %v3477_v21  ;;  %v7297_v48 = vpop.f32.mrf.mxu0  ;;  %v3497_v21 = vadd.f32 %v7198_v20, %v7237_v37 }
 0x2c7   :  { %v3591_v14 = vpop.f32.mrf.mxu1 }
 0x2c8   :  { %v3937_v6 = vpack.c.bf16 %v3885_v52, %v3881_v2  ;;  %v3592_v29 = vadd.f32 %v3591_v14, %v3479_v16  ;;  %v3888_v34 = vmax.f32 %v3590_v7, 0.0  ;;  %v7299_v14 = vpop.f32.mrf.mxu0 }
 0x2c9   :  { %v3593_v3 = vpop.f32.mrf.mxu1 }
 0x2ca   :  { %v3594_v58 = vadd.f32 %v3593_v3, %v3481_v56  ;;  %4271 = vmatprep.mubr.bf16.mxu0 %v3937_v6  ;;  %v3889_v27 = vmax.f32 %v3592_v29, 0.0  ;;  %v3501_v56 = vadd.f32 %v7202_v57, %v7237_v37  ;;  %v7309_v7 = vpop.f32.mrf.mxu0 }
 0x2cb   :  { %v3595_v62 = vpop.f32.mrf.mxu1  ;;  %4272 = vmatmul.mubr.bf16.gmra.mxu0 %v3936_v33 }
 0x2cc   :  { %v3596_v28 = vadd.f32 %v3595_v62, %v3483_v26  ;;  %v3892_v55 = vmax.f32 %v3594_v58, 0.0  ;;  %v3503_v26 = vadd.f32 %v7204_v41, %v7232_v12  ;;  %v3509_v41 = vadd.f32 %v7208_v32, %v7232_v12 }
 0x2cd   :  { %v3599_v44 = vpop.f32.mrf.mxu1 }
 0x2ce   :  { %v3893_v42 = vmax.f32 %v3596_v28, 0.0  ;;  %v3940_v5 = vpack.c.bf16 %v3892_v55, %v3888_v34  ;;  %v3600_v1 = vadd.f32 %v3599_v44, %v3487_v59 }
 0x2cf   :  { %v3601_v38 = vpop.f32.mrf.mxu1 }
 0x2d0   :  { %v3941_v51 = vpack.c.bf16 %v3893_v42, %v3889_v27  ;;  %v3602_v39 = vadd.f32 %v3601_v38, %v3489_v46  ;;  %v3896_v30 = vmax.f32 %v3600_v1, 0.0  ;;  %v7311_v42 = vpop.f32.mrf.mxu0  ;;  %v3511_v38 = vadd.f32 %v7210_v31, %v7237_v37 }
 0x2d1   :  { %v3603_v54 = vpop.f32.mrf.mxu1 }
 0x2d2   :  { %v3604_v0 = vadd.f32 %v3603_v54, %v3491_v49  ;;  %4279 = vmatprep.mubr.bf16.mxu0 %v3941_v51  ;;  %v3897_v52 = vmax.f32 %v3602_v39, 0.0  ;;  %v3507_v49 = vadd.f32 %v7206_v18, %v7237_v37  ;;  %v7321_v39 = vpop.f32.mrf.mxu0 }
 0x2d3   :  { %v3605_v10 = vpop.f32.mrf.mxu1  ;;  %4280 = vmatmul.mubr.bf16.gmra.mxu0 %v3940_v5  ;;  %v3513_v5 = vadd.f32 %v7212_v35, %v7232_v12  ;;  %v3519_v35 = vadd.f32 %v7216_v36, %v7232_v12  ;;  %v7500_v36 = vsub.s32 3, %v7497_v22 }
 0x2d4   :  { %v3606_v43 = vadd.f32 %v3605_v10, %v3493_v63  ;;  %v3900_v2 = vmax.f32 %v3604_v0, 0.0 }
 0x2d5   :  { %v3609_v40 = vpop.f32.mrf.mxu1 }
 0x2d6   :  { %v3901_v23 = vmax.f32 %v3606_v43, 0.0  ;;  %v3944_v33 = vpack.c.bf16 %v3900_v2, %v3896_v30  ;;  %v3610_v62 = vadd.f32 %v3609_v40, %v3497_v21  ;;  %v7323_v40 = vpop.f32.mrf.mxu0 }
 0x2d7   :  { %v3611_v16 = vpop.f32.mrf.mxu1 }
 0x2d8   :  { %v3945_v6 = vpack.c.bf16 %v3901_v23, %v3897_v52  ;;  %v3612_v29 = vadd.f32 %v3611_v16, %v3499_v19  ;;  %v3904_v20 = vmax.f32 %v3610_v62, 0.0  ;;  %v3521_v23 = vadd.f32 %v7218_v15, %v7237_v37 }
 0x2d9   :  { %v3613_v3 = vpop.f32.mrf.mxu1  ;;  %v3517_v16 = vadd.f32 %v7214_v4, %v7237_v37  ;;  %v7338_v15 = vrot.slane %v7225_v53, %v7500_v36  ;;  %v7501_v4 = vsub.s32 2, %v7497_v22 }
 0x2da   :  { %v3614_v58 = vadd.f32 %v3613_v3, %v3501_v56  ;;  %4287 = vmatprep.mubr.bf16.mxu0 %v3945_v6  ;;  %v3905_v44 = vmax.f32 %v3612_v29, 0.0  ;;  %v3523_v6 = vadd.f32 %v7220_v11, %v7232_v12  ;;  %v7333_v3 = vpop.f32.mrf.mxu0 }
 0x2db   :  { %v3615_v28 = vpop.f32.mrf.mxu1  ;;  %4288 = vmatmul.mubr.bf16.gmra.mxu0 %v3944_v33  ;;  %v7343_v37 = vrot.slane %v7225_v53, %v7501_v4 }
 0x2dc   :  { %v3616_v8 = vadd.f32 %v3615_v28, %v3503_v26  ;;  %v3908_v55 = vmax.f32 %v3614_v58, 0.0 }
 0x2dd   :  { %v3619_v57 = vpop.f32.mrf.mxu1  ;;  %v3673_v22 = vadd.f32 %v7227_v61, %v7343_v37  ;;  %v3693_v36 = vadd.f32 %v7285_v25, %v7343_v37 }
 0x2de   :  { %v3909_v27 = vmax.f32 %v3616_v8, 0.0  ;;  %v3948_v51 = vpack.c.bf16 %v3908_v55, %v3904_v20  ;;  %v3620_v0 = vadd.f32 %v3619_v57, %v3507_v49  ;;  %v7345_v8 = vpop.f32.mrf.mxu0 }
 0x2df   :  { %v3621_v34 = vpop.f32.mrf.mxu1 }
 0x2e0   :  { %v3949_v46 = vpack.c.bf16 %v3909_v27, %v3905_v44  ;;  %v3622_v54 = vadd.f32 %v3621_v34, %v3509_v41  ;;  %v3912_v18 = vmax.f32 %v3620_v0, 0.0  ;;  %v3675_v44 = vadd.f32 %v7239_v17, %v7338_v15  ;;  %v7355_v49 = vpop.f32.mrf.mxu0 }
 0x2e1   :  { %v3623_v59 = vpop.f32.mrf.mxu1  ;;  %v3677_v27 = vadd.f32 %v7249_v45, %v7343_v37  ;;  %v3679_v41 = vadd.f32 %v7251_v50, %v7338_v15  ;;  %v3685_v50 = vadd.f32 %v7263_v60, %v7338_v15 }
 0x2e2   :  { %v3624_v63 = vadd.f32 %v3623_v59, %v3511_v38  ;;  %4295 = vmatprep.mubr.bf16.mxu0 %v3949_v46  ;;  %v3913_v43 = vmax.f32 %v3622_v54, 0.0  ;;  %v7357_v0 = vpop.f32.mrf.mxu0 }
 0x2e3   :  { %v3625_v1 = vpop.f32.mrf.mxu1  ;;  %4296 = vmatmul.mubr.bf16.gmra.mxu0 %v3948_v51 }
 0x2e4   :  { %v3626_v32 = vadd.f32 %v3625_v1, %v3513_v5  ;;  %v3916_v10 = vmax.f32 %v3624_v63, 0.0 }
 0x2e5   :  { %v3629_v31 = vpop.f32.mrf.mxu1 }
 0x2e6   :  { %v3917_v2 = vmax.f32 %v3626_v32, 0.0  ;;  %v3952_v19 = vpack.c.bf16 %v3916_v10, %v3912_v18  ;;  %v3630_v26 = vadd.f32 %v3629_v31, %v3517_v16  ;;  %v3687_v32 = vadd.f32 %v7273_v9, %v7343_v37 }
 0x2e7   :  { %v3631_v52 = vpop.f32.mrf.mxu1  ;;  %v3683_v31 = vadd.f32 %v7261_v13, %v7343_v37  ;;  %v3689_v18 = vadd.f32 %v7275_v24, %v7338_v15  ;;  %v3695_v24 = vadd.f32 %v7287_v47, %v7338_v15 }
 0x2e8   :  { %v3953_v30 = vpack.c.bf16 %v3917_v2, %v3913_v43  ;;  %v3632_v21 = vadd.f32 %v3631_v52, %v3519_v35  ;;  %v3920_v55 = vmax.f32 %v3630_v26, 0.0  ;;  %v3697_v26 = vadd.f32 %v7297_v48, %v7343_v37 }
 0x2e9   :  { %v3633_v56 = vpop.f32.mrf.mxu1 }
 0x2ea   :  { %v3634_v33 = vadd.f32 %v3633_v56, %v3521_v23  ;;  %4303 = vmatprep.mubr.bf16.mxu0 %v3953_v30  ;;  %v3921_v62 = vmax.f32 %v3632_v21, 0.0  ;;  %v7367_v23 = vpop.f32.mrf.mxu0 }
 0x2eb   :  { %v3635_v29 = vpop.f32.mrf.mxu1  ;;  %4304 = vmatmul.mubr.bf16.gmra.mxu0 %v3952_v19 }
 0x2ec   :  { %v3636_v58 = vadd.f32 %v3635_v29, %v3523_v6  ;;  %v3924_v11 = vmax.f32 %v3634_v33, 0.0  ;;  %v7369_v21 = vpop.f32.mrf.mxu0 }
 0x2ed   :  { %v3785_v12 = vpop.f32.mrf.mxu1 }
 0x2ee   :  { %v3925_v28 = vmax.f32 %v3636_v58, 0.0  ;;  %v3956_v53 = vpack.c.bf16 %v3924_v11, %v3920_v55  ;;  %v3786_v51 = vadd.f32 %v3785_v12, %v3673_v22  ;;  %v3699_v11 = vadd.f32 %v7299_v14, %v7338_v15 }
 0x2ef   :  { %v3787_v57 = vpop.f32.mrf.mxu1  ;;  %v3707_v14 = vadd.f32 %v7321_v39, %v7343_v37 }
 0x2f0   :  { %v3957_v20 = vpack.c.bf16 %v3925_v28, %v3921_v62  ;;  %v3788_v38 = vadd.f32 %v3787_v57, %v3675_v44  ;;  %v3866_v61 = vmax.f32 %v3786_v51, 0.0  ;;  %v3726_v28 = vpop.f32.mrf.mxu0 }
 0x2f1   :  { %v3789_v34 = vpop.f32.mrf.mxu1 }
 0x2f2   :  { %v3790_v46 = vadd.f32 %v3789_v34, %v3677_v27  ;;  %4311 = vmatprep.mubr.bf16.mxu0 %v3957_v20  ;;  %v3867_v54 = vmax.f32 %v3788_v38, 0.0  ;;  %v3728_v22 = vpop.f32.mrf.mxu0  ;;  %v3705_v34 = vadd.f32 %v7311_v42, %v7338_v15  ;;  %v3703_v38 = vadd.f32 %v7309_v7, %v7343_v37 }
 0x2f3   :  { %v3791_v59 = vpop.f32.mrf.mxu1  ;;  %4312 = vmatmul.mubr.bf16.gmra.mxu0 %v3956_v53 }
 0x2f4   :  { %v3792_v17 = vadd.f32 %v3791_v59, %v3679_v41  ;;  %v3870_v5 = vmax.f32 %v3790_v46, 0.0  ;;  %v3709_v59 = vadd.f32 %v7323_v40, %v7338_v15  ;;  %v3717_v40 = vadd.f32 %v7355_v49, %v7343_v37 }
 0x2f5   :  { %v3795_v45 = vpop.f32.mrf.mxu1 }
 0x2f6   :  { %v3871_v63 = vmax.f32 %v3792_v17, 0.0  ;;  %v3930_v43 = vpack.c.bf16 %v3870_v5, %v3866_v61  ;;  %v3796_v30 = vadd.f32 %v3795_v45, %v3683_v31  ;;  %v3732_v45 = vpop.f32.mrf.mxu0  ;;  %v3715_v31 = vadd.f32 %v7345_v8, %v7338_v15 }
 0x2f7   :  { %v3797_v1 = vpop.f32.mrf.mxu1 }
 0x2f8   :  { %v3931_v10 = vpack.c.bf16 %v3871_v63, %v3867_v54  ;;  %v3798_v52 = vadd.f32 %v3797_v1, %v3685_v50  ;;  %v3874_v13 = vmax.f32 %v3796_v30, 0.0 }
 0x2f9   :  { %v3799_v2 = vpop.f32.mrf.mxu1 }
 0x2fa   :  { %v3800_v35 = vadd.f32 %v3799_v2, %v3687_v32  ;;  %4352 = vmatprep.mubr.bf16.mxu1 %v3931_v10  ;;  %v3875_v56 = vmax.f32 %v3798_v52, 0.0  ;;  %v3734_v32 = vpop.f32.mrf.mxu0  ;;  %v3713_v2 = vadd.f32 %v7333_v3, %v7343_v37 }
 0x2fb   :  { %v3801_v16 = vpop.f32.mrf.mxu1  ;;  %4353 = vmatmul.mubr.bf16.vlgmr.msra.gmra.mxu1 %v3930_v43 }
 0x2fc   :  { %v3802_v60 = vadd.f32 %v3801_v16, %v3689_v18  ;;  %v3878_v19 = vmax.f32 %v3800_v35, 0.0  ;;  %v3719_v35 = vadd.f32 %v7357_v0, %v7338_v15  ;;  %v3727_v0 = vadd.f32 %v3726_v28, %v7343_v37 }
 0x2fd   :  { %v3805_v9 = vpop.f32.mrf.mxu1 }
 0x2fe   :  { %v3879_v6 = vmax.f32 %v3802_v60, 0.0  ;;  %v3934_v58 = vpack.c.bf16 %v3878_v19, %v3874_v13  ;;  %v3806_v55 = vadd.f32 %v3805_v9, %v3693_v36  ;;  %v3736_v60 = vpop.f32.mrf.mxu0  ;;  %v3723_v36 = vadd.f32 %v7367_v23, %v7343_v37 }
 0x2ff   :  { %v3807_v33 = vpop.f32.mrf.mxu1  ;;  %v3735_v23 = vadd.f32 %v3734_v32, %v7338_v15 }
 0x300   :  { %v3935_v29 = vpack.c.bf16 %v3879_v6, %v3875_v56  ;;  %v3808_v12 = vadd.f32 %v3807_v33, %v3695_v24  ;;  %v3882_v53 = vmax.f32 %v3806_v55, 0.0  ;;  %v3738_v33 = vpop.f32.mrf.mxu0 }
 0x301   :  { %v3809_v4 = vpop.f32.mrf.mxu1 }
 0x302   :  { %v3810_v62 = vadd.f32 %v3809_v4, %v3697_v26  ;;  %4360 = vmatprep.mubr.bf16.mxu1 %v3935_v29  ;;  %v3883_v48 = vmax.f32 %v3808_v12, 0.0  ;;  %v3725_v26 = vadd.f32 %v7369_v21, %v7338_v15  ;;  %v3742_v55 = vpop.f32.mrf.mxu0 }
 0x303   :  { %v3811_v57 = vpop.f32.mrf.mxu1  ;;  %4361 = vmatmul.mubr.bf16.gmra.mxu1 %v3934_v58 }
 0x304   :  { %v3812_v47 = vadd.f32 %v3811_v57, %v3699_v11  ;;  %v3886_v44 = vmax.f32 %v3810_v62, 0.0  ;;  %v3729_v11 = vadd.f32 %v3728_v22, %v7338_v15 }
 0x305   :  { %v3815_v27 = vpop.f32.mrf.mxu1 }
 0x306   :  { %v3887_v20 = vmax.f32 %v3812_v47, 0.0  ;;  %v3938_v46 = vpack.c.bf16 %v3886_v44, %v3882_v53  ;;  %v3816_v54 = vadd.f32 %v3815_v27, %v3703_v38 }
 0x307   :  { %v3817_v25 = vpop.f32.mrf.mxu1 }
 0x308   :  { %v3939_v41 = vpack.c.bf16 %v3887_v20, %v3883_v48  ;;  %v3818_v17 = vadd.f32 %v3817_v25, %v3705_v34  ;;  %v3890_v10 = vmax.f32 %v3816_v54, 0.0  ;;  %v3744_v20 = vpop.f32.mrf.mxu0  ;;  %v3737_v34 = vadd.f32 %v3736_v60, %v7343_v37 }
 0x309   :  { %v3819_v51 = vpop.f32.mrf.mxu1 }
 0x30a   :  { %v3820_v5 = vadd.f32 %v3819_v51, %v3707_v14  ;;  %4368 = vmatprep.mubr.bf16.mxu1 %v3939_v41  ;;  %v3891_v39 = vmax.f32 %v3818_v17, 0.0  ;;  %v3733_v14 = vadd.f32 %v3732_v45, %v7343_v37  ;;  %v3746_v17 = vpop.f32.mrf.mxu0  ;;  %v3745_v45 = vadd.f32 %v3744_v20, %v7338_v15 }
 0x30b   :  { %v3821_v63 = vpop.f32.mrf.mxu1  ;;  %4369 = vmatmul.mubr.bf16.gmra.mxu1 %v3938_v46  ;;  %v3739_v46 = vadd.f32 %v3738_v33, %v7338_v15 }
 0x30c   :  { %v3822_v42 = vadd.f32 %v3821_v63, %v3709_v59  ;;  %v3894_v61 = vmax.f32 %v3820_v5, 0.0 }
 0x30d   :  { %v3825_v1 = vpop.f32.mrf.mxu1 }
 0x30e   :  { %v3895_v50 = vmax.f32 %v3822_v42, 0.0  ;;  %v3942_v18 = vpack.c.bf16 %v3894_v61, %v3890_v10  ;;  %v3826_v19 = vadd.f32 %v3825_v1, %v3713_v2 }
 0x30f   :  { %v3827_v7 = vpop.f32.mrf.mxu1 }
 0x310   :  { %v3943_v43 = vpack.c.bf16 %v3895_v50, %v3891_v39  ;;  %v3828_v30 = vadd.f32 %v3827_v7, %v3715_v31  ;;  %v3898_v24 = vmax.f32 %v3826_v19, 0.0  ;;  %v3748_v50 = vpop.f32.mrf.mxu0  ;;  %v3747_v7 = vadd.f32 %v3746_v17, %v7343_v37 }
 0x311   :  { %v3829_v52 = vpop.f32.mrf.mxu1 }
 0x312   :  { %v3830_v16 = vadd.f32 %v3829_v52, %v3717_v40  ;;  %4376 = vmatprep.mubr.bf16.mxu1 %v3943_v43  ;;  %v3899_v49 = vmax.f32 %v3828_v30, 0.0  ;;  %v3743_v40 = vadd.f32 %v3742_v55, %v7343_v37 }
 0x313   :  { %v3831_v9 = vpop.f32.mrf.mxu1  ;;  %4377 = vmatmul.mubr.bf16.gmra.mxu1 %v3942_v18  ;;  %v3749_v18 = vadd.f32 %v3748_v50, %v7338_v15 }
 0x314   :  { %v3832_v8 = vadd.f32 %v3831_v9, %v3719_v35  ;;  %v3902_v56 = vmax.f32 %v3830_v16, 0.0 }
 0x315   :  { %v3835_v6 = vpop.f32.mrf.mxu1 }
 0x316   :  { %v3903_v13 = vmax.f32 %v3832_v8, 0.0  ;;  %v3946_v58 = vpack.c.bf16 %v3902_v56, %v3898_v24  ;;  %v3836_v57 = vadd.f32 %v3835_v6, %v3723_v36 }
 0x317   :  { %v3837_v3 = vpop.f32.mrf.mxu1 }
 0x318   :  { %v3947_v29 = vpack.c.bf16 %v3903_v13, %v3899_v49  ;;  %v3838_v12 = vadd.f32 %v3837_v3, %v3725_v26  ;;  %v3906_v53 = vmax.f32 %v3836_v57, 0.0 }
 0x319   :  { %v3839_v4 = vpop.f32.mrf.mxu1 }
 0x31a   :  { %v3840_v62 = vadd.f32 %v3839_v4, %v3727_v0  ;;  %4384 = vmatprep.mubr.bf16.mxu1 %v3947_v29  ;;  %v3907_v48 = vmax.f32 %v3838_v12, 0.0 }
 0x31b   :  { %v3841_v47 = vpop.f32.mrf.mxu1  ;;  %4385 = vmatmul.mubr.bf16.gmra.mxu1 %v3946_v58 }
 0x31c   :  { %v3842_v44 = vadd.f32 %v3841_v47, %v3729_v11  ;;  %v3910_v27 = vmax.f32 %v3840_v62, 0.0 }
 0x31d   :  { %v3845_v21 = vpop.f32.mrf.mxu1 }
 0x31e   :  { %v3911_v28 = vmax.f32 %v3842_v44, 0.0  ;;  %v3950_v41 = vpack.c.bf16 %v3910_v27, %v3906_v53  ;;  %v3846_v5 = vadd.f32 %v3845_v21, %v3733_v14 }
 0x31f   :  { %v3847_v25 = vpop.f32.mrf.mxu1 }
 0x320   :  { %v3951_v22 = vpack.c.bf16 %v3911_v28, %v3907_v48  ;;  %v3848_v51 = vadd.f32 %v3847_v25, %v3735_v23  ;;  %v3914_v32 = vmax.f32 %v3846_v5, 0.0  ;;  %v7416_v28 = vld [vmem:[%s7466_s6] ss:$0 sm:$0xff] }
 0x321   :  { %v3849_v38 = vpop.f32.mrf.mxu1 }
 0x322   :  { %v3850_v59 = vadd.f32 %v3849_v38, %v3737_v34  ;;  %4392 = vmatprep.mubr.bf16.mxu1 %v3951_v22  ;;  %v3915_v1 = vmax.f32 %v3848_v51, 0.0 }
 0x323   :  { %v3851_v54 = vpop.f32.mrf.mxu1  ;;  %4393 = vmatmul.mubr.bf16.gmra.mxu1 %v3950_v41 }
 0x324   :  { %v3852_v63 = vadd.f32 %v3851_v54, %v3739_v46  ;;  %v3918_v42 = vmax.f32 %v3850_v59, 0.0 }
 0x325   :  { %v3855_v61 = vpop.f32.mrf.mxu1 }
 0x326   :  { %v3919_v39 = vmax.f32 %v3852_v63, 0.0  ;;  %v3954_v43 = vpack.c.bf16 %v3918_v42, %v3914_v32  ;;  %v3856_v30 = vadd.f32 %v3855_v61, %v3743_v40 }
 0x327   :  { %v3857_v10 = vpop.f32.mrf.mxu1 }
 0x328   :  { %v3955_v31 = vpack.c.bf16 %v3919_v39, %v3915_v1  ;;  %v3858_v52 = vadd.f32 %v3857_v10, %v3745_v45  ;;  %v3922_v56 = vmax.f32 %v3856_v30, 0.0 }
 0x329   :  { %v3859_v2 = vpop.f32.mrf.mxu1 }
 0x32a   :  { %v3860_v35 = vadd.f32 %v3859_v2, %v3747_v7  ;;  %4400 = vmatprep.mubr.bf16.mxu1 %v3955_v31  ;;  %v3923_v9 = vmax.f32 %v3858_v52, 0.0 }
 0x32b   :  { %v3861_v16 = vpop.f32.mrf.mxu1  ;;  %4401 = vmatmul.mubr.bf16.gmra.mxu1 %v3954_v43 }
 0x32c   :  { %v3862_v60 = vadd.f32 %v3861_v16, %v3749_v18  ;;  %v3926_v19 = vmax.f32 %v3860_v35, 0.0 }
 0x32e   :  { %v3927_v8 = vmax.f32 %v3862_v60, 0.0  ;;  %v3958_v49 = vpack.c.bf16 %v3926_v19, %v3922_v56 }
 0x330   :  { %v3959_v6 = vpack.c.bf16 %v3927_v8, %v3923_v9 }
 0x332   :  { %4408 = vmatprep.mubr.bf16.mxu1 %v3959_v6 }
 0x333   :  { %4409 = vmatmul.mubr.bf16.gmra.mxu1 %v3958_v49 }
 0x37b   :  { %v5027_v37 = vpop.f32.mrf.mxu0 }
 0x37d   :  { %v5028_v13 = vpop.f32.mrf.mxu0 }
 0x37e   :  { %v5029_v21 = vadd.f32 %v5028_v13, %v5027_v37 }
 0x37f   :  { %v5030_v33 = vpop.f32.mrf.mxu0 }
 0x380   :  { %v4258_v34 = vadd.f32 %v5029_v21, %v7416_v28 }
 0x381   :  { %v5031_v24 = vpop.f32.mrf.mxu0 }
 0x382   :  { %v5032_v48 = vadd.f32 %v5031_v24, %v5030_v33 }
 0x383   :  { %v5033_v15 = vpop.f32.mrf.mxu0 }
 0x384   :  { %v4261_v22 = vadd.f32 %v5032_v48, %v7416_v28 }
 0x385   :  { %v5034_v3 = vpop.f32.mrf.mxu0 }
 0x386   :  { %v5035_v17 = vadd.f32 %v5034_v3, %v5033_v15 }
 0x387   :  { %v5036_v26 = vpop.f32.mrf.mxu0 }
 0x388   :  { %v4266_v39 = vadd.f32 %v5035_v17, %v7416_v28 }
 0x389   :  { %v5037_v0 = vpop.f32.mrf.mxu0 }
 0x38a   :  { %v5038_v5 = vadd.f32 %v5037_v0, %v5036_v26 }
 0x38b   :  { %v5039_v29 = vpop.f32.mrf.mxu0 }
 0x38c   :  { %v4269_v50 = vadd.f32 %v5038_v5, %v7416_v28 }
 0x38d   :  { %v5040_v36 = vpop.f32.mrf.mxu0 }
 0x38e   :  { %v5041_v43 = vadd.f32 %v5040_v36, %v5039_v29 }
 0x38f   :  { %v5042_v58 = vpop.f32.mrf.mxu0 }
 0x390   :  { %v4274_v60 = vadd.f32 %v5041_v43, %v7416_v28 }
 0x391   :  { %v5043_v4 = vpop.f32.mrf.mxu0 }
 0x392   :  { %v5044_v2 = vadd.f32 %v5043_v4, %v5042_v58 }
 0x393   :  { %v5045_v11 = vpop.f32.mrf.mxu0 }
 0x394   :  { %v4277_v19 = vadd.f32 %v5044_v2, %v7416_v28 }
 0x395   :  { %v5046_v12 = vpop.f32.mrf.mxu0 }
 0x396   :  { %v5047_v13 = vadd.f32 %v5046_v12, %v5045_v11 }
 0x397   :  { %v5048_v62 = vpop.f32.mrf.mxu0 }
 0x398   :  { %v4282_v29 = vadd.f32 %v5047_v13, %v7416_v28 }
 0x399   :  { %v5049_v55 = vpop.f32.mrf.mxu0 }
 0x39a   :  { %v5050_v33 = vadd.f32 %v5049_v55, %v5048_v62 }
 0x39b   :  { %v7409_v57 = vpop.f32.mrf.mxu0 }
 0x39c   :  { %v4285_v36 = vadd.f32 %v5050_v33, %v7416_v28 }
 0x39d   :  { %v7411_v47 = vpop.f32.mrf.mxu0 }
 0x39e   :  { %v5053_v12 = vadd.f32 %v7411_v47, %v7409_v57 }
 0x39f   :  { %v5054_v20 = vpop.f32.mrf.mxu0 }
 0x3a1   :  { %v5055_v41 = vpop.f32.mrf.mxu0 }
 0x3a2   :  { %v5056_v62 = vadd.f32 %v5055_v41, %v5054_v20 }
 0x3a3   :  { %v5057_v63 = vpop.f32.mrf.mxu0 }
 0x3a5   :  { %v5058_v10 = vpop.f32.mrf.mxu0 }
 0x3a6   :  { %v5059_v47 = vadd.f32 %v5058_v10, %v5057_v63 }
 0x3a7   :  { %v5060_v52 = vpop.f32.mrf.mxu0 }
 0x3a9   :  { %v5061_v8 = vpop.f32.mrf.mxu0 }
 0x3aa   :  { %v5062_v20 = vadd.f32 %v5061_v8, %v5060_v52 }
 0x3ab   :  { %v5063_v15 = vpop.f32.mrf.mxu0 }
 0x3ad   :  { %v5064_v4 = vpop.f32.mrf.mxu0 }
 0x3ae   :  { %v5065_v10 = vadd.f32 %v5064_v4, %v5063_v15 }
 0x3af   :  { %v5066_v48 = vpop.f32.mrf.mxu0 }
 0x3bb   :  { %v5091_v44 = vpop.f32.mrf.mxu1 }
 0x3bd   :  { %v5092_v27 = vpop.f32.mrf.mxu1 }
 0x3be   :  { %v5093_v25 = vadd.f32 %v5092_v27, %v5091_v44 }
 0x3bf   :  { %v5094_v53 = vpop.f32.mrf.mxu1 }
 0x3c0   :  { %v4355_v46 = vadd.f32 %v5093_v25, %v4258_v34  ;;  %v4290_v34 = vadd.f32 %v5053_v12, %v7416_v28 }
 0x3c1   :  { %v5095_v23 = vpop.f32.mrf.mxu1 }
 0x3c2   :  { %v5096_v14 = vadd.f32 %v5095_v23, %v5094_v53 }
 0x3c3   :  { %v5097_v38 = vpop.f32.mrf.mxu1 }
 0x3c4   :  { %v4358_v51 = vadd.f32 %v5096_v14, %v4261_v22  ;;  %v4293_v22 = vadd.f32 %v5056_v62, %v7416_v28 }
 0x3c5   :  { %v5098_v59 = vpop.f32.mrf.mxu1 }
 0x3c6   :  { %v4967_v54 = vpack.c.bf16 %v4358_v51, %v4355_v46  ;;  %v5099_v61 = vadd.f32 %v5098_v59, %v5097_v38  ;;  %v5067_v38 = vpop.f32.mrf.mxu0 }
 0x3c7   :  { %v5100_v42 = vpop.f32.mrf.mxu1 }
 0x3c8   :  { %4968 = vst [vmem:[%s7467_s7] sm:$0xff] %v4967_v54   ;;  %v4363_v7 = vadd.f32 %v5099_v61, %v4266_v39  ;;  %v5069_v17 = vpop.f32.mrf.mxu0  ;;  %v4298_v61 = vadd.f32 %v5059_v47, %v7416_v28 }
 0x3c9   :  { %v5101_v1 = vpop.f32.mrf.mxu1 }
 0x3ca   :  { %v5102_v32 = vadd.f32 %v5101_v1, %v5100_v42  ;;  %v4301_v1 = vadd.f32 %v5062_v20, %v7416_v28 }
 0x3cb   :  { %v5103_v45 = vpop.f32.mrf.mxu1 }
 0x3cc   :  { %v4366_v31 = vadd.f32 %v5102_v32, %v4269_v50  ;;  %v5070_v50 = vpop.f32.mrf.mxu0 }
 0x3cd   :  { %v5104_v40 = vpop.f32.mrf.mxu1 }
 0x3ce   :  { %v4972_v18 = vpack.c.bf16 %v4366_v31, %v4363_v7  ;;  %v5105_v30 = vadd.f32 %v5104_v40, %v5103_v45  ;;  %v5068_v31 = vadd.f32 %v5067_v38, %v5066_v48  ;;  %v5072_v43 = vpop.f32.mrf.mxu0 }
 0x3cf   :  { %v5106_v35 = vpop.f32.mrf.mxu1 }
 0x3d0   :  { %5004 = vst [vmem:[%s7467_s7 + $0x8] sm:$0xff] %v4972_v18   ;;  %v4371_v6 = vadd.f32 %v5105_v30, %v4274_v60  ;;  %v4309_v30 = vadd.f32 %v5068_v31, %v7416_v28  ;;  %v5073_v60 = vpop.f32.mrf.mxu0 }
 0x3d1   :  { %v5107_v16 = vpop.f32.mrf.mxu1 }
 0x3d2   :  { %v5108_v9 = vadd.f32 %v5107_v16, %v5106_v35  ;;  %v4306_v35 = vadd.f32 %v5065_v10, %v7416_v28 }
 0x3d3   :  { %v5109_v56 = vpop.f32.mrf.mxu1 }
 0x3d4   :  { %v4374_v49 = vadd.f32 %v5108_v9, %v4277_v19 }
 0x3d5   :  { %v5110_v37 = vpop.f32.mrf.mxu1 }
 0x3d6   :  { %v4977_v24 = vpack.c.bf16 %v4374_v49, %v4371_v6  ;;  %v5111_v26 = vadd.f32 %v5110_v37, %v5109_v56  ;;  %v5071_v6 = vadd.f32 %v5070_v50, %v5069_v17  ;;  %v5074_v49 = vadd.f32 %v5073_v60, %v5072_v43 }
 0x3d7   :  { %v5112_v3 = vpop.f32.mrf.mxu1 }
 0x3d8   :  { %5005 = vst [vmem:[%s7467_s7 + $0x10] sm:$0xff] %v4977_v24   ;;  %v4379_v27 = vadd.f32 %v5111_v26, %v4282_v29  ;;  %v4314_v15 = vadd.f32 %v5071_v6, %v7416_v28 }
 0x3d9   :  { %v5113_v0 = vpop.f32.mrf.mxu1 }
 0x3da   :  { %v5114_v58 = vadd.f32 %v5113_v0, %v5112_v3  ;;  %v4317_v3 = vadd.f32 %v5074_v49, %v7416_v28 }
 0x3db   :  { %v5115_v44 = vpop.f32.mrf.mxu1 }
 0x3dc   :  { %v4382_v21 = vadd.f32 %v5114_v58, %v4285_v36 }
 0x3dd   :  { %v5116_v11 = vpop.f32.mrf.mxu1 }
 0x3de   :  { %v4982_v55 = vpack.c.bf16 %v4382_v21, %v4379_v27  ;;  %v5117_v25 = vadd.f32 %v5116_v11, %v5115_v44 }
 0x3df   :  { %v5118_v53 = vpop.f32.mrf.mxu1 }
 0x3e0   :  { %5006 = vst [vmem:[%s7467_s7 + $0x18] sm:$0xff] %v4982_v55   ;;  %v4387_v51 = vadd.f32 %v5117_v25, %v4290_v34 }
 0x3e1   :  { %v5119_v23 = vpop.f32.mrf.mxu1 }
 0x3e2   :  { %v5120_v14 = vadd.f32 %v5119_v23, %v5118_v53 }
 0x3e3   :  { %v5121_v46 = vpop.f32.mrf.mxu1 }
 0x3e4   :  { %v4390_v59 = vadd.f32 %v5120_v14, %v4293_v22 }
 0x3e5   :  { %v5122_v57 = vpop.f32.mrf.mxu1 }
 0x3e6   :  { %v4987_v41 = vpack.c.bf16 %v4390_v59, %v4387_v51  ;;  %v5123_v54 = vadd.f32 %v5122_v57, %v5121_v46 }
 0x3e7   :  { %v5124_v5 = vpop.f32.mrf.mxu1 }
 0x3e8   :  { %5007 = vst [vmem:[%s7467_s7 + $0x20] sm:$0xff] %v4987_v41   ;;  %v4395_v45 = vadd.f32 %v5123_v54, %v4298_v61 }
 0x3e9   :  { %v5125_v42 = vpop.f32.mrf.mxu1 }
 0x3ea   :  { %v5126_v39 = vadd.f32 %v5125_v42, %v5124_v5 }
 0x3eb   :  { %v5127_v32 = vpop.f32.mrf.mxu1 }
 0x3ec   :  { %v4398_v7 = vadd.f32 %v5126_v39, %v4301_v1 }
 0x3ed   :  { %v5128_v63 = vpop.f32.mrf.mxu1 }
 0x3ee   :  { %v4992_v40 = vpack.c.bf16 %v4398_v7, %v4395_v45  ;;  %v5129_v18 = vadd.f32 %v5128_v63, %v5127_v32 }
 0x3ef   :  { %v5130_v2 = vpop.f32.mrf.mxu1 }
 0x3f0   :  { %5008 = vst [vmem:[%s7467_s7 + $0x28] sm:$0xff] %v4992_v40   ;;  %v4403_v9 = vadd.f32 %v5129_v18, %v4306_v35 }
 0x3f1   :  { %v5131_v52 = vpop.f32.mrf.mxu1 }
 0x3f2   :  { %v5132_v16 = vadd.f32 %v5131_v52, %v5130_v2 }
 0x3f3   :  { %v5133_v19 = vpop.f32.mrf.mxu1 }
 0x3f4   :  { %v4406_v8 = vadd.f32 %v5132_v16, %v4309_v30 }
 0x3f5   :  { %v5134_v56 = vpop.f32.mrf.mxu1 }
 0x3f6   :  { %v4997_v37 = vpack.c.bf16 %v4406_v8, %v4403_v9  ;;  %v5135_v33 = vadd.f32 %v5134_v56, %v5133_v19 }
 0x3f7   :  { %v5136_v13 = vpop.f32.mrf.mxu1 }
 0x3f8   :  { %5009 = vst [vmem:[%s7467_s7 + $0x30] sm:$0xff] %v4997_v37   ;;  %v4411_v0 = vadd.f32 %v5135_v33, %v4314_v15 }
 0x3f9   :  { %v5137_v24 = vpop.f32.mrf.mxu1 }
 0x3fa   :  { %v5138_v26 = vadd.f32 %v5137_v24, %v5136_v13 }
 0x3fc   :  { %v4414_v29 = vadd.f32 %v5138_v26, %v4317_v3 }
 0x3fe   :  { %v5002_v36 = vpack.c.bf16 %v4414_v29, %v4411_v0 }
 0x400   :  { %5010 = vst [vmem:[%s7467_s7 + $0x38] sm:$0xff] %v5002_v36  }
 0x401   :  { %4501 = vsyncpa [#allocation3], 1 }
 0x402   :  { %4502 = vsyncpa [#allocation5], 1 }

</bundles_post_ra>
